<compile_context>
chip_gen: v5e
topology: v5e:2x2
jax: 0.10.0
libtpu: 0.0.40
codegen_flags: <defaults>
</compile_context>

<pallas_src>
import math
import numpy as np
import jax
import jax.numpy as jnp
from jax.experimental import pallas as pl
from jax.experimental.pallas import tpu as pltpu

BN_EPS = 1e-5          # PyTorch nn.BatchNorm3d default
LANE = 128             # lane-dense channel/class padding target
NEG = -1e30            # "minus infinity" bias for padded class columns


def _round_up(x, m):
    return (x + m - 1) // m * m


# --------------------------------------------------------------------------
# Wrapper-side layout plumbing: im2col for the 3-D conv (stride (1,2,2)).
# Feature ordering is (c, kd, kh, kw), matching wc.reshape(96, -1).
# Per-frame rows are laid out as an (h_out, w_pad) grid with w_pad % 8 == 0 so
# the in-kernel regroup reshape is a clean sublane regroup; padded w rows and
# padded K features are zeros.
# --------------------------------------------------------------------------
def _im2col_video(x, kd, kh, kw, sh, sw, w_pad, k_pad, out_dtype):
    B, C, T, H, W = x.shape
    t_out = T - kd + 1
    h_out = (H - kh) // sh + 1
    w_out = (W - kw) // sw + 1
    cols = []
    for dd in range(kd):
        for dh in range(kh):
            for dw in range(kw):
                patch = jax.lax.slice(
                    x,
                    (0, 0, dd, dh, dw),
                    (B, C, dd + t_out,
                     dh + (h_out - 1) * sh + 1,
                     dw + (w_out - 1) * sw + 1),
                    (1, 1, 1, sh, sw))            # (B, C, t_out, h_out, w_out)
                cols.append(patch)
    p = jnp.stack(cols, axis=2)                   # (B, C, taps, t_out, h_out, w_out)
    p = p.transpose(0, 3, 4, 5, 1, 2)             # (B, t_out, h_out, w_out, C, taps)
    K = C * kd * kh * kw
    p = p.reshape(B, t_out, h_out, w_out, K)
    p = jnp.pad(p, ((0, 0), (0, 0), (0, 0), (0, w_pad - w_out), (0, k_pad - K)))
    p = p.reshape(B, t_out * h_out * w_pad, k_pad).astype(out_dtype)
    return p, (t_out, h_out, w_out)


def _pick_batch_block(batch, max_bt=8):
    """Largest divisor of `batch` <= max_bt, preferring >= 2 grid steps so the
    pipeline can double-buffer the patches DMA (and both v7x cores stay busy)."""
    divisors = [d for d in range(1, min(batch, max_bt) + 1) if batch % d == 0]
    for d in reversed(divisors):
        if batch // d >= 2:
            return d
    return divisors[-1]


# --------------------------------------------------------------------------
# Fused Pallas kernel (one grid step == Bt batch elements).
# --------------------------------------------------------------------------
def _make_fused_kernel(bt, t_out, h_out, w_pad, hp, wp):
    inv_windows = 1.0 / float(hp * wp)

    def kernel(patches_ref, aud_ref, up_ref, wc_ref, bc_ref,
               w1_ref, b1_ref, w2_ref, b2_ref, w3a_ref, w3v_ref, b3_ref,
               out_ref):
        # ---- visual frontend: Conv3d as one im2col matmul + folded BN + ReLU
        p2 = patches_ref[0]                                        # (bt*rows_pad, Kp) bf16
        y = jnp.dot(p2, wc_ref[...],
                    preferred_element_type=jnp.float32) + bc_ref[...]
        y = jnp.maximum(y, 0.0)                                    # (bt*rows_pad, 128) f32

        # ---- MaxPool3d((1,3,3),(1,2,2)) + spatial mean, vectorized ----------
        # Regroup rows into (frame, h, w_pad, lane): clean since w_pad % 8 == 0.
        y4 = y.reshape(bt * t_out, h_out, w_pad, LANE)
        acc = None
        for i in range(hp):
            for j in range(wp):
                win = y4[:, 2 * i:2 * i + 3, 2 * j:2 * j + 3, :]   # (bt*t_out, 3, 3, 128)
                m = jnp.max(jnp.max(win, axis=2), axis=1)          # (bt*t_out, 128)
                acc = m if acc is None else acc + m
        vid_feat = acc * inv_windows                               # (bt*t_out, 128)

        # ---- per-sample epilogue (tiny matmuls) ------------------------------
        # fc1, nearest upsample (one-hot matmul), fc2, fc3 on the implicit
        # concat (split weights), numerically stable log_softmax.
        up = up_ref[...]                                           # (T_a, t_out)
        for b in range(bt):
            vf = vid_feat[b * t_out:(b + 1) * t_out, :]            # (t_out, 128)
            vid_enc = jnp.dot(vf, w1_ref[...],
                              preferred_element_type=jnp.float32) + b1_ref[...]
            vid_up = jnp.dot(up, vid_enc,
                             preferred_element_type=jnp.float32)   # (T_a, 128)
            aud_enc = jnp.dot(aud_ref[b], w2_ref[...],
                              preferred_element_type=jnp.float32) + b2_ref[...]
            logits = (jnp.dot(aud_enc, w3a_ref[...], preferred_element_type=jnp.float32)
                      + jnp.dot(vid_up, w3v_ref[...], preferred_element_type=jnp.float32)
                      + b3_ref[...])                               # (T_a, 128)
            mx = jnp.max(logits, axis=-1, keepdims=True)
            s = logits - mx
            lse = jnp.log(jnp.sum(jnp.exp(s), axis=-1, keepdims=True))
            out_ref[b] = s - lse

    return kernel


# --------------------------------------------------------------------------
# Forward wrapper (mirrors Base_model.forward signature).
# --------------------------------------------------------------------------
def base_model_forward(video_inputs, video_input_lengths, audio_inputs,
                       audio_input_lengths, targets, target_lengths, params,
                       *, conv_dtype=jnp.bfloat16, batch_block=None):
    # conv_dtype=jnp.float32 recovers near-exact numerics at 2x the patch DMA.
    del video_input_lengths, audio_input_lengths, targets, target_lengths  # unused
    (wc, bc, bn_g, bn_b, bn_mean, bn_var, w1, b1, w2, b2, w3, b3) = params

    B = video_inputs.shape[0]
    T_a = audio_inputs.shape[1]
    num_classes = w3.shape[1]
    C_out = wc.shape[0]                                  # 96
    kd, kh, kw = wc.shape[2], wc.shape[3], wc.shape[4]   # (5, 7, 7)
    K = wc.shape[1] * kd * kh * kw                       # 735
    Kp = _round_up(K, LANE)                              # 768 (lane-dense MXU feed)

    t_out = video_inputs.shape[2] - kd + 1
    h_out = (video_inputs.shape[3] - kh) // 2 + 1
    w_out = (video_inputs.shape[4] - kw) // 2 + 1
    w_pad = _round_up(w_out, 8)                          # sublane-clean per-frame layout
    rows_pad = t_out * h_out * w_pad
    hp = (h_out - 3) // 2 + 1
    wp = (w_out - 3) // 2 + 1

    Bt = batch_block if batch_block is not None else _pick_batch_block(B)
    assert B % Bt == 0, "batch_block must divide the batch size"
    G = B // Bt

    # im2col patch extraction (layout plumbing, wrapper-side); bf16 halves the
    # dominant HBM traffic caused by the ~12x im2col inflation.
    patches, _ = _im2col_video(video_inputs, kd, kh, kw, 2, 2, w_pad, Kp, conv_dtype)
    patches = patches.reshape(G, Bt * rows_pad, Kp)      # batch-blocked, merged wrapper-side

    # fold eval-mode BatchNorm3d into the conv weight/bias; pad K->Kp, Cout->128
    inv_sigma = bn_g / jnp.sqrt(bn_var + BN_EPS)                        # (96,)
    wc_fold = (wc * inv_sigma[:, None, None, None, None]).reshape(C_out, K).T  # (K, 96)
    bc_fold = (bc - bn_mean) * inv_sigma + bn_b                         # (96,)
    wc_p = jnp.pad(wc_fold, ((0, Kp - K), (0, LANE - C_out))).astype(conv_dtype)
    bc_p = jnp.pad(bc_fold, (0, LANE - C_out)).reshape(1, LANE)         # f32

    # lane-dense fc weights; fc3 split into audio/video halves (no concat in kernel)
    w1_p = jnp.pad(w1, ((0, LANE - w1.shape[0]), (0, 0)))               # (128, 128)
    w2_p = jnp.pad(w2, ((0, LANE - w2.shape[0]), (0, 0)))               # (128, 128)
    b1_p = b1.reshape(1, LANE)
    b2_p = b2.reshape(1, LANE)
    w3a = jnp.pad(w3[:128], ((0, 0), (0, LANE - num_classes)))          # audio half
    w3v = jnp.pad(w3[128:], ((0, 0), (0, LANE - num_classes)))          # video half
    b3_p = jnp.pad(b3, (0, LANE - num_classes), constant_values=NEG).reshape(1, LANE)
    aud_p = jnp.pad(audio_inputs,
                    ((0, 0), (0, 0), (0, LANE - audio_inputs.shape[-1])))  # (B, T_a, 128)

    # nearest-neighbour upsample (PyTorch F.interpolate default 'nearest', legacy
    # floor(i * scale) indices) as a one-hot matrix -> tiny MXU matmul, no gather.
    scale = np.float32(t_out) / np.float32(T_a)
    idx = np.minimum(
        np.floor(np.arange(T_a, dtype=np.float32) * scale).astype(np.int32), t_out - 1)
    up = jnp.asarray(np.eye(t_out, dtype=np.float32)[idx])              # (T_a, t_out)

    # derive the VMEM request from the actual tile math (perf review: don't blanket
    # 32 MiB); clamp well under v7x's 64 MiB physical VMEM.
    itemsize = jnp.dtype(conv_dtype).itemsize
    blk_bytes = Bt * rows_pad * Kp * itemsize + 2 * Bt * T_a * LANE * 4
    wgt_bytes = Kp * LANE * itemsize + 4 * LANE * LANE * 4 + 4 * LANE * 4 + T_a * t_out * 4
    interm_bytes = Bt * rows_pad * LANE * 4
    vmem_limit = int(1.5 * (2 * blk_bytes + 2 * wgt_bytes + 2 * interm_bytes)) + (2 << 20)
    vmem_limit = min(max(vmem_limit, 16 << 20), 48 << 20)

    kernel = _make_fused_kernel(Bt, t_out, h_out, w_pad, hp, wp)
    const = lambda g: (0, 0)

    out = pl.pallas_call(
        kernel,
        out_shape=jax.ShapeDtypeStruct((B, T_a, LANE), jnp.float32),
        grid=(G,),
        in_specs=[
            pl.BlockSpec((1, Bt * rows_pad, Kp), lambda g: (g, 0, 0)),  # im2col patches (bf16)
            pl.BlockSpec((Bt, T_a, LANE), lambda g: (g, 0, 0)),         # padded audio
            pl.BlockSpec((T_a, t_out), const),                          # upsample one-hot
            pl.BlockSpec((Kp, LANE), const),                            # conv weight (BN-folded)
            pl.BlockSpec((1, LANE), const),                             # conv bias
            pl.BlockSpec((LANE, LANE), const),                          # fc1 weight (padded)
            pl.BlockSpec((1, LANE), const),                             # fc1 bias
            pl.BlockSpec((LANE, LANE), const),                          # fc2 weight (padded)
            pl.BlockSpec((1, LANE), const),                             # fc2 bias
            pl.BlockSpec((LANE, LANE), const),                          # fc3 weight (audio half)
            pl.BlockSpec((LANE, LANE), const),                          # fc3 weight (video half)
            pl.BlockSpec((1, LANE), const),                             # fc3 bias (pad = -1e30)
        ],
        out_specs=pl.BlockSpec((Bt, T_a, LANE), lambda g: (g, 0, 0)),
        compiler_params=pltpu.CompilerParams(
            dimension_semantics=("parallel",),
            vmem_limit_bytes=vmem_limit),
    )(patches, aud_p, up, wc_p, bc_p, w1_p, b1_p, w2_p, b2_p, w3a, w3v, b3_p)

    return out[:, :, :num_classes]


# --------------------------------------------------------------------------
# Pure-JAX reference (unfused path).  conv_dtype lets the reference apply the
# same bf16 rounding to the conv operands as the kernel (apples-to-apples
# check); conv_dtype=float32 is the full-precision model.
# --------------------------------------------------------------------------
def _ref_forward(video, audio, params, conv_dtype=jnp.float32):
    (wc, bc, bn_g, bn_b, bn_mean, bn_var, w1, b1, w2, b2, w3, b3) = params
    hi = jax.lax.Precision.HIGHEST
    inv = bn_g / jnp.sqrt(bn_var + BN_EPS)
    wc_f = (wc * inv[:, None, None, None, None]).astype(conv_dtype).astype(jnp.float32)
    bc_f = (bc - bn_mean) * inv + bn_b
    v = video.astype(conv_dtype).astype(jnp.float32)
    y = jax.lax.conv_general_dilated(
        v, wc_f, window_strides=(1, 2, 2), padding='VALID',
        dimension_numbers=('NCDHW', 'OIDHW', 'NCDHW'), precision=hi)
    y = jnp.maximum(y + bc_f.reshape(1, -1, 1, 1, 1), 0.0)
    y = jax.lax.reduce_window(y, -jnp.inf, jax.lax.max,
                              (1, 1, 1, 3, 3), (1, 1, 1, 2, 2), 'VALID')
    y = y.mean(axis=(3, 4))                         # (B, 96, t_out)
    v3 = y.transpose(0, 2, 1)                       # (B, t_out, 96)
    vid_enc = jnp.dot(v3, w1, precision=hi) + b1    # (B, t_out, 128)
    aud_enc = jnp.dot(audio, w2, precision=hi) + b2 # (B, T_a, 128)
    t_out, T_a = vid_enc.shape[1], aud_enc.shape[1]
    scale = np.float32(t_out) / np.float32(T_a)
    idx = np.minimum(
        np.floor(np.arange(T_a, dtype=np.float32) * scale).astype(np.int32), t_out - 1)
    vid_up = vid_enc[:, idx, :]
    fused = jnp.concatenate([aud_enc, vid_up], axis=-1)
    logits = jnp.dot(fused, w3, precision=hi) + b3
    return jax.nn.log_softmax(logits, axis=-1)


if __name__ == "__main__":
    B, T_v, H, W = 4, 8, 16, 16            # B=4 exercises the batch-blocked path (Bt=2)
    T_a, num_classes = 12, 10

    key = jax.random.PRNGKey(0)
    ks = jax.random.split(key, 14)

    video_inputs = jax.random.normal(ks[0], (B, 3, T_v, H, W), jnp.float32)
    audio_inputs = jax.random.normal(ks[1], (B, T_a, 80), jnp.float32)
    video_input_lengths = jnp.full((B,), T_v, jnp.int32)
    audio_input_lengths = jnp.full((B,), T_a, jnp.int32)
    targets = jnp.zeros((B, 4), jnp.int32)
    target_lengths = jnp.full((B,), 4, jnp.int32)

    fan_conv = 3 * 5 * 7 * 7
    params = (
        jax.random.normal(ks[2], (96, 3, 5, 7, 7), jnp.float32) * math.sqrt(2.0 / fan_conv),
        jax.random.normal(ks[3], (96,), jnp.float32) * 0.05,              # conv bias
        jax.random.uniform(ks[4], (96,), jnp.float32, 0.5, 1.5),          # bn gamma
        jax.random.normal(ks[5], (96,), jnp.float32) * 0.05,              # bn beta
        jax.random.normal(ks[6], (96,), jnp.float32) * 0.05,              # bn running mean
        jax.random.uniform(ks[7], (96,), jnp.float32, 0.5, 1.5),          # bn running var
        jax.random.normal(ks[8], (96, 128), jnp.float32) * math.sqrt(1.0 / 96),
        jax.random.normal(ks[9], (128,), jnp.float32) * 0.05,             # fc1 bias
        jax.random.normal(ks[10], (80, 128), jnp.float32) * math.sqrt(1.0 / 80),
        jax.random.normal(ks[11], (128,), jnp.float32) * 0.05,            # fc2 bias
        jax.random.normal(ks[12], (256, num_classes), jnp.float32) * math.sqrt(1.0 / 256),
        jax.random.normal(ks[13], (num_classes,), jnp.float32) * 0.05,    # fc3 bias
    )

    forward = jax.jit(base_model_forward)
    out = forward(video_inputs, video_input_lengths, audio_inputs,
                  audio_input_lengths, targets, target_lengths, params)
    jax.block_until_ready(out)
    assert out.shape == (B, T_a, num_classes)

    # Tight check: reference with the same bf16 rounding of the conv operands
    # (isolates the deliberate bf16 approximation; validates the kernel math).
    ref_bf16 = _ref_forward(video_inputs, audio_inputs, params, conv_dtype=jnp.bfloat16)
    assert jnp.allclose(out, ref_bf16, atol=2e-3, rtol=2e-3), (
        f"max abs err vs bf16-conv ref = {float(jnp.max(jnp.abs(out - ref_bf16)))}")

    # Loose sanity check against the full-f32 reference (bounds the bf16 conv error).
    ref_f32 = _ref_forward(video_inputs, audio_inputs, params, conv_dtype=jnp.float32)
    assert jnp.allclose(out, ref_f32, atol=0.25, rtol=0.05), (
        f"max abs err vs f32 ref = {float(jnp.max(jnp.abs(out - ref_f32)))}")

    print("KERNEL_OK")
</pallas_src>

<mosaic_0001>
module attributes {stable_mosaic.version = 11 : i64} {
  func.func @kernel(%arg0: i32, %arg1: memref<1x320x768xbf16, #tpu.memory_space<vmem>>, %arg2: memref<2x12x128xf32, #tpu.memory_space<vmem>>, %arg3: memref<12x4xf32, #tpu.memory_space<vmem>>, %arg4: memref<768x128xbf16, #tpu.memory_space<vmem>>, %arg5: memref<1x128xf32, #tpu.memory_space<vmem>>, %arg6: memref<128x128xf32, #tpu.memory_space<vmem>>, %arg7: memref<1x128xf32, #tpu.memory_space<vmem>>, %arg8: memref<128x128xf32, #tpu.memory_space<vmem>>, %arg9: memref<1x128xf32, #tpu.memory_space<vmem>>, %arg10: memref<128x128xf32, #tpu.memory_space<vmem>>, %arg11: memref<128x128xf32, #tpu.memory_space<vmem>>, %arg12: memref<1x128xf32, #tpu.memory_space<vmem>>, %arg13: memref<2x12x128xf32, #tpu.memory_space<vmem>>) attributes {dimension_semantics = [#tpu.dimension_semantics<parallel>], iteration_bounds = array<i64: 2>, scalar_prefetch = 0 : i64, scratch_operands = 0 : i64, tpu.core_type = #tpu.core_type<tc>, window_params = [{transform_indices = @transform_0, window_bounds = array<i64: 1, 320, 768>}, {transform_indices = @transform_1, window_bounds = array<i64: 2, 12, 128>}, {pipeline_mode = #tpu.pipeline_mode<synchronous>, transform_indices = @transform_2, window_bounds = array<i64: 12, 4>}, {pipeline_mode = #tpu.pipeline_mode<synchronous>, transform_indices = @transform_3, window_bounds = array<i64: 768, 128>}, {pipeline_mode = #tpu.pipeline_mode<synchronous>, transform_indices = @transform_4, window_bounds = array<i64: 1, 128>}, {pipeline_mode = #tpu.pipeline_mode<synchronous>, transform_indices = @transform_5, window_bounds = array<i64: 128, 128>}, {pipeline_mode = #tpu.pipeline_mode<synchronous>, transform_indices = @transform_6, window_bounds = array<i64: 1, 128>}, {pipeline_mode = #tpu.pipeline_mode<synchronous>, transform_indices = @transform_7, window_bounds = array<i64: 128, 128>}, {pipeline_mode = #tpu.pipeline_mode<synchronous>, transform_indices = @transform_8, window_bounds = array<i64: 1, 128>}, {pipeline_mode = #tpu.pipeline_mode<synchronous>, transform_indices = @transform_9, window_bounds = array<i64: 128, 128>}, {pipeline_mode = #tpu.pipeline_mode<synchronous>, transform_indices = @transform_10, window_bounds = array<i64: 128, 128>}, {pipeline_mode = #tpu.pipeline_mode<synchronous>, transform_indices = @transform_11, window_bounds = array<i64: 1, 128>}, {transform_indices = @transform_12, window_bounds = array<i64: 2, 12, 128>}]} {
    %c0 = arith.constant 0 : index
    %c0_0 = arith.constant 0 : index
    %c0_1 = arith.constant 0 : index
    %0 = vector.load %arg1[%c0, %c0_0, %c0_1] : memref<1x320x768xbf16, #tpu.memory_space<vmem>>, vector<1x320x768xbf16>
    %1 = vector.shape_cast %0 : vector<1x320x768xbf16> to vector<320x768xbf16>
    %c0_2 = arith.constant 0 : index
    %c0_3 = arith.constant 0 : index
    %2 = vector.load %arg4[%c0_2, %c0_3] : memref<768x128xbf16, #tpu.memory_space<vmem>>, vector<768x128xbf16>
    %cst = arith.constant dense<0.000000e+00> : vector<320x128xf32>
    %3 = tpu.matmul %1, %2, %cst {dimension_numbers = #tpu.dot_dimension_numbers<[1], [0], [0], [1], [0, 0, 1, 1], [], []>} : vector<320x768xbf16>, vector<768x128xbf16>, vector<320x128xf32> -> vector<320x128xf32>
    %c0_4 = arith.constant 0 : index
    %c0_5 = arith.constant 0 : index
    %4 = vector.load %arg5[%c0_4, %c0_5] : memref<1x128xf32, #tpu.memory_space<vmem>>, vector<1x128xf32>
    %5 = vector.broadcast %4 : vector<1x128xf32> to vector<320x128xf32>
    %6 = arith.addf %3, %5 : vector<320x128xf32>
    %cst_6 = arith.constant 0.000000e+00 : f32
    %7 = vector.broadcast %cst_6 : f32 to vector<320x128xf32>
    %8 = arith.maximumf %6, %7 : vector<320x128xf32>
    %9 = vector.shape_cast %8 : vector<320x128xf32> to vector<8x5x8x128xf32>
    %10 = vector.extract_strided_slice %9 {offsets = [0, 0, 0, 0], sizes = [8, 3, 3, 128], strides = [1, 1, 1, 1]} : vector<8x5x8x128xf32> to vector<8x3x3x128xf32>
    %cst_7 = arith.constant dense<0xFF800000> : vector<8x3x128xf32>
    %11 = vector.multi_reduction <maximumf>, %10, %cst_7 [2] : vector<8x3x3x128xf32> to vector<8x3x128xf32>
    %cst_8 = arith.constant dense<0xFF800000> : vector<8x128xf32>
    %12 = vector.multi_reduction <maximumf>, %11, %cst_8 [1] : vector<8x3x128xf32> to vector<8x128xf32>
    %13 = vector.extract_strided_slice %9 {offsets = [0, 0, 2, 0], sizes = [8, 3, 3, 128], strides = [1, 1, 1, 1]} : vector<8x5x8x128xf32> to vector<8x3x3x128xf32>
    %cst_9 = arith.constant dense<0xFF800000> : vector<8x3x128xf32>
    %14 = vector.multi_reduction <maximumf>, %13, %cst_9 [2] : vector<8x3x3x128xf32> to vector<8x3x128xf32>
    %cst_10 = arith.constant dense<0xFF800000> : vector<8x128xf32>
    %15 = vector.multi_reduction <maximumf>, %14, %cst_10 [1] : vector<8x3x128xf32> to vector<8x128xf32>
    %16 = arith.addf %12, %15 : vector<8x128xf32>
    %17 = vector.extract_strided_slice %9 {offsets = [0, 2, 0, 0], sizes = [8, 3, 3, 128], strides = [1, 1, 1, 1]} : vector<8x5x8x128xf32> to vector<8x3x3x128xf32>
    %cst_11 = arith.constant dense<0xFF800000> : vector<8x3x128xf32>
    %18 = vector.multi_reduction <maximumf>, %17, %cst_11 [2] : vector<8x3x3x128xf32> to vector<8x3x128xf32>
    %cst_12 = arith.constant dense<0xFF800000> : vector<8x128xf32>
    %19 = vector.multi_reduction <maximumf>, %18, %cst_12 [1] : vector<8x3x128xf32> to vector<8x128xf32>
    %20 = arith.addf %16, %19 : vector<8x128xf32>
    %21 = vector.extract_strided_slice %9 {offsets = [0, 2, 2, 0], sizes = [8, 3, 3, 128], strides = [1, 1, 1, 1]} : vector<8x5x8x128xf32> to vector<8x3x3x128xf32>
    %cst_13 = arith.constant dense<0xFF800000> : vector<8x3x128xf32>
    %22 = vector.multi_reduction <maximumf>, %21, %cst_13 [2] : vector<8x3x3x128xf32> to vector<8x3x128xf32>
    %cst_14 = arith.constant dense<0xFF800000> : vector<8x128xf32>
    %23 = vector.multi_reduction <maximumf>, %22, %cst_14 [1] : vector<8x3x128xf32> to vector<8x128xf32>
    %24 = arith.addf %20, %23 : vector<8x128xf32>
    %cst_15 = arith.constant 2.500000e-01 : f32
    %25 = vector.broadcast %cst_15 : f32 to vector<8x128xf32>
    %26 = arith.mulf %24, %25 : vector<8x128xf32>
    %c0_16 = arith.constant 0 : index
    %c0_17 = arith.constant 0 : index
    %27 = vector.load %arg3[%c0_16, %c0_17] : memref<12x4xf32, #tpu.memory_space<vmem>>, vector<12x4xf32>
    %28 = vector.extract_strided_slice %26 {offsets = [0, 0], sizes = [4, 128], strides = [1, 1]} : vector<8x128xf32> to vector<4x128xf32>
    %c0_18 = arith.constant 0 : index
    %c0_19 = arith.constant 0 : index
    %29 = vector.load %arg6[%c0_18, %c0_19] : memref<128x128xf32, #tpu.memory_space<vmem>>, vector<128x128xf32>
    %cst_20 = arith.constant dense<0.000000e+00> : vector<4x128xf32>
    %30 = tpu.matmul %28, %29, %cst_20 {dimension_numbers = #tpu.dot_dimension_numbers<[1], [0], [0], [1], [0, 0, 1, 1], [], []>} : vector<4x128xf32>, vector<128x128xf32>, vector<4x128xf32> -> vector<4x128xf32>
    %c0_21 = arith.constant 0 : index
    %c0_22 = arith.constant 0 : index
    %31 = vector.load %arg7[%c0_21, %c0_22] : memref<1x128xf32, #tpu.memory_space<vmem>>, vector<1x128xf32>
    %32 = vector.broadcast %31 : vector<1x128xf32> to vector<4x128xf32>
    %33 = arith.addf %30, %32 : vector<4x128xf32>
    %cst_23 = arith.constant dense<0.000000e+00> : vector<12x128xf32>
    %34 = tpu.matmul %27, %33, %cst_23 {dimension_numbers = #tpu.dot_dimension_numbers<[1], [0], [0], [1], [0, 0, 1, 1], [], []>} : vector<12x4xf32>, vector<4x128xf32>, vector<12x128xf32> -> vector<12x128xf32>
    %c0_24 = arith.constant 0 : index
    %c0_25 = arith.constant 0 : index
    %c0_26 = arith.constant 0 : index
    %35 = vector.load %arg2[%c0_24, %c0_25, %c0_26] : memref<2x12x128xf32, #tpu.memory_space<vmem>>, vector<1x12x128xf32>
    %36 = vector.shape_cast %35 : vector<1x12x128xf32> to vector<12x128xf32>
    %c0_27 = arith.constant 0 : index
    %c0_28 = arith.constant 0 : index
    %37 = vector.load %arg8[%c0_27, %c0_28] : memref<128x128xf32, #tpu.memory_space<vmem>>, vector<128x128xf32>
    %cst_29 = arith.constant dense<0.000000e+00> : vector<12x128xf32>
    %38 = tpu.matmul %36, %37, %cst_29 {dimension_numbers = #tpu.dot_dimension_numbers<[1], [0], [0], [1], [0, 0, 1, 1], [], []>} : vector<12x128xf32>, vector<128x128xf32>, vector<12x128xf32> -> vector<12x128xf32>
    %c0_30 = arith.constant 0 : index
    %c0_31 = arith.constant 0 : index
    %39 = vector.load %arg9[%c0_30, %c0_31] : memref<1x128xf32, #tpu.memory_space<vmem>>, vector<1x128xf32>
    %40 = vector.broadcast %39 : vector<1x128xf32> to vector<12x128xf32>
    %41 = arith.addf %38, %40 : vector<12x128xf32>
    %c0_32 = arith.constant 0 : index
    %c0_33 = arith.constant 0 : index
    %42 = vector.load %arg10[%c0_32, %c0_33] : memref<128x128xf32, #tpu.memory_space<vmem>>, vector<128x128xf32>
    %cst_34 = arith.constant dense<0.000000e+00> : vector<12x128xf32>
    %43 = tpu.matmul %41, %42, %cst_34 {dimension_numbers = #tpu.dot_dimension_numbers<[1], [0], [0], [1], [0, 0, 1, 1], [], []>} : vector<12x128xf32>, vector<128x128xf32>, vector<12x128xf32> -> vector<12x128xf32>
    %c0_35 = arith.constant 0 : index
    %c0_36 = arith.constant 0 : index
    %44 = vector.load %arg11[%c0_35, %c0_36] : memref<128x128xf32, #tpu.memory_space<vmem>>, vector<128x128xf32>
    %cst_37 = arith.constant dense<0.000000e+00> : vector<12x128xf32>
    %45 = tpu.matmul %34, %44, %cst_37 {dimension_numbers = #tpu.dot_dimension_numbers<[1], [0], [0], [1], [0, 0, 1, 1], [], []>} : vector<12x128xf32>, vector<128x128xf32>, vector<12x128xf32> -> vector<12x128xf32>
    %46 = arith.addf %43, %45 : vector<12x128xf32>
    %c0_38 = arith.constant 0 : index
    %c0_39 = arith.constant 0 : index
    %47 = vector.load %arg12[%c0_38, %c0_39] : memref<1x128xf32, #tpu.memory_space<vmem>>, vector<1x128xf32>
    %48 = vector.broadcast %47 : vector<1x128xf32> to vector<12x128xf32>
    %49 = arith.addf %46, %48 : vector<12x128xf32>
    %cst_40 = arith.constant dense<0xFF800000> : vector<12xf32>
    %50 = vector.multi_reduction <maximumf>, %49, %cst_40 [1] : vector<12x128xf32> to vector<12xf32>
    %51 = vector.shape_cast %50 : vector<12xf32> to vector<12x1xf32>
    %52 = vector.broadcast %51 : vector<12x1xf32> to vector<12x128xf32>
    %53 = arith.subf %49, %52 : vector<12x128xf32>
    %54 = math.exp %53 : vector<12x128xf32>
    %cst_41 = arith.constant dense<0.000000e+00> : vector<12xf32>
    %55 = vector.multi_reduction <add>, %54, %cst_41 [1] : vector<12x128xf32> to vector<12xf32>
    %56 = vector.shape_cast %55 : vector<12xf32> to vector<12x1xf32>
    %57 = math.log %56 : vector<12x1xf32>
    %58 = vector.broadcast %57 : vector<12x1xf32> to vector<12x128xf32>
    %59 = arith.subf %53, %58 : vector<12x128xf32>
    %c0_42 = arith.constant 0 : index
    %c0_43 = arith.constant 0 : index
    %c0_44 = arith.constant 0 : index
    %60 = vector.load %arg13[%c0_42, %c0_43, %c0_44] : memref<2x12x128xf32, #tpu.memory_space<vmem>>, vector<1x12x128xf32>
    %61 = vector.shape_cast %60 : vector<1x12x128xf32> to vector<12x128xf32>
    %62 = vector.shape_cast %59 : vector<12x128xf32> to vector<1x12x128xf32>
    tpu.vector_store %arg13[%c0_42, %c0_43, %c0_44], %62 {strides = array<i32>} : memref<2x12x128xf32, #tpu.memory_space<vmem>>, vector<1x12x128xf32>,
    %63 = vector.extract_strided_slice %26 {offsets = [4, 0], sizes = [4, 128], strides = [1, 1]} : vector<8x128xf32> to vector<4x128xf32>
    %c0_45 = arith.constant 0 : index
    %c0_46 = arith.constant 0 : index
    %64 = vector.load %arg6[%c0_45, %c0_46] : memref<128x128xf32, #tpu.memory_space<vmem>>, vector<128x128xf32>
    %cst_47 = arith.constant dense<0.000000e+00> : vector<4x128xf32>
    %65 = tpu.matmul %63, %64, %cst_47 {dimension_numbers = #tpu.dot_dimension_numbers<[1], [0], [0], [1], [0, 0, 1, 1], [], []>} : vector<4x128xf32>, vector<128x128xf32>, vector<4x128xf32> -> vector<4x128xf32>
    %c0_48 = arith.constant 0 : index
    %c0_49 = arith.constant 0 : index
    %66 = vector.load %arg7[%c0_48, %c0_49] : memref<1x128xf32, #tpu.memory_space<vmem>>, vector<1x128xf32>
    %67 = vector.broadcast %66 : vector<1x128xf32> to vector<4x128xf32>
    %68 = arith.addf %65, %67 : vector<4x128xf32>
    %cst_50 = arith.constant dense<0.000000e+00> : vector<12x128xf32>
    %69 = tpu.matmul %27, %68, %cst_50 {dimension_numbers = #tpu.dot_dimension_numbers<[1], [0], [0], [1], [0, 0, 1, 1], [], []>} : vector<12x4xf32>, vector<4x128xf32>, vector<12x128xf32> -> vector<12x128xf32>
    %c1 = arith.constant 1 : index
    %c0_51 = arith.constant 0 : index
    %c0_52 = arith.constant 0 : index
    %70 = vector.load %arg2[%c1, %c0_51, %c0_52] : memref<2x12x128xf32, #tpu.memory_space<vmem>>, vector<1x12x128xf32>
    %71 = vector.shape_cast %70 : vector<1x12x128xf32> to vector<12x128xf32>
    %c0_53 = arith.constant 0 : index
    %c0_54 = arith.constant 0 : index
    %72 = vector.load %arg8[%c0_53, %c0_54] : memref<128x128xf32, #tpu.memory_space<vmem>>, vector<128x128xf32>
    %cst_55 = arith.constant dense<0.000000e+00> : vector<12x128xf32>
    %73 = tpu.matmul %71, %72, %cst_55 {dimension_numbers = #tpu.dot_dimension_numbers<[1], [0], [0], [1], [0, 0, 1, 1], [], []>} : vector<12x128xf32>, vector<128x128xf32>, vector<12x128xf32> -> vector<12x128xf32>
    %c0_56 = arith.constant 0 : index
    %c0_57 = arith.constant 0 : index
    %74 = vector.load %arg9[%c0_56, %c0_57] : memref<1x128xf32, #tpu.memory_space<vmem>>, vector<1x128xf32>
    %75 = vector.broadcast %74 : vector<1x128xf32> to vector<12x128xf32>
    %76 = arith.addf %73, %75 : vector<12x128xf32>
    %c0_58 = arith.constant 0 : index
    %c0_59 = arith.constant 0 : index
    %77 = vector.load %arg10[%c0_58, %c0_59] : memref<128x128xf32, #tpu.memory_space<vmem>>, vector<128x128xf32>
    %cst_60 = arith.constant dense<0.000000e+00> : vector<12x128xf32>
    %78 = tpu.matmul %76, %77, %cst_60 {dimension_numbers = #tpu.dot_dimension_numbers<[1], [0], [0], [1], [0, 0, 1, 1], [], []>} : vector<12x128xf32>, vector<128x128xf32>, vector<12x128xf32> -> vector<12x128xf32>
    %c0_61 = arith.constant 0 : index
    %c0_62 = arith.constant 0 : index
    %79 = vector.load %arg11[%c0_61, %c0_62] : memref<128x128xf32, #tpu.memory_space<vmem>>, vector<128x128xf32>
    %cst_63 = arith.constant dense<0.000000e+00> : vector<12x128xf32>
    %80 = tpu.matmul %69, %79, %cst_63 {dimension_numbers = #tpu.dot_dimension_numbers<[1], [0], [0], [1], [0, 0, 1, 1], [], []>} : vector<12x128xf32>, vector<128x128xf32>, vector<12x128xf32> -> vector<12x128xf32>
    %81 = arith.addf %78, %80 : vector<12x128xf32>
    %c0_64 = arith.constant 0 : index
    %c0_65 = arith.constant 0 : index
    %82 = vector.load %arg12[%c0_64, %c0_65] : memref<1x128xf32, #tpu.memory_space<vmem>>, vector<1x128xf32>
    %83 = vector.broadcast %82 : vector<1x128xf32> to vector<12x128xf32>
    %84 = arith.addf %81, %83 : vector<12x128xf32>
    %cst_66 = arith.constant dense<0xFF800000> : vector<12xf32>
    %85 = vector.multi_reduction <maximumf>, %84, %cst_66 [1] : vector<12x128xf32> to vector<12xf32>
    %86 = vector.shape_cast %85 : vector<12xf32> to vector<12x1xf32>
    %87 = vector.broadcast %86 : vector<12x1xf32> to vector<12x128xf32>
    %88 = arith.subf %84, %87 : vector<12x128xf32>
    %89 = math.exp %88 : vector<12x128xf32>
    %cst_67 = arith.constant dense<0.000000e+00> : vector<12xf32>
    %90 = vector.multi_reduction <add>, %89, %cst_67 [1] : vector<12x128xf32> to vector<12xf32>
    %91 = vector.shape_cast %90 : vector<12xf32> to vector<12x1xf32>
    %92 = math.log %91 : vector<12x1xf32>
    %93 = vector.broadcast %92 : vector<12x1xf32> to vector<12x128xf32>
    %94 = arith.subf %88, %93 : vector<12x128xf32>
    %c1_68 = arith.constant 1 : index
    %c0_69 = arith.constant 0 : index
    %c0_70 = arith.constant 0 : index
    %95 = vector.load %arg13[%c1_68, %c0_69, %c0_70] : memref<2x12x128xf32, #tpu.memory_space<vmem>>, vector<1x12x128xf32>
    %96 = vector.shape_cast %95 : vector<1x12x128xf32> to vector<12x128xf32>
    %97 = vector.shape_cast %94 : vector<12x128xf32> to vector<1x12x128xf32>
    tpu.vector_store %arg13[%c1_68, %c0_69, %c0_70], %97 {strides = array<i32>} : memref<2x12x128xf32, #tpu.memory_space<vmem>>, vector<1x12x128xf32>,
    return
  }
  func.func @transform_0(%arg0: i32) -> (i32, i32, i32) {
    %c0_i32 = arith.constant 0 : i32
    %c0_i32_0 = arith.constant 0 : i32
    %c0_i32_1 = arith.constant 0 : i32
    return %arg0, %c0_i32, %c0_i32_0 : i32, i32, i32
  }
  func.func @transform_1(%arg0: i32) -> (i32, i32, i32) {
    %c0_i32 = arith.constant 0 : i32
    %c0_i32_0 = arith.constant 0 : i32
    %c0_i32_1 = arith.constant 0 : i32
    return %arg0, %c0_i32, %c0_i32_0 : i32, i32, i32
  }
  func.func @transform_2(%arg0: i32) -> (i32, i32) {
    %c0_i32 = arith.constant 0 : i32
    %c0_i32_0 = arith.constant 0 : i32
    %c0_i32_1 = arith.constant 0 : i32
    return %c0_i32, %c0_i32_0 : i32, i32
  }
  func.func @transform_3(%arg0: i32) -> (i32, i32) {
    %c0_i32 = arith.constant 0 : i32
    %c0_i32_0 = arith.constant 0 : i32
    %c0_i32_1 = arith.constant 0 : i32
    return %c0_i32, %c0_i32_0 : i32, i32
  }
  func.func @transform_4(%arg0: i32) -> (i32, i32) {
    %c0_i32 = arith.constant 0 : i32
    %c0_i32_0 = arith.constant 0 : i32
    %c0_i32_1 = arith.constant 0 : i32
    return %c0_i32, %c0_i32_0 : i32, i32
  }
  func.func @transform_5(%arg0: i32) -> (i32, i32) {
    %c0_i32 = arith.constant 0 : i32
    %c0_i32_0 = arith.constant 0 : i32
    %c0_i32_1 = arith.constant 0 : i32
    return %c0_i32, %c0_i32_0 : i32, i32
  }
  func.func @transform_6(%arg0: i32) -> (i32, i32) {
    %c0_i32 = arith.constant 0 : i32
    %c0_i32_0 = arith.constant 0 : i32
    %c0_i32_1 = arith.constant 0 : i32
    return %c0_i32, %c0_i32_0 : i32, i32
  }
  func.func @transform_7(%arg0: i32) -> (i32, i32) {
    %c0_i32 = arith.constant 0 : i32
    %c0_i32_0 = arith.constant 0 : i32
    %c0_i32_1 = arith.constant 0 : i32
    return %c0_i32, %c0_i32_0 : i32, i32
  }
  func.func @transform_8(%arg0: i32) -> (i32, i32) {
    %c0_i32 = arith.constant 0 : i32
    %c0_i32_0 = arith.constant 0 : i32
    %c0_i32_1 = arith.constant 0 : i32
    return %c0_i32, %c0_i32_0 : i32, i32
  }
  func.func @transform_9(%arg0: i32) -> (i32, i32) {
    %c0_i32 = arith.constant 0 : i32
    %c0_i32_0 = arith.constant 0 : i32
    %c0_i32_1 = arith.constant 0 : i32
    return %c0_i32, %c0_i32_0 : i32, i32
  }
  func.func @transform_10(%arg0: i32) -> (i32, i32) {
    %c0_i32 = arith.constant 0 : i32
    %c0_i32_0 = arith.constant 0 : i32
    %c0_i32_1 = arith.constant 0 : i32
    return %c0_i32, %c0_i32_0 : i32, i32
  }
  func.func @transform_11(%arg0: i32) -> (i32, i32) {
    %c0_i32 = arith.constant 0 : i32
    %c0_i32_0 = arith.constant 0 : i32
    %c0_i32_1 = arith.constant 0 : i32
    return %c0_i32, %c0_i32_0 : i32, i32
  }
  func.func @transform_12(%arg0: i32) -> (i32, i32, i32) {
    %c0_i32 = arith.constant 0 : i32
    %c0_i32_0 = arith.constant 0 : i32
    %c0_i32_1 = arith.constant 0 : i32
    return %arg0, %c0_i32, %c0_i32_0 : i32, i32, i32
  }
}

</mosaic_0001>

<bundles_post_ra>
// kernel: base_model_forward.1
= control target key start
LH: loop header
LB: loop body
LE: loop exit
PB: predicated region body
PF: predicated region fallthrough
CT: control target
= control target key end

     0   :  { %s4432_s21 = smov 0   ;;  %s5826_s0 = inlined_call_operand.vmem [shape: bf16[2,320,768], index: 0, kind: input, shape index: {}]   ;;  %s5827_s1 = inlined_call_operand.vmem [shape: f32[4,12,128], index: 1, kind: input, shape index: {}]   ;;  %s5828_s2 = inlined_call_operand.vmem [shape: f32[12,4], index: 2, kind: input, shape index: {}]   ;;  %s5829_s3 = inlined_call_operand.vmem [shape: bf16[768,128], index: 3, kind: input, shape index: {}]   ;;  %s5830_s4 = inlined_call_operand.vmem [shape: f32[1,128], index: 4, kind: input, shape index: {}]   ;;  %s5831_s5 = inlined_call_operand.vmem [shape: f32[128,128], index: 5, kind: input, shape index: {}]   ;;  %s5832_s6 = inlined_call_operand.vmem [shape: f32[1,128], index: 6, kind: input, shape index: {}]   ;;  %s5833_s7 = inlined_call_operand.vmem [shape: f32[128,128], index: 7, kind: input, shape index: {}]   ;;  %s5834_s8 = inlined_call_operand.vmem [shape: f32[1,128], index: 8, kind: input, shape index: {}]   ;;  %s5835_s9 = inlined_call_operand.vmem [shape: f32[128,128], index: 9, kind: input, shape index: {}]   ;;  %s5836_s10 = inlined_call_operand.vmem [shape: f32[128,128], index: 10, kind: input, shape index: {}]   ;;  %s5837_s11 = inlined_call_operand.vmem [shape: f32[1,128], index: 11, kind: input, shape index: {}]   ;;  %s5838_s12 = inlined_call_operand.vmem [shape: f32[4,12,128], index: 12, kind: output, shape index: {}]  }
   0x1 LB: > { %s4438_s22 = sadd.s32 4294967295, %s4365_s21   ;;  %p3445_p0 = scmp.ge.s32.totalorder %s4365_s21, 1  ;;  %s4365_s21 = sphi %s4432_s21, %s22_s21  }
   0x2   : > { %p374_p1 = scmp.lt.s32.totalorder %s4365_s21, 3 }
   0x4   : > { %p375_p2 = pnand %p3445_p0, %p374_p1 }
   0x6   : > { %378 = sbr.rel (%p375_p2) target bundleno = 1547 (0x60b), region = 68 }
   0xb   : > { %v4266_v0 = vld [vmem:[%s5829_s3 + $0x38] sm:$0xff]  ;;  %v4265_v2 = vld [vmem:[%s5829_s3 + $0x30] sm:$0xff]  ;;  %v4264_v4 = vld [vmem:[%s5829_s3 + $0x28] sm:$0xff]  ;;  %p423_p3 = scmp.lt.s32.totalorder %s4438_s22, 1  ;;  %vm2244_vm0 = vcmask 1042432   ;;  %vm2429_vm1 = vcmask 1044482  }
   0xc   : > { %v4274_v1 = vld [vmem:[%s5829_s3 + $0x78] sm:$0xff]  ;;  %1550 = vmatpush.bf16.msra.mxu0 %v4266_v0  ;;  %v4273_v3 = vld [vmem:[%s5829_s3 + $0x70] sm:$0xff]  ;;  %4307 = vmatpush.bf16.msra.mxu3 %v4266_v0  ;;  %v4272_v5 = vld [vmem:[%s5829_s3 + $0x68] sm:$0xff]  ;;  %vm2928_vm2 = vcmask 1041409   ;;  %vm2930_vm3 = vcmask 1042434   ;;  %vm2932_vm4 = vcmask 1043459  }
   0xd   : > { %1659 = vmatpush.bf16.msra.mxu1 %v4274_v1  ;;  %4315 = vmatpush.bf16.msra.mxu2 %v4274_v1  ;;  %v4263_v6 = vld [vmem:[%s5829_s3 + $0x20] sm:$0xff]  ;;  %v4262_v8 = vld [vmem:[%s5829_s3 + $0x18] sm:$0xff]  ;;  %s424_s27 = scalar_select %p423_p3, %s4438_s22, 1  ;;  %v4261_v10 = vld [vmem:[%s5829_s3 + $0x10] sm:$0xff]  ;;  %vm2962_vm5 = vcmask 1043456   ;;  %vm2955_vm6 = vcmask 31744  }
   0xe   : > { %v4271_v7 = vld [vmem:[%s5829_s3 + $0x60] sm:$0xff]  ;;  %v4270_v9 = vld [vmem:[%s5829_s3 + $0x58] sm:$0xff]  ;;  %v4269_v11 = vld [vmem:[%s5829_s3 + $0x50] sm:$0xff] }
   0xf   : > { %s4323_s14 = smul.u32 960, %s424_s27  ;;  %v4260_v12 = vld [vmem:[%s5829_s3 + $0x8] sm:$0xff]  ;;  %v4259_v14 = vld [vmem:[%s5829_s3] sm:$0xff]  ;;  %v4282_v40 = vld [vmem:[%s5829_s3 + $0xb8] sm:$0xff] }
  0x10   : > { %1551 = vmatpush.bf16.msra.mxu0 %v4265_v2  ;;  %4308 = vmatpush.bf16.msra.mxu3 %v4265_v2  ;;  %v4268_v13 = vld [vmem:[%s5829_s3 + $0x48] sm:$0xff]  ;;  %v4267_v15 = vld [vmem:[%s5829_s3 + $0x40] sm:$0xff]  ;;  %v4290_v41 = vld [vmem:[%s5829_s3 + $0xf8] sm:$0xff] }
  0x11   : > { %1660 = vmatpush.bf16.msra.mxu1 %v4273_v3  ;;  %4316 = vmatpush.bf16.msra.mxu2 %v4273_v3  ;;  %s4489_s23 = scalar_lea.vmem %s5826_s0, %s4323_s14  ;;  %v4281_v42 = vld [vmem:[%s5829_s3 + $0xb0] sm:$0xff]  ;;  %v4280_v44 = vld [vmem:[%s5829_s3 + $0xa8] sm:$0xff]  ;;  %v4279_v54 = vld [vmem:[%s5829_s3 + $0xa0] sm:$0xff] }
  0x12   : > { %v3455_v16 = vld [vmem:[%s4489_s23] sm:$0xf]  ;;  %v4142_v17 = vld [vmem:[%s4489_s23 + $0x14] sm:$0xf0]  ;;  %v4139_v18 = vld [vmem:[%s4489_s23 + $0x4] sm:$0xf] }
  0x13   : > { %v3457_v19 = vld [vmem:[%s4489_s23 + $0x18] sm:$0xf0]  ;;  %v4229_v20 = vld [vmem:[%s4489_s23 + $0x2d4] sm:$0xf]  ;;  %v3817_v21 = vld [vmem:[%s4489_s23 + $0x2e8] sm:$0xf0]  ;;  %v3456_v24 = vor.u32 %v4142_v17, %v3455_v16 }
  0x14   : > { %1552 = vmatpush.bf16.msra.mxu0 %v4264_v4  ;;  %4309 = vmatpush.bf16.msra.mxu3 %v4264_v4  ;;  %v3815_v22 = vld [vmem:[%s4489_s23 + $0x2d0] sm:$0xf]  ;;  %v4232_v23 = vld [vmem:[%s4489_s23 + $0x2e4] sm:$0xf0]  ;;  %v3460_v25 = vor.u32 %v4139_v18, %v3457_v19  ;;  %v3820_v26 = vor.u32 %v4229_v20, %v3817_v21  ;;  %v4145_v30 = vld [vmem:[%s4489_s23 + $0x34] sm:$0xf] }
  0x15   : > { %1661 = vmatpush.bf16.msra.mxu1 %v4272_v5  ;;  %4317 = vmatpush.bf16.msra.mxu2 %v4272_v5  ;;  %v3816_v27 = vor.u32 %v4232_v23, %v3815_v22  ;;  %v3479_v28 = vld [vmem:[%s4489_s23 + $0x30] sm:$0xf]  ;;  %v4148_v29 = vld [vmem:[%s4489_s23 + $0x44] sm:$0xf0]  ;;  %v3481_v31 = vld [vmem:[%s4489_s23 + $0x48] sm:$0xf0] }
  0x16   : > { %v4235_v32 = vld [vmem:[%s4489_s23 + $0x304] sm:$0xf]  ;;  %v3841_v33 = vld [vmem:[%s4489_s23 + $0x318] sm:$0xf0]  ;;  %v3839_v34 = vld [vmem:[%s4489_s23 + $0x300] sm:$0xf]  ;;  %v3480_v36 = vor.u32 %v4148_v29, %v3479_v28  ;;  %v3484_v37 = vor.u32 %v4145_v30, %v3481_v31 }
  0x17   : > { %v4238_v35 = vld [vmem:[%s4489_s23 + $0x314] sm:$0xf0]  ;;  %v3844_v38 = vor.u32 %v4235_v32, %v3841_v33  ;;  %v4289_v43 = vld [vmem:[%s5829_s3 + $0xf0] sm:$0xff]  ;;  %v4288_v45 = vld [vmem:[%s5829_s3 + $0xe8] sm:$0xff] }
  0x18   : > { %1553 = vmatpush.bf16.msra.mxu0 %v4263_v6  ;;  %4310 = vmatpush.bf16.msra.mxu3 %v4263_v6  ;;  %v3840_v39 = vor.u32 %v4238_v35, %v3839_v34  ;;  %v3503_v46 = vld [vmem:[%s4489_s23 + $0x60] sm:$0xf]  ;;  %v4154_v47 = vld [vmem:[%s4489_s23 + $0x74] sm:$0xf0]  ;;  %v4151_v48 = vld [vmem:[%s4489_s23 + $0x64] sm:$0xf] }
  0x19   : > { %1662 = vmatpush.bf16.msra.mxu1 %v4271_v7  ;;  %4318 = vmatpush.bf16.msra.mxu2 %v4271_v7  ;;  %v3505_v49 = vld [vmem:[%s4489_s23 + $0x78] sm:$0xf0]  ;;  %v4241_v50 = vld [vmem:[%s4489_s23 + $0x334] sm:$0xf]  ;;  %v3865_v51 = vld [vmem:[%s4489_s23 + $0x348] sm:$0xf0]  ;;  %v3504_v56 = vor.u32 %v4154_v47, %v3503_v46 }
  0x1a   : > { %v3863_v52 = vld [vmem:[%s4489_s23 + $0x330] sm:$0xf]  ;;  %v4244_v53 = vld [vmem:[%s4489_s23 + $0x344] sm:$0xf0]  ;;  %v4287_v55 = vld [vmem:[%s5829_s3 + $0xe0] sm:$0xff]  ;;  %v3508_v57 = vor.u32 %v4151_v48, %v3505_v49  ;;  %v3868_v58 = vor.u32 %v4241_v50, %v3865_v51 }
  0x1b   : > { %v3864_v59 = vor.u32 %v4244_v53, %v3863_v52  ;;  %v4278_v60 = vld [vmem:[%s5829_s3 + $0x98] sm:$0xff]  ;;  %v4277_v62 = vld [vmem:[%s5829_s3 + $0x90] sm:$0xff]  ;;  %v4276_v0 = vld [vmem:[%s5829_s3 + $0x88] sm:$0xff] }
  0x1c   : > { %1554 = vmatpush.bf16.msra.mxu0 %v4262_v8  ;;  %4311 = vmatpush.bf16.msra.mxu3 %v4262_v8  ;;  %v4286_v61 = vld [vmem:[%s5829_s3 + $0xd8] sm:$0xff]  ;;  %v4285_v63 = vld [vmem:[%s5829_s3 + $0xd0] sm:$0xff]  ;;  %v4284_v1 = vld [vmem:[%s5829_s3 + $0xc8] sm:$0xff] }
  0x1d   : > { %1663 = vmatpush.bf16.msra.mxu1 %v4270_v9  ;;  %4319 = vmatpush.bf16.msra.mxu2 %v4270_v9  ;;  %v3527_v2 = vld [vmem:[%s4489_s23 + $0x90] sm:$0xf]  ;;  %v4160_v3 = vld [vmem:[%s4489_s23 + $0xa4] sm:$0xf0]  ;;  %v4157_v4 = vld [vmem:[%s4489_s23 + $0x94] sm:$0xf] }
  0x1e   : > { %v3529_v5 = vld [vmem:[%s4489_s23 + $0xa8] sm:$0xf0]  ;;  %v4247_v6 = vld [vmem:[%s4489_s23 + $0x364] sm:$0xf]  ;;  %v3889_v7 = vld [vmem:[%s4489_s23 + $0x378] sm:$0xf0] }
  0x1f   : > { %v3887_v8 = vld [vmem:[%s4489_s23 + $0x360] sm:$0xf]  ;;  %v4250_v9 = vld [vmem:[%s4489_s23 + $0x374] sm:$0xf0]  ;;  %v4163_v18 = vld [vmem:[%s4489_s23 + $0xc4] sm:$0xf] }
  0x20   : > { %1555 = vmatpush.bf16.msra.mxu0 %v4261_v10  ;;  %4312 = vmatpush.bf16.msra.mxu3 %v4261_v10  ;;  %v4275_v10 = vld [vmem:[%s5829_s3 + $0x80] sm:$0xff]  ;;  %v4166_v17 = vld [vmem:[%s4489_s23 + $0xd4] sm:$0xf0]  ;;  %v3553_v19 = vld [vmem:[%s4489_s23 + $0xd8] sm:$0xf0] }
  0x21   : > { %1664 = vmatpush.bf16.msra.mxu1 %v4269_v11  ;;  %4320 = vmatpush.bf16.msra.mxu2 %v4269_v11  ;;  %v4283_v11 = vld [vmem:[%s5829_s3 + $0xc0] sm:$0xff]  ;;  %v4253_v20 = vld [vmem:[%s4489_s23 + $0x394] sm:$0xf]  ;;  %v3913_v21 = vld [vmem:[%s4489_s23 + $0x3a8] sm:$0xf0] }
  0x22   : > { %v3551_v16 = vld [vmem:[%s4489_s23 + $0xc0] sm:$0xf]  ;;  %v3911_v22 = vld [vmem:[%s4489_s23 + $0x390] sm:$0xf]  ;;  %v4256_v23 = vld [vmem:[%s4489_s23 + $0x3a4] sm:$0xf0] }
  0x23   : > { %v3575_v28 = vld [vmem:[%s4489_s23 + $0xf0] sm:$0xf]  ;;  %v4172_v29 = vld [vmem:[%s4489_s23 + $0x104] sm:$0xf0]  ;;  %v4169_v30 = vld [vmem:[%s4489_s23 + $0xf4] sm:$0xf] }
  0x24   : > { %1556 = vmatpush.bf16.msra.mxu0 %v4260_v12  ;;  %4313 = vmatpush.bf16.msra.mxu3 %v4260_v12  ;;  %v3528_v12 = vor.u32 %v4160_v3, %v3527_v2  ;;  %v3577_v31 = vld [vmem:[%s4489_s23 + $0x108] sm:$0xf0]  ;;  %v3463_v32 = vld [vmem:[%s4489_s23 + $0x8] sm:$0xf]  ;;  %v4143_v33 = vld [vmem:[%s4489_s23 + $0x1c] sm:$0xf0] }
  0x25   : > { %1665 = vmatpush.bf16.msra.mxu1 %v4268_v13  ;;  %4321 = vmatpush.bf16.msra.mxu2 %v4268_v13  ;;  %v3532_v13 = vor.u32 %v4157_v4, %v3529_v5  ;;  %v4140_v34 = vld [vmem:[%s4489_s23 + $0xc] sm:$0xf]  ;;  %v3465_v35 = vld [vmem:[%s4489_s23 + $0x20] sm:$0xf0]  ;;  %v4146_v46 = vld [vmem:[%s4489_s23 + $0x3c] sm:$0xf] }
  0x26   : > { %v3489_v47 = vld [vmem:[%s4489_s23 + $0x50] sm:$0xf0]  ;;  %v3623_v52 = vld [vmem:[%s4489_s23 + $0x150] sm:$0xf]  ;;  %v4184_v53 = vld [vmem:[%s4489_s23 + $0x164] sm:$0xf0] }
  0x27   : > { %v3492_v51 = vor.u32 %v4146_v46, %v3489_v47  ;;  %v4190_v2 = vld [vmem:[%s4489_s23 + $0x194] sm:$0xf0]  ;;  %v4187_v3 = vld [vmem:[%s4489_s23 + $0x184] sm:$0xf]  ;;  %v3649_v4 = vld [vmem:[%s4489_s23 + $0x198] sm:$0xf0] }
  0x28   : > { %1557 = vmatpush.bf16.msra.mxu0 %v4259_v14  ;;  %4314 = vmatpush.bf16.msra.mxu3 %v4259_v14  ;;  %v3892_v14 = vor.u32 %v4247_v6, %v3889_v7  ;;  %v3535_v5 = vld [vmem:[%s4489_s23 + $0x98] sm:$0xf]  ;;  %v4161_v6 = vld [vmem:[%s4489_s23 + $0xac] sm:$0xf0]  ;;  %v4158_v7 = vld [vmem:[%s4489_s23 + $0x9c] sm:$0xf] }
  0x29   : > { %1666 = vmatpush.bf16.msra.mxu1 %v4267_v15  ;;  %4322 = vmatpush.bf16.msra.mxu2 %v4267_v15  ;;  %v3888_v15 = vor.u32 %v4250_v9, %v3887_v8  ;;  %v3537_v8 = vld [vmem:[%s4489_s23 + $0xb0] sm:$0xf0]  ;;  %v3695_v47 = vld [vmem:[%s4489_s23 + $0x1e0] sm:$0xf] }
  0x2b   : > { %1558 = vmatmul.bf16.vlgmr.msra.gmra.mxu0 %v3456_v24  ;;  %1633 = vmatmul.bf16.vlgmr.msra.gmra.mxu3 %v3816_v27  ;;  %v3552_v24 = vor.u32 %v4166_v17, %v3551_v16  ;;  %v3912_v27 = vor.u32 %v4256_v23, %v3911_v22  ;;  %v3671_v23 = vld [vmem:[%s4489_s23 + $0x1b0] sm:$0xf] }
  0x2c   : > { %1667 = vmatmul.bf16.vlgmr.msra.gmra.mxu1 %v3460_v25  ;;  %1742 = vmatmul.bf16.vlgmr.msra.gmra.mxu2 %v3820_v26  ;;  %v3556_v25 = vor.u32 %v4163_v18, %v3553_v19  ;;  %v3916_v26 = vor.u32 %v4253_v20, %v3913_v21 }
  0x2d   : > { %1768 = vmatpush.bf16.msrb.mxu2 %v4282_v40  ;;  %1877 = vmatpush.bf16.msrb.mxu3 %v4290_v41  ;;  %v3599_v40 = vld [vmem:[%s4489_s23 + $0x120] sm:$0xf]  ;;  %v4178_v41 = vld [vmem:[%s4489_s23 + $0x134] sm:$0xf0] }
  0x2e   : > { %v3600_v48 = vor.u32 %v4178_v41, %v3599_v40 }
  0x31   : > { %1769 = vmatpush.bf16.msrb.mxu2 %v4281_v42  ;;  %1878 = vmatpush.bf16.msrb.mxu3 %v4289_v43  ;;  %v4175_v42 = vld [vmem:[%s4489_s23 + $0x124] sm:$0xf]  ;;  %v3601_v43 = vld [vmem:[%s4489_s23 + $0x138] sm:$0xf0] }
  0x32   : > { %v3604_v49 = vor.u32 %v4175_v42, %v3601_v43 }
  0x35   : > { %1770 = vmatpush.bf16.msrb.mxu2 %v4280_v44  ;;  %1879 = vmatpush.bf16.msrb.mxu3 %v4288_v45  ;;  %v3487_v44 = vld [vmem:[%s4489_s23 + $0x38] sm:$0xf]  ;;  %v4149_v45 = vld [vmem:[%s4489_s23 + $0x4c] sm:$0xf0] }
  0x36   : > { %v3488_v50 = vor.u32 %v4149_v45, %v3487_v44 }
  0x39   : > { %1771 = vmatpush.bf16.msrb.mxu2 %v4279_v54  ;;  %1880 = vmatpush.bf16.msrb.mxu3 %v4287_v55  ;;  %v4181_v54 = vld [vmem:[%s4489_s23 + $0x154] sm:$0xf]  ;;  %v3625_v55 = vld [vmem:[%s4489_s23 + $0x168] sm:$0xf0] }
  0x3b   : > { %1563 = vmatmul.bf16.gmra.mxu0 %v3480_v36  ;;  %1638 = vmatmul.bf16.gmra.mxu3 %v3840_v39  ;;  %v3576_v36 = vor.u32 %v4172_v29, %v3575_v28  ;;  %v3468_v39 = vor.u32 %v4140_v34, %v3465_v35  ;;  %v4167_v28 = vld [vmem:[%s4489_s23 + $0xdc] sm:$0xf0]  ;;  %v4164_v29 = vld [vmem:[%s4489_s23 + $0xcc] sm:$0xf] }
  0x3c   : > { %1672 = vmatmul.bf16.gmra.mxu1 %v3484_v37  ;;  %1747 = vmatmul.bf16.gmra.mxu2 %v3844_v38  ;;  %v3580_v37 = vor.u32 %v4169_v30, %v3577_v31  ;;  %v3464_v38 = vor.u32 %v4143_v33, %v3463_v32  ;;  %v3561_v30 = vld [vmem:[%s4489_s23 + $0xe0] sm:$0xf0] }
  0x3d   : > { %1772 = vmatpush.bf16.msrb.mxu2 %v4278_v60  ;;  %1881 = vmatpush.bf16.msrb.mxu3 %v4286_v61  ;;  %v3624_v60 = vor.u32 %v4184_v53, %v3623_v52  ;;  %v3628_v61 = vor.u32 %v4181_v54, %v3625_v55  ;;  %v4173_v52 = vld [vmem:[%s4489_s23 + $0x10c] sm:$0xf0]  ;;  %v4170_v53 = vld [vmem:[%s4489_s23 + $0xfc] sm:$0xf]  ;;  %v3585_v54 = vld [vmem:[%s4489_s23 + $0x110] sm:$0xf0] }
  0x41   : > { %1773 = vmatpush.bf16.msrb.mxu2 %v4277_v62  ;;  %1882 = vmatpush.bf16.msrb.mxu3 %v4285_v63 }
  0x45   : > { %1774 = vmatpush.bf16.msrb.mxu2 %v4276_v0  ;;  %1883 = vmatpush.bf16.msrb.mxu3 %v4284_v1  ;;  %v4612_v0 = vld [vmem:[%s5830_s4] ss:$0 sm:$0xff] }
  0x46   : > { %v3647_v1 = vld [vmem:[%s4489_s23 + $0x180] sm:$0xf] }
  0x47   : > { %v3648_v9 = vor.u32 %v4190_v2, %v3647_v1 }
  0x49   : > { %1775 = vmatpush.bf16.msrb.mxu2 %v4275_v10  ;;  %1884 = vmatpush.bf16.msrb.mxu3 %v4283_v11  ;;  %v3652_v10 = vor.u32 %v4187_v3, %v3649_v4 }
  0x4b   : > { %1568 = vmatmul.bf16.gmra.mxu0 %v3504_v56  ;;  %1643 = vmatmul.bf16.gmra.mxu3 %v3864_v59  ;;  %v3511_v56 = vld [vmem:[%s4489_s23 + $0x68] sm:$0xf]  ;;  %v3513_v59 = vld [vmem:[%s4489_s23 + $0x80] sm:$0xf0] }
  0x4c   : > { %1677 = vmatmul.bf16.gmra.mxu1 %v3508_v57  ;;  %1752 = vmatmul.bf16.gmra.mxu2 %v3868_v58  ;;  %v4155_v57 = vld [vmem:[%s4489_s23 + $0x7c] sm:$0xf0]  ;;  %v4152_v58 = vld [vmem:[%s4489_s23 + $0x6c] sm:$0xf] }
  0x4d   : > { %v3512_v62 = vor.u32 %v4155_v57, %v3511_v56  ;;  %v3516_v63 = vor.u32 %v4152_v58, %v3513_v59 }
  0x5b   : > { %1573 = vmatmul.bf16.gmra.mxu0 %v3528_v12  ;;  %1648 = vmatmul.bf16.gmra.mxu3 %v3888_v15 }
  0x5c   : > { %1682 = vmatmul.bf16.gmra.mxu1 %v3532_v13  ;;  %1757 = vmatmul.bf16.gmra.mxu2 %v3892_v14  ;;  %v3536_v13 = vor.u32 %v4161_v6, %v3535_v5  ;;  %v3540_v14 = vor.u32 %v4158_v7, %v3537_v8  ;;  %v3719_v8 = vld [vmem:[%s4489_s23 + $0x210] sm:$0xf] }
  0x6b   : > { %1578 = vmatmul.bf16.gmra.mxu0 %v3552_v24  ;;  %1653 = vmatmul.bf16.gmra.mxu3 %v3912_v27  ;;  %v4196_v24 = vld [vmem:[%s4489_s23 + $0x1c4] sm:$0xf0] }
  0x6c   : > { %1687 = vmatmul.bf16.gmra.mxu1 %v3556_v25  ;;  %1762 = vmatmul.bf16.gmra.mxu2 %v3916_v26  ;;  %v4193_v25 = vld [vmem:[%s4489_s23 + $0x1b4] sm:$0xf]  ;;  %v3673_v26 = vld [vmem:[%s4489_s23 + $0x1c8] sm:$0xf0]  ;;  %v3559_v27 = vld [vmem:[%s4489_s23 + $0xc8] sm:$0xf]  ;;  %v3672_v33 = vor.u32 %v4196_v24, %v3671_v23 }
  0x6d   : > { %v3676_v34 = vor.u32 %v4193_v25, %v3673_v26 }
  0x7b   : > { %1583 = vmatmul.bf16.gmra.mxu0 %v3576_v36  ;;  %1885 = vmatmul.bf16.vlgmr.msrb.gmra.mxu3 %v3468_v39 }
  0x7c   : > { %1692 = vmatmul.bf16.gmra.mxu1 %v3580_v37  ;;  %1776 = vmatmul.bf16.vlgmr.msrb.gmra.mxu2 %v3464_v38  ;;  %v3560_v37 = vor.u32 %v4167_v28, %v3559_v27  ;;  %v3564_v38 = vor.u32 %v4164_v29, %v3561_v30  ;;  %v4298_v30 = vld [vmem:[%s5829_s3 + $0x138] sm:$0xff] }
  0x7d   : > { %1986 = vmatpush.bf16.msrb.mxu0 %v4298_v30  ;;  %v4292_v30 = vld [vmem:[%s5829_s3 + $0x108] sm:$0xff] }
  0x8b   : > { %1588 = vmatmul.bf16.gmra.mxu0 %v3600_v48  ;;  %1890 = vmatmul.bf16.gmra.mxu3 %v3492_v51  ;;  %v4202_v48 = vld [vmem:[%s4489_s23 + $0x1f4] sm:$0xf0] }
  0x8c   : > { %1697 = vmatmul.bf16.gmra.mxu1 %v3604_v49  ;;  %1781 = vmatmul.bf16.gmra.mxu2 %v3488_v50  ;;  %v4199_v49 = vld [vmem:[%s4489_s23 + $0x1e4] sm:$0xf]  ;;  %v3697_v50 = vld [vmem:[%s4489_s23 + $0x1f8] sm:$0xf0]  ;;  %v3583_v51 = vld [vmem:[%s4489_s23 + $0xf8] sm:$0xf]  ;;  %v3696_v57 = vor.u32 %v4202_v48, %v3695_v47 }
  0x8d   : > { %v3700_v58 = vor.u32 %v4199_v49, %v3697_v50  ;;  %v4214_v47 = vld [vmem:[%s4489_s23 + $0x254] sm:$0xf0]  ;;  %v4296_v48 = vld [vmem:[%s5829_s3 + $0x128] sm:$0xff]  ;;  %v4211_v50 = vld [vmem:[%s4489_s23 + $0x244] sm:$0xf] }
  0x8e   : > { %v4304_v49 = vld [vmem:[%s5829_s3 + $0x168] sm:$0xff] }
  0x9b   : > { %1593 = vmatmul.bf16.gmra.mxu0 %v3624_v60  ;;  %1895 = vmatmul.bf16.gmra.mxu3 %v3516_v63 }
  0x9c   : > { %1702 = vmatmul.bf16.gmra.mxu1 %v3628_v61  ;;  %1786 = vmatmul.bf16.gmra.mxu2 %v3512_v62  ;;  %v3584_v61 = vor.u32 %v4173_v52, %v3583_v51  ;;  %v3588_v62 = vor.u32 %v4170_v53, %v3585_v54  ;;  %v3745_v51 = vld [vmem:[%s4489_s23 + $0x258] sm:$0xf0]  ;;  %v3631_v52 = vld [vmem:[%s4489_s23 + $0x158] sm:$0xf]  ;;  %v4185_v53 = vld [vmem:[%s4489_s23 + $0x16c] sm:$0xf0] }
  0x9d   : > { %v4182_v54 = vld [vmem:[%s4489_s23 + $0x15c] sm:$0xf] }
  0xa8   : > { %v1559_v11 = vpop.f32.mrf.mxu0 }
  0xa9   : > { %v1668_v12 = vpop.f32.mrf.mxu1  ;;  %v1560_v15 = vadd.f32 %v4612_v0, %v1559_v11  ;;  %v3721_v11 = vld [vmem:[%s4489_s23 + $0x228] sm:$0xf0] }
  0xab   : > { %v4623_v16 = vadd.f32 %v1668_v12, %v1560_v15  ;;  %1598 = vmatmul.bf16.gmra.mxu0 %v3648_v9  ;;  %1900 = vmatmul.bf16.gmra.mxu3 %v3540_v14  ;;  %v4208_v9 = vld [vmem:[%s4489_s23 + $0x224] sm:$0xf0]  ;;  %v4176_v14 = vld [vmem:[%s4489_s23 + $0x12c] sm:$0xf]  ;;  %v3609_v15 = vld [vmem:[%s4489_s23 + $0x140] sm:$0xf0] }
  0xac   : > { %1707 = vmatmul.bf16.gmra.mxu1 %v3652_v10  ;;  %1791 = vmatmul.bf16.gmra.mxu2 %v3536_v13  ;;  %v4205_v10 = vld [vmem:[%s4489_s23 + $0x214] sm:$0xf]  ;;  %v3607_v12 = vld [vmem:[%s4489_s23 + $0x128] sm:$0xf]  ;;  %v4179_v13 = vld [vmem:[%s4489_s23 + $0x13c] sm:$0xf0]  ;;  %v3612_v27 = vor.u32 %v4176_v14, %v3609_v15 }
  0xad   : > { %v3724_v23 = vor.u32 %v4205_v10, %v3721_v11  ;;  %v3608_v26 = vor.u32 %v4179_v13, %v3607_v12  ;;  %v4294_v11 = vld [vmem:[%s5829_s3 + $0x118] sm:$0xff]  ;;  %v4293_v15 = vld [vmem:[%s5829_s3 + $0x110] sm:$0xff] }
  0xae   : > { %v4627_v18 = vpop.f32.mrf.mxu3  ;;  %v4302_v12 = vld [vmem:[%s5829_s3 + $0x158] sm:$0xff] }
  0xaf   : > { %v4625_v17 = vpop.f32.mrf.mxu2 }
  0xb0   : > { %v1561_v19 = vpop.f32.mrf.mxu0 }
  0xb1   : > { %v1670_v20 = vpop.f32.mrf.mxu1  ;;  %v1562_v21 = vadd.f32 %v4612_v0, %v1561_v19 }
  0xb3   : > { %v4630_v22 = vadd.f32 %v1670_v20, %v1562_v21  ;;  %v3720_v21 = vor.u32 %v4208_v9, %v3719_v8 }
  0xb6   : > { %v4642_v32 = vpop.f32.mrf.mxu3 }
  0xb7   : > { %v4640_v31 = vpop.f32.mrf.mxu2 }
  0xb8   : > { %v1564_v35 = vpop.f32.mrf.mxu0 }
  0xb9   : > { %v1673_v36 = vpop.f32.mrf.mxu1  ;;  %v1565_v39 = vadd.f32 %v4612_v0, %v1564_v35 }
  0xbb   : > { %v4645_v40 = vadd.f32 %v1673_v36, %v1565_v39  ;;  %1603 = vmatmul.bf16.gmra.mxu0 %v3672_v33  ;;  %1905 = vmatmul.bf16.gmra.mxu3 %v3564_v38  ;;  %v4306_v33 = vld [vmem:[%s5829_s3 + $0x178] sm:$0xff]  ;;  %v4297_v36 = vld [vmem:[%s5829_s3 + $0x130] sm:$0xff] }
  0xbc   : > { %1712 = vmatmul.bf16.gmra.mxu1 %v3676_v34  ;;  %1796 = vmatmul.bf16.gmra.mxu2 %v3560_v37  ;;  %v4305_v37 = vld [vmem:[%s5829_s3 + $0x170] sm:$0xff] }
  0xbd   : > { %2095 = vmatpush.bf16.msrb.mxu1 %v4306_v33  ;;  %1987 = vmatpush.bf16.msrb.mxu0 %v4297_v36  ;;  %v4300_v33 = vld [vmem:[%s5829_s3 + $0x148] sm:$0xff]  ;;  %v4217_v36 = vld [vmem:[%s4489_s23 + $0x274] sm:$0xf] }
  0xbe   : > { %v4649_v42 = vpop.f32.mrf.mxu3 }
  0xbf   : > { %v4647_v41 = vpop.f32.mrf.mxu2 }
  0xc0   : > { %v1566_v43 = vpop.f32.mrf.mxu0 }
  0xc1   : > { %v1675_v44 = vpop.f32.mrf.mxu1  ;;  %v1567_v45 = vadd.f32 %v4612_v0, %v1566_v43  ;;  %2096 = vmatpush.bf16.msrb.mxu1 %v4305_v37  ;;  %1988 = vmatpush.bf16.msrb.mxu0 %v4296_v48  ;;  %v3769_v37 = vld [vmem:[%s4489_s23 + $0x288] sm:$0xf0] }
  0xc3   : > { %v4652_v46 = vadd.f32 %v1675_v44, %v1567_v45  ;;  %v3743_v44 = vld [vmem:[%s4489_s23 + $0x240] sm:$0xf] }
  0xc5   : > { %2097 = vmatpush.bf16.msrb.mxu1 %v4304_v49 }
  0xc6   : > { %v4664_v56 = vpop.f32.mrf.mxu3 }
  0xc7   : > { %v4662_v55 = vpop.f32.mrf.mxu2 }
  0xc8   : > { %v1569_v59 = vpop.f32.mrf.mxu0 }
  0xc9   : > { %v1678_v60 = vpop.f32.mrf.mxu1  ;;  %v1570_v63 = vadd.f32 %v4612_v0, %v1569_v59 }
  0xcb   : > { %v4667_v1 = vadd.f32 %v1678_v60, %v1570_v63  ;;  %1608 = vmatmul.bf16.gmra.mxu0 %v3696_v57  ;;  %1910 = vmatmul.bf16.gmra.mxu3 %v3588_v62  ;;  %v3633_v57 = vld [vmem:[%s4489_s23 + $0x170] sm:$0xf0]  ;;  %v3744_v60 = vor.u32 %v4214_v47, %v3743_v44  ;;  %v4295_v62 = vld [vmem:[%s5829_s3 + $0x120] sm:$0xff] }
  0xcc   : > { %1717 = vmatmul.bf16.gmra.mxu1 %v3700_v58  ;;  %1801 = vmatmul.bf16.gmra.mxu2 %v3584_v61  ;;  %v3748_v61 = vor.u32 %v4211_v50, %v3745_v51  ;;  %v4303_v63 = vld [vmem:[%s5829_s3 + $0x160] sm:$0xff]  ;;  %v3636_v8 = vor.u32 %v4182_v54, %v3633_v57  ;;  %v3772_v50 = vor.u32 %v4217_v36, %v3769_v37 }
  0xcd   : > { %1989 = vmatpush.bf16.msrb.mxu0 %v4295_v62  ;;  %2098 = vmatpush.bf16.msrb.mxu1 %v4303_v63  ;;  %v3657_v44 = vld [vmem:[%s4489_s23 + $0x1a0] sm:$0xf0] }
  0xce   : > { %v4671_v3 = vpop.f32.mrf.mxu3  ;;  %v4291_v51 = vld [vmem:[%s5829_s3 + $0x100] sm:$0xff] }
  0xcf   : > { %v4669_v2 = vpop.f32.mrf.mxu2 }
  0xd0   : > { %v1571_v4 = vpop.f32.mrf.mxu0 }
  0xd1   : > { %v1680_v5 = vpop.f32.mrf.mxu1  ;;  %v1572_v6 = vadd.f32 %v4612_v0, %v1571_v4  ;;  %1990 = vmatpush.bf16.msrb.mxu0 %v4294_v11  ;;  %2099 = vmatpush.bf16.msrb.mxu1 %v4302_v12 }
  0xd3   : > { %v4674_v7 = vadd.f32 %v1680_v5, %v1572_v6  ;;  %v3632_v6 = vor.u32 %v4185_v53, %v3631_v52  ;;  %v4299_v52 = vld [vmem:[%s5829_s3 + $0x140] sm:$0xff] }
  0xd5   : > { %1991 = vmatpush.bf16.msrb.mxu0 %v4293_v15  ;;  %v3791_v15 = vld [vmem:[%s4489_s23 + $0x2a0] sm:$0xf] }
  0xd6   : > { %v4686_v20 = vpop.f32.mrf.mxu3 }
  0xd7   : > { %v4684_v19 = vpop.f32.mrf.mxu2 }
  0xd8   : > { %5839 = vst [vmem:[#allocation2_spill] sm:$0xff] %v4684_v19  ;;  %v1574_v24 = vpop.f32.mrf.mxu0 }
  0xd9   : > { %v1683_v25 = vpop.f32.mrf.mxu1  ;;  %v1575_v28 = vadd.f32 %v4612_v0, %v1574_v24  ;;  %1992 = vmatpush.bf16.msrb.mxu0 %v4292_v30  ;;  %v3681_v30 = vld [vmem:[%s4489_s23 + $0x1d0] sm:$0xf0] }
  0xdb   : > { %v4689_v29 = vadd.f32 %v1683_v25, %v1575_v28  ;;  %1613 = vmatmul.bf16.gmra.mxu0 %v3720_v21  ;;  %1915 = vmatmul.bf16.gmra.mxu3 %v3612_v27  ;;  %v4301_v21 = vld [vmem:[%s5829_s3 + $0x150] sm:$0xff]  ;;  %v4220_v28 = vld [vmem:[%s4489_s23 + $0x284] sm:$0xf0] }
  0xdc   : > { %1722 = vmatmul.bf16.gmra.mxu1 %v3724_v23  ;;  %1806 = vmatmul.bf16.gmra.mxu2 %v3608_v26  ;;  %v3767_v26 = vld [vmem:[%s4489_s23 + $0x270] sm:$0xf] }
  0xdd   : > { %2100 = vmatpush.bf16.msrb.mxu1 %v4301_v21  ;;  %v3768_v49 = vor.u32 %v4220_v28, %v3767_v26  ;;  %1993 = vmatpush.bf16.msrb.mxu0 %v4291_v51  ;;  %v4226_v21 = vld [vmem:[%s4489_s23 + $0x2b4] sm:$0xf0]  ;;  %v4197_v26 = vld [vmem:[%s4489_s23 + $0x1cc] sm:$0xf0]  ;;  %v4194_v28 = vld [vmem:[%s4489_s23 + $0x1bc] sm:$0xf] }
  0xde   : > { %v4699_v35 = vpop.f32.mrf.mxu3  ;;  %v3792_v37 = vor.u32 %v4226_v21, %v3791_v15  ;;  %v3473_v15 = vld [vmem:[%s4489_s23 + $0x28] sm:$0xf0]  ;;  %v4203_v21 = vld [vmem:[%s4489_s23 + $0x1fc] sm:$0xf0] }
  0xdf   : > { %v4697_v34 = vpop.f32.mrf.mxu2  ;;  %5841 = vst [vmem:[#allocation4_spill] sm:$0xff] %v4699_v35 }
  0xe0   : > { %5840 = vst [vmem:[#allocation3_spill] sm:$0xff] %v4697_v34  ;;  %v1576_v38 = vpop.f32.mrf.mxu0 }
  0xe1   : > { %v1685_v39 = vpop.f32.mrf.mxu1  ;;  %v1577_v43 = vadd.f32 %v4612_v0, %v1576_v38  ;;  %v3655_v38 = vld [vmem:[%s4489_s23 + $0x188] sm:$0xf]  ;;  %2101 = vmatpush.bf16.msrb.mxu1 %v4300_v33 }
  0xe3   : > { %v4709_v45 = vadd.f32 %v1685_v39, %v1577_v43  ;;  %v4191_v39 = vld [vmem:[%s4489_s23 + $0x19c] sm:$0xf0]  ;;  %v4188_v43 = vld [vmem:[%s4489_s23 + $0x18c] sm:$0xf] }
  0xe4   : > { %v3656_v57 = vor.u32 %v4191_v39, %v3655_v38 }
  0xe5   : > { %2102 = vmatpush.bf16.msrb.mxu1 %v4299_v52 }
  0xe6   : > { %v4726_v59 = vpop.f32.mrf.mxu3 }
  0xe7   : > { %v4724_v58 = vpop.f32.mrf.mxu2  ;;  %5843 = vst [vmem:[#allocation6_spill] sm:$0xff] %v4726_v59 }
  0xe8   : > { %5842 = vst [vmem:[#allocation5_spill] sm:$0xff] %v4724_v58  ;;  %v1579_v4 = vpop.f32.mrf.mxu0 }
  0xe9   : > { %v1688_v5 = vpop.f32.mrf.mxu1  ;;  %v1580_v9 = vadd.f32 %v4612_v0, %v1579_v4 }
  0xeb   : > { %v4735_v10 = vadd.f32 %v1688_v5, %v1580_v9  ;;  %1618 = vmatmul.bf16.gmra.mxu0 %v3744_v60  ;;  %1920 = vmatmul.bf16.gmra.mxu3 %v3636_v8  ;;  %v3660_v60 = vor.u32 %v4188_v43, %v3657_v44 }
  0xec   : > { %1727 = vmatmul.bf16.gmra.mxu1 %v3748_v61  ;;  %1811 = vmatmul.bf16.gmra.mxu2 %v3632_v6 }
  0xee   : > { %v4745_v14 = vpop.f32.mrf.mxu3 }
  0xef   : > { %v4743_v13 = vpop.f32.mrf.mxu2  ;;  %5845 = vst [vmem:[#allocation8_spill] sm:$0xff] %v4745_v14 }
  0xf0   : > { %5844 = vst [vmem:[#allocation7_spill] sm:$0xff] %v4743_v13  ;;  %v1581_v23 = vpop.f32.mrf.mxu0 }
  0xf1   : > { %v1690_v24 = vpop.f32.mrf.mxu1  ;;  %v1582_v25 = vadd.f32 %v4612_v0, %v1581_v23  ;;  %v4223_v23 = vld [vmem:[%s4489_s23 + $0x2a4] sm:$0xf] }
  0xf3   : > { %v4755_v27 = vadd.f32 %v1690_v24, %v1582_v25  ;;  %v3793_v24 = vld [vmem:[%s4489_s23 + $0x2b8] sm:$0xf0]  ;;  %v3679_v25 = vld [vmem:[%s4489_s23 + $0x1b8] sm:$0xf] }
  0xf4   : > { %v3680_v44 = vor.u32 %v4197_v26, %v3679_v25 }
  0xf6   : > { %v4772_v48 = vpop.f32.mrf.mxu3 }
  0xf7   : > { %v4770_v47 = vpop.f32.mrf.mxu2  ;;  %5847 = vst [vmem:[#allocation10_spill] sm:$0xff] %v4772_v48 }
  0xf8   : > { %5846 = vst [vmem:[#allocation9_spill] sm:$0xff] %v4770_v47  ;;  %v1584_v53 = vpop.f32.mrf.mxu0 }
  0xf9   : > { %v1693_v54 = vpop.f32.mrf.mxu1  ;;  %v1585_v61 = vadd.f32 %v4612_v0, %v1584_v53 }
  0xfb   : > { %v4781_v62 = vadd.f32 %v1693_v54, %v1585_v61  ;;  %1623 = vmatmul.bf16.gmra.mxu0 %v3768_v49  ;;  %1925 = vmatmul.bf16.gmra.mxu3 %v3660_v60  ;;  %v3684_v49 = vor.u32 %v4194_v28, %v3681_v30 }
  0xfc   : > { %1732 = vmatmul.bf16.gmra.mxu1 %v3772_v50  ;;  %1816 = vmatmul.bf16.gmra.mxu2 %v3656_v57 }
  0xfe   : > { %v1886_v4 = vpop.f32.mrf.mxu3 }
  0xff   : > { %v1777_v63 = vpop.f32.mrf.mxu2 }
 0x100   : > { %v1778_v5 = vadd.f32 %v1777_v63, %v4623_v16  ;;  %v1586_v6 = vpop.f32.mrf.mxu0  ;;  %v3796_v16 = vor.u32 %v4223_v23, %v3793_v24  ;;  %v4200_v23 = vld [vmem:[%s4489_s23 + $0x1ec] sm:$0xf]  ;;  %v3705_v24 = vld [vmem:[%s4489_s23 + $0x200] sm:$0xf0] }
 0x101   : > { %v1695_v8 = vpop.f32.mrf.mxu1  ;;  %v1587_v9 = vadd.f32 %v4612_v0, %v1586_v6  ;;  %v3471_v6 = vld [vmem:[%s4489_s23 + $0x10] sm:$0xf] }
 0x102   : > { %v4785_v11 = vadd.f32 %v1886_v4, %v1778_v5  ;;  %v3703_v5 = vld [vmem:[%s4489_s23 + $0x1e8] sm:$0xf] }
 0x103   : > { %v4787_v12 = vadd.f32 %v1695_v8, %v1587_v9  ;;  %v4144_v8 = vld [vmem:[%s4489_s23 + $0x24] sm:$0xf0]  ;;  %v4141_v9 = vld [vmem:[%s4489_s23 + $0x14] sm:$0xf] }
 0x104   : > { %v3472_v28 = vor.u32 %v4144_v8, %v3471_v6  ;;  %v4147_v6 = vld [vmem:[%s4489_s23 + $0x44] sm:$0xf]  ;;  %v3497_v8 = vld [vmem:[%s4489_s23 + $0x58] sm:$0xf0] }
 0x106   : > { %v1888_v36 = vpop.f32.mrf.mxu3 }
 0x107   : > { %v1779_v33 = vpop.f32.mrf.mxu2 }
 0x108   : > { %v1780_v38 = vadd.f32 %v1779_v33, %v4630_v22  ;;  %v1589_v39 = vpop.f32.mrf.mxu0 }
 0x109   : > { %v1698_v43 = vpop.f32.mrf.mxu1  ;;  %v1590_v50 = vadd.f32 %v4612_v0, %v1589_v39 }
 0x10a   : > { %v4799_v51 = vadd.f32 %v1888_v36, %v1780_v38 }
 0x10b   : > { %v4801_v52 = vadd.f32 %v1698_v43, %v1590_v50  ;;  %1628 = vmatmul.bf16.gmra.mxu0 %v3792_v37  ;;  %1930 = vmatmul.bf16.gmra.mxu3 %v3684_v49  ;;  %v3704_v37 = vor.u32 %v4203_v21, %v3703_v5  ;;  %v4150_v5 = vld [vmem:[%s4489_s23 + $0x54] sm:$0xf0]  ;;  %v3729_v21 = vld [vmem:[%s4489_s23 + $0x230] sm:$0xf0] }
 0x10c   : > { %1737 = vmatmul.bf16.gmra.mxu1 %v3796_v16  ;;  %1821 = vmatmul.bf16.gmra.mxu2 %v3680_v44  ;;  %v3708_v16 = vor.u32 %v4200_v23, %v3705_v24 }
 0x10e   : > { %v1891_v53 = vpop.f32.mrf.mxu3 }
 0x10f   : > { %v1782_v22 = vpop.f32.mrf.mxu2 }
 0x110   : > { %v1783_v54 = vadd.f32 %v1782_v22, %v4645_v40  ;;  %v1591_v57 = vpop.f32.mrf.mxu0  ;;  %v3476_v40 = vor.u32 %v4141_v9, %v3473_v15  ;;  %v4209_v9 = vld [vmem:[%s4489_s23 + $0x22c] sm:$0xf0]  ;;  %v4206_v15 = vld [vmem:[%s4489_s23 + $0x21c] sm:$0xf] }
 0x111   : > { %v1700_v60 = vpop.f32.mrf.mxu1  ;;  %v1592_v61 = vadd.f32 %v4612_v0, %v1591_v57 }
 0x112   : > { %v4805_v63 = vadd.f32 %v1891_v53, %v1783_v54 }
 0x113   : > { %v4807_v4 = vadd.f32 %v1700_v60, %v1592_v61  ;;  %v3727_v60 = vld [vmem:[%s4489_s23 + $0x218] sm:$0xf]  ;;  %v3495_v61 = vld [vmem:[%s4489_s23 + $0x40] sm:$0xf] }
 0x116   : > { %v1893_v26 = vpop.f32.mrf.mxu3 }
 0x117   : > { %v1784_v25 = vpop.f32.mrf.mxu2 }
 0x118   : > { %v1785_v30 = vadd.f32 %v1784_v25, %v4652_v46  ;;  %v1594_v33 = vpop.f32.mrf.mxu0  ;;  %v3496_v25 = vor.u32 %v4150_v5, %v3495_v61  ;;  %v3519_v61 = vld [vmem:[%s4489_s23 + $0x70] sm:$0xf]  ;;  %v4156_v5 = vld [vmem:[%s4489_s23 + $0x84] sm:$0xf0] }
 0x119   : > { %v1703_v36 = vpop.f32.mrf.mxu1  ;;  %v1595_v38 = vadd.f32 %v4612_v0, %v1594_v33  ;;  %v3732_v33 = vor.u32 %v4206_v15, %v3729_v21  ;;  %v4212_v15 = vld [vmem:[%s4489_s23 + $0x24c] sm:$0xf]  ;;  %v3753_v21 = vld [vmem:[%s4489_s23 + $0x260] sm:$0xf0] }
 0x11a   : > { %v4819_v39 = vadd.f32 %v1893_v26, %v1785_v30  ;;  %v3728_v30 = vor.u32 %v4209_v9, %v3727_v60  ;;  %v3751_v60 = vld [vmem:[%s4489_s23 + $0x248] sm:$0xf]  ;;  %v4215_v9 = vld [vmem:[%s4489_s23 + $0x25c] sm:$0xf0] }
 0x11b   : > { %v4821_v43 = vadd.f32 %v1703_v36, %v1595_v38  ;;  %1994 = vmatmul.bf16.vlgmr.msrb.gmra.mxu0 %v3472_v28  ;;  %1935 = vmatmul.bf16.gmra.mxu3 %v3708_v16 }
 0x11c   : > { %2103 = vmatmul.bf16.vlgmr.msrb.gmra.mxu1 %v3476_v40  ;;  %1826 = vmatmul.bf16.gmra.mxu2 %v3704_v37 }
 0x11e   : > { %v1896_v44 = vpop.f32.mrf.mxu3 }
 0x11f   : > { %v1787_v46 = vpop.f32.mrf.mxu2 }
 0x120   : > { %v1788_v49 = vadd.f32 %v1787_v46, %v4667_v1  ;;  %v1596_v50 = vpop.f32.mrf.mxu0  ;;  %v3500_v1 = vor.u32 %v4147_v6, %v3497_v8  ;;  %v4153_v6 = vld [vmem:[%s4489_s23 + $0x74] sm:$0xf]  ;;  %v3521_v8 = vld [vmem:[%s4489_s23 + $0x88] sm:$0xf0] }
 0x121   : > { %v1705_v22 = vpop.f32.mrf.mxu1  ;;  %v1597_v53 = vadd.f32 %v4612_v0, %v1596_v50 }
 0x122   : > { %v4825_v54 = vadd.f32 %v1896_v44, %v1788_v49 }
 0x123   : > { %v4827_v57 = vadd.f32 %v1705_v22, %v1597_v53 }
 0x126   : > { %v1898_v24 = vpop.f32.mrf.mxu3 }
 0x127   : > { %v1789_v23 = vpop.f32.mrf.mxu2 }
 0x128   : > { %v1790_v26 = vadd.f32 %v1789_v23, %v4674_v7  ;;  %v1599_v28 = vpop.f32.mrf.mxu0 }
 0x129   : > { %v1708_v40 = vpop.f32.mrf.mxu1  ;;  %v1600_v36 = vadd.f32 %v4612_v0, %v1599_v28 }
 0x12a   : > { %v4839_v37 = vadd.f32 %v1898_v24, %v1790_v26 }
 0x12b   : > { %v4841_v16 = vadd.f32 %v1708_v40, %v1600_v36  ;;  %1999 = vmatmul.bf16.gmra.mxu0 %v3496_v25  ;;  %1940 = vmatmul.bf16.gmra.mxu3 %v3732_v33  ;;  %v3520_v25 = vor.u32 %v4156_v5, %v3519_v61  ;;  %v3752_v40 = vor.u32 %v4215_v9, %v3751_v60  ;;  %v3775_v5 = vld [vmem:[%s4489_s23 + $0x278] sm:$0xf]  ;;  %v4159_v9 = vld [vmem:[%s4489_s23 + $0xa4] sm:$0xf] }
 0x12c   : > { %2108 = vmatmul.bf16.gmra.mxu1 %v3500_v1  ;;  %1831 = vmatmul.bf16.gmra.mxu2 %v3728_v30  ;;  %v3756_v30 = vor.u32 %v4212_v15, %v3753_v21  ;;  %v3545_v15 = vld [vmem:[%s4489_s23 + $0xb8] sm:$0xf0]  ;;  %v4221_v21 = vld [vmem:[%s4489_s23 + $0x28c] sm:$0xf0] }
 0x12e   : > { %v1901_v38 = vpop.f32.mrf.mxu3 }
 0x12f   : > { %v1792_v7 = vpop.f32.mrf.mxu2 }
 0x130   : > { %v1793_v46 = vadd.f32 %v1792_v7, %v4689_v29  ;;  %v1601_v44 = vpop.f32.mrf.mxu0  ;;  %v3524_v29 = vor.u32 %v4153_v6, %v3521_v8  ;;  %v3543_v6 = vld [vmem:[%s4489_s23 + $0xa0] sm:$0xf]  ;;  %v4162_v8 = vld [vmem:[%s4489_s23 + $0xb4] sm:$0xf0] }
 0x131   : > { %v1710_v49 = vpop.f32.mrf.mxu1  ;;  %v1602_v50 = vadd.f32 %v4612_v0, %v1601_v44 }
 0x132   : > { %v4845_v22 = vadd.f32 %v1901_v38, %v1793_v46 }
 0x133   : > { %v4847_v53 = vadd.f32 %v1710_v49, %v1602_v50 }
 0x135   : > { %5848 = vst [vmem:[#allocation11_spill] sm:$0xff] %v4847_v53 }
 0x136   : > { %v1903_v24 = vpop.f32.mrf.mxu3 }
 0x137   : > { %v1794_v23 = vpop.f32.mrf.mxu2 }
 0x138   : > { %v1795_v1 = vadd.f32 %v1794_v23, %v4709_v45  ;;  %v1604_v26 = vpop.f32.mrf.mxu0  ;;  %v4218_v23 = vld [vmem:[%s4489_s23 + $0x27c] sm:$0xf] }
 0x139   : > { %v1713_v28 = vpop.f32.mrf.mxu1  ;;  %v1605_v33 = vadd.f32 %v4612_v0, %v1604_v26 }
 0x13a   : > { %v4859_v36 = vadd.f32 %v1903_v24, %v1795_v1  ;;  %v3777_v24 = vld [vmem:[%s4489_s23 + $0x290] sm:$0xf0]  ;;  %v3544_v1 = vor.u32 %v4162_v8, %v3543_v6 }
 0x13b   : > { %v4861_v7 = vadd.f32 %v1713_v28, %v1605_v33  ;;  %2004 = vmatmul.bf16.gmra.mxu0 %v3520_v25  ;;  %1945 = vmatmul.bf16.gmra.mxu3 %v3756_v30  ;;  %v3776_v30 = vor.u32 %v4221_v21, %v3775_v5  ;;  %v3780_v33 = vor.u32 %v4218_v23, %v3777_v24  ;;  %v3567_v21 = vld [vmem:[%s4489_s23 + $0xd0] sm:$0xf]  ;;  %v4168_v23 = vld [vmem:[%s4489_s23 + $0xe4] sm:$0xf0]  ;;  %v4165_v24 = vld [vmem:[%s4489_s23 + $0xd4] sm:$0xf] }
 0x13c   : > { %2113 = vmatmul.bf16.gmra.mxu1 %v3524_v29  ;;  %1836 = vmatmul.bf16.gmra.mxu2 %v3752_v40 }
 0x13d   : > { %5849 = vst [vmem:[#allocation12_spill] sm:$0xff] %v4861_v7 }
 0x13e   : > { %v1906_v38 = vpop.f32.mrf.mxu3 }
 0x13f   : > { %v1797_v45 = vpop.f32.mrf.mxu2 }
 0x140   : > { %v1798_v46 = vadd.f32 %v1797_v45, %v4735_v10  ;;  %v1606_v44 = vpop.f32.mrf.mxu0  ;;  %v3548_v10 = vor.u32 %v4159_v9, %v3545_v15  ;;  %v3799_v15 = vld [vmem:[%s4489_s23 + $0x2a8] sm:$0xf] }
 0x141   : > { %v1715_v49 = vpop.f32.mrf.mxu1  ;;  %v1607_v50 = vadd.f32 %v4612_v0, %v1606_v44 }
 0x142   : > { %v4865_v60 = vadd.f32 %v1906_v38, %v1798_v46 }
 0x143   : > { %v4867_v61 = vadd.f32 %v1715_v49, %v1607_v50 }
 0x145   : > { %5850 = vst [vmem:[#allocation13_spill] sm:$0xff] %v4867_v61 }
 0x146   : > { %v1908_v29 = vpop.f32.mrf.mxu3 }
 0x147   : > { %v1799_v25 = vpop.f32.mrf.mxu2 }
 0x148   : > { %v1800_v26 = vadd.f32 %v1799_v25, %v4755_v27  ;;  %v1609_v28 = vpop.f32.mrf.mxu0  ;;  %v3569_v25 = vld [vmem:[%s4489_s23 + $0xe8] sm:$0xf0] }
 0x149   : > { %v1718_v40 = vpop.f32.mrf.mxu1  ;;  %v1610_v45 = vadd.f32 %v4612_v0, %v1609_v28 }
 0x14a   : > { %v4879_v38 = vadd.f32 %v1908_v29, %v1800_v26  ;;  %v4227_v29 = vld [vmem:[%s4489_s23 + $0x2bc] sm:$0xf0] }
 0x14b   : > { %v4881_v46 = vadd.f32 %v1718_v40, %v1610_v45  ;;  %2009 = vmatmul.bf16.gmra.mxu0 %v3544_v1  ;;  %1950 = vmatmul.bf16.gmra.mxu3 %v3780_v33  ;;  %v4224_v1 = vld [vmem:[%s4489_s23 + $0x2ac] sm:$0xf]  ;;  %v3568_v40 = vor.u32 %v4168_v23, %v3567_v21 }
 0x14c   : > { %2118 = vmatmul.bf16.gmra.mxu1 %v3548_v10  ;;  %1841 = vmatmul.bf16.gmra.mxu2 %v3776_v30  ;;  %v3801_v10 = vld [vmem:[%s4489_s23 + $0x2c0] sm:$0xf0] }
 0x14d   : > { %5851 = vst [vmem:[#allocation14_spill] sm:$0xff] %v4881_v46 }
 0x14e   : > { %v1911_v44 = vpop.f32.mrf.mxu3 }
 0x14f   : > { %v1802_v27 = vpop.f32.mrf.mxu2 }
 0x150   : > { %v1803_v49 = vadd.f32 %v1802_v27, %v4781_v62  ;;  %v1611_v50 = vpop.f32.mrf.mxu0  ;;  %v3572_v62 = vor.u32 %v4165_v24, %v3569_v25  ;;  %v3800_v27 = vor.u32 %v4227_v29, %v3799_v15 }
 0x151   : > { %v1720_v5 = vpop.f32.mrf.mxu1  ;;  %v1612_v6 = vadd.f32 %v4612_v0, %v1611_v50 }
 0x152   : > { %v4885_v8 = vadd.f32 %v1911_v44, %v1803_v49  ;;  %v3804_v44 = vor.u32 %v4224_v1, %v3801_v10  ;;  %v3823_v1 = vld [vmem:[%s4489_s23 + $0x2d8] sm:$0xf]  ;;  %v3591_v10 = vld [vmem:[%s4489_s23 + $0x100] sm:$0xf] }
 0x153   : > { %v4887_v9 = vadd.f32 %v1720_v5, %v1612_v6 }
 0x155   : > { %5852 = vst [vmem:[#allocation15_spill] sm:$0xff] %v4887_v9  ;;  %v3897_v9 = vld [vmem:[%s4489_s23 + $0x380] sm:$0xf0] }
 0x156   : > { %v1913_v28 = vpop.f32.mrf.mxu3 }
 0x157   : > { %v1804_v26 = vpop.f32.mrf.mxu2 }
 0x158   : > { %v1805_v30 = vadd.f32 %v1804_v26, %v4787_v12  ;;  %v1614_v33 = vpop.f32.mrf.mxu0  ;;  %v4174_v26 = vld [vmem:[%s4489_s23 + $0x114] sm:$0xf0] }
 0x159   : > { %v1723_v45 = vpop.f32.mrf.mxu1  ;;  %v1615_v49 = vadd.f32 %v4612_v0, %v1614_v33  ;;  %v3825_v33 = vld [vmem:[%s4489_s23 + $0x2f0] sm:$0xf0] }
 0x15a   : > { %v4899_v50 = vadd.f32 %v1913_v28, %v1805_v30  ;;  %v4171_v28 = vld [vmem:[%s4489_s23 + $0x104] sm:$0xf]  ;;  %v4230_v30 = vld [vmem:[%s4489_s23 + $0x2dc] sm:$0xf] }
 0x15b   : > { %v4901_v5 = vadd.f32 %v1723_v45, %v1615_v49  ;;  %2014 = vmatmul.bf16.gmra.mxu0 %v3568_v40  ;;  %1955 = vmatmul.bf16.gmra.mxu3 %v3804_v44  ;;  %v3593_v40 = vld [vmem:[%s4489_s23 + $0x118] sm:$0xf0]  ;;  %v3592_v44 = vor.u32 %v4174_v26, %v3591_v10 }
 0x15c   : > { %2123 = vmatmul.bf16.gmra.mxu1 %v3572_v62  ;;  %1846 = vmatmul.bf16.gmra.mxu2 %v3800_v27  ;;  %v4233_v62 = vld [vmem:[%s4489_s23 + $0x2ec] sm:$0xf0] }
 0x15d   : > { %5853 = vst [vmem:[#allocation16_spill] sm:$0xff] %v4901_v5 }
 0x15e   : > { %v1916_v6 = vpop.f32.mrf.mxu3 }
 0x15f   : > { %v1807_v12 = vpop.f32.mrf.mxu2 }
 0x160   : > { %v1808_v15 = vadd.f32 %v1807_v12, %v4801_v52  ;;  %v1616_v21 = vpop.f32.mrf.mxu0  ;;  %v3596_v52 = vor.u32 %v4171_v28, %v3593_v40 }
 0x161   : > { %v1725_v23 = vpop.f32.mrf.mxu1  ;;  %v1617_v24 = vadd.f32 %v4612_v0, %v1616_v21 }
 0x162   : > { %v4905_v25 = vadd.f32 %v1916_v6, %v1808_v15  ;;  %v3824_v6 = vor.u32 %v4233_v62, %v3823_v1  ;;  %v3828_v15 = vor.u32 %v4230_v30, %v3825_v33  ;;  %v3847_v33 = vld [vmem:[%s4489_s23 + $0x308] sm:$0xf] }
 0x163   : > { %v4907_v29 = vadd.f32 %v1725_v23, %v1617_v24 }
 0x165   : > { %5854 = vst [vmem:[#allocation17_spill] sm:$0xff] %v4907_v29 }
 0x166   : > { %v1918_v27 = vpop.f32.mrf.mxu3 }
 0x167   : > { %v1809_v45 = vpop.f32.mrf.mxu2 }
 0x168   : > { %v1810_v49 = vadd.f32 %v1809_v45, %v4807_v4  ;;  %v1619_v12 = vpop.f32.mrf.mxu0  ;;  %v3615_v45 = vld [vmem:[%s4489_s23 + $0x130] sm:$0xf] }
 0x169   : > { %v1728_v21 = vpop.f32.mrf.mxu1  ;;  %v1620_v23 = vadd.f32 %v4612_v0, %v1619_v12  ;;  %v4236_v12 = vld [vmem:[%s4489_s23 + $0x30c] sm:$0xf] }
 0x16a   : > { %v4919_v24 = vadd.f32 %v1918_v27, %v1810_v49  ;;  %v4180_v27 = vld [vmem:[%s4489_s23 + $0x144] sm:$0xf0]  ;;  %v4239_v49 = vld [vmem:[%s4489_s23 + $0x31c] sm:$0xf0] }
 0x16b   : > { %v4921_v47 = vadd.f32 %v1728_v21, %v1620_v23  ;;  %2019 = vmatmul.bf16.gmra.mxu0 %v3592_v44  ;;  %1960 = vmatmul.bf16.gmra.mxu3 %v3828_v15  ;;  %v4177_v44 = vld [vmem:[%s4489_s23 + $0x134] sm:$0xf]  ;;  %v3849_v21 = vld [vmem:[%s4489_s23 + $0x320] sm:$0xf0]  ;;  %v3616_v23 = vor.u32 %v4180_v27, %v3615_v45 }
 0x16c   : > { %2128 = vmatmul.bf16.gmra.mxu1 %v3596_v52  ;;  %1851 = vmatmul.bf16.gmra.mxu2 %v3824_v6  ;;  %v3617_v52 = vld [vmem:[%s4489_s23 + $0x148] sm:$0xf0] }
 0x16d   : > { %5855 = vst [vmem:[#allocation18_spill] sm:$0xff] %v4921_v47 }
 0x16e   : > { %v1921_v1 = vpop.f32.mrf.mxu3 }
 0x16f   : > { %v1812_v4 = vpop.f32.mrf.mxu2 }
 0x170   : > { %v1813_v10 = vadd.f32 %v1812_v4, %v4821_v43  ;;  %v1621_v26 = vpop.f32.mrf.mxu0  ;;  %v3620_v43 = vor.u32 %v4177_v44, %v3617_v52  ;;  %v3871_v52 = vld [vmem:[%s4489_s23 + $0x338] sm:$0xf] }
 0x171   : > { %v1730_v28 = vpop.f32.mrf.mxu1  ;;  %v1622_v40 = vadd.f32 %v4612_v0, %v1621_v26 }
 0x172   : > { %v4925_v62 = vadd.f32 %v1921_v1, %v1813_v10  ;;  %v3848_v1 = vor.u32 %v4239_v49, %v3847_v33  ;;  %v3852_v10 = vor.u32 %v4236_v12, %v3849_v21  ;;  %v3639_v49 = vld [vmem:[%s4489_s23 + $0x160] sm:$0xf]  ;;  %v4186_v12 = vld [vmem:[%s4489_s23 + $0x174] sm:$0xf0]  ;;  %v4183_v21 = vld [vmem:[%s4489_s23 + $0x164] sm:$0xf] }
 0x173   : > { %v4927_v30 = vadd.f32 %v1730_v28, %v1622_v40 }
 0x176   : > { %v1923_v15 = vpop.f32.mrf.mxu3 }
 0x177   : > { %v1814_v6 = vpop.f32.mrf.mxu2 }
 0x178   : > { %v1815_v4 = vadd.f32 %v1814_v6, %v4827_v57  ;;  %v1624_v48 = vpop.f32.mrf.mxu0  ;;  %v3641_v6 = vld [vmem:[%s4489_s23 + $0x178] sm:$0xf0] }
 0x179   : > { %v1733_v26 = vpop.f32.mrf.mxu1  ;;  %v1625_v28 = vadd.f32 %v4612_v0, %v1624_v48 }
 0x17a   : > { %v4939_v40 = vadd.f32 %v1923_v15, %v1815_v4  ;;  %v4245_v15 = vld [vmem:[%s4489_s23 + $0x34c] sm:$0xf0] }
 0x17b   : > { %v4941_v47 = vadd.f32 %v1733_v26, %v1625_v28  ;;  %2024 = vmatmul.bf16.gmra.mxu0 %v3616_v23  ;;  %1965 = vmatmul.bf16.gmra.mxu3 %v3852_v10  ;;  %v4242_v23 = vld [vmem:[%s4489_s23 + $0x33c] sm:$0xf]  ;;  %v3644_v10 = vor.u32 %v4183_v21, %v3641_v6 }
 0x17c   : > { %2133 = vmatmul.bf16.gmra.mxu1 %v3620_v43  ;;  %1856 = vmatmul.bf16.gmra.mxu2 %v3848_v1  ;;  %v3873_v43 = vld [vmem:[%s4489_s23 + $0x350] sm:$0xf0]  ;;  %v3640_v1 = vor.u32 %v4186_v12, %v3639_v49 }
 0x17e   : > { %v4945_v33 = vpop.f32.mrf.mxu3 }
 0x17f   : > { %v4943_v57 = vpop.f32.mrf.mxu2  ;;  %5856 = vst [vmem:[#allocation19_spill] sm:$0xff] %v4945_v33 }
 0x180   : > { %v1626_v45 = vpop.f32.mrf.mxu0 }
 0x181   : > { %v1735_v27 = vpop.f32.mrf.mxu1  ;;  %v1627_v48 = vadd.f32 %v4612_v0, %v1626_v45  ;;  %v3872_v45 = vor.u32 %v4245_v15, %v3871_v52 }
 0x183   : > { %v4948_v44 = vadd.f32 %v1735_v27, %v1627_v48  ;;  %v3876_v27 = vor.u32 %v4242_v23, %v3873_v43  ;;  %v3895_v23 = vld [vmem:[%s4489_s23 + $0x368] sm:$0xf] }
 0x184   : > { %v4192_v43 = vld [vmem:[%s4489_s23 + $0x1a4] sm:$0xf0] }
 0x186   : > { %v4960_v26 = vpop.f32.mrf.mxu3 }
 0x187   : > { %v4958_v4 = vpop.f32.mrf.mxu2  ;;  %5858 = vst [vmem:[#allocation21_spill] sm:$0xff] %v4960_v26 }
 0x188   : > { %5857 = vst [vmem:[#allocation20_spill] sm:$0xff] %v4958_v4  ;;  %v1629_v28 = vpop.f32.mrf.mxu0 }
 0x189   : > { %v1738_v29 = vpop.f32.mrf.mxu1  ;;  %v1630_v48 = vadd.f32 %v4612_v0, %v1629_v28  ;;  %v4189_v28 = vld [vmem:[%s4489_s23 + $0x194] sm:$0xf] }
 0x18b   : > { %v4963_v5 = vadd.f32 %v1738_v29, %v1630_v48  ;;  %2029 = vmatmul.bf16.gmra.mxu0 %v3640_v1  ;;  %1970 = vmatmul.bf16.gmra.mxu3 %v3876_v27  ;;  %v3663_v29 = vld [vmem:[%s4489_s23 + $0x190] sm:$0xf]  ;;  %v3665_v1 = vld [vmem:[%s4489_s23 + $0x1a8] sm:$0xf0]  ;;  %v4251_v48 = vld [vmem:[%s4489_s23 + $0x37c] sm:$0xf0] }
 0x18c   : > { %2138 = vmatmul.bf16.gmra.mxu1 %v3644_v10  ;;  %1861 = vmatmul.bf16.gmra.mxu2 %v3872_v45  ;;  %v4248_v10 = vld [vmem:[%s4489_s23 + $0x36c] sm:$0xf]  ;;  %v3664_v46 = vor.u32 %v4192_v43, %v3663_v29  ;;  %v3668_v13 = vor.u32 %v4189_v28, %v3665_v1  ;;  %v3896_v58 = vor.u32 %v4251_v48, %v3895_v23  ;;  %v3919_v48 = vld [vmem:[%s4489_s23 + $0x398] sm:$0xf] }
 0x18e   : > { %v4967_v12 = vpop.f32.mrf.mxu3 }
 0x18f   : > { %v4965_v49 = vpop.f32.mrf.mxu2  ;;  %5860 = vst [vmem:[#allocation23_spill] sm:$0xff] %v4967_v12  ;;  %v3921_v12 = vld [vmem:[%s4489_s23 + $0x3b0] sm:$0xf0] }
 0x190   : > { %5859 = vst [vmem:[#allocation22_spill] sm:$0xff] %v4965_v49  ;;  %v1631_v52 = vpop.f32.mrf.mxu0 }
 0x191   : > { %v1740_v21 = vpop.f32.mrf.mxu1  ;;  %v1632_v6 = vadd.f32 %v4612_v0, %v1631_v52  ;;  %v3900_v0 = vor.u32 %v4248_v10, %v3897_v9  ;;  %v4257_v10 = vld [vmem:[%s4489_s23 + $0x3ac] sm:$0xf0] }
 0x193   : > { %v4970_v15 = vadd.f32 %v1740_v21, %v1632_v6 }
 0x196   : > { %v4982_v27 = vpop.f32.mrf.mxu3 }
 0x197   : > { %v4980_v45 = vpop.f32.mrf.mxu2  ;;  %5862 = vst [vmem:[#allocation25_spill] sm:$0xff] %v4982_v27 }
 0x198   : > { %5861 = vst [vmem:[#allocation24_spill] sm:$0xff] %v4980_v45  ;;  %v1995_v61 = vpop.f32.mrf.mxu0 }
 0x199   : > { %v2104_v14 = vpop.f32.mrf.mxu1  ;;  %v1996_v52 = vadd.f32 %v1995_v61, %v4785_v11 }
 0x19b   : > { %v2105_v21 = vadd.f32 %v2104_v14, %v1996_v52  ;;  %2034 = vmatmul.bf16.gmra.mxu0 %v3664_v46  ;;  %1975 = vmatmul.bf16.gmra.mxu3 %v3900_v0  ;;  %v3687_v0 = vld [vmem:[%s4489_s23 + $0x1c0] sm:$0xf]  ;;  %v4198_v52 = vld [vmem:[%s4489_s23 + $0x1d4] sm:$0xf0] }
 0x19c   : > { %2143 = vmatmul.bf16.gmra.mxu1 %v3668_v13  ;;  %1866 = vmatmul.bf16.gmra.mxu2 %v3896_v58 }
 0x19d   : > { %v2204_v6 = vmax.f32 %v2105_v21, 0.0  ;;  %v4195_v21 = vld [vmem:[%s4489_s23 + $0x1c4] sm:$0xf] }
 0x19e   : > { %v4989_v14 = vpop.f32.mrf.mxu3 }
 0x19f   : > { %v2245_v29 = vsel %vm2244_vm0, %v2204_v6, -inf  ;;  %v2430_v23 = vsel %vm2429_vm1, %v2204_v6, -inf  ;;  %v4987_v9 = vpop.f32.mrf.mxu2  ;;  %5864 = vst [vmem:[#allocation27_spill] sm:$0xff] %v4989_v14  ;;  %v3689_v6 = vld [vmem:[%s4489_s23 + $0x1d8] sm:$0xf0] }
 0x1a0   : > { %5863 = vst [vmem:[#allocation26_spill] sm:$0xff] %v4987_v9  ;;  %v2246_v13 = vrot.slane %v2245_v29, 4  ;;  %v2431_v11 = vrot.slane %v2430_v23, 4  ;;  %v1997_v61 = vpop.f32.mrf.mxu0  ;;  %v4254_v9 = vld [vmem:[%s4489_s23 + $0x39c] sm:$0xf] }
 0x1a1   : > { %v2106_v58 = vpop.f32.mrf.mxu1  ;;  %v1998_v46 = vadd.f32 %v1997_v61, %v4799_v51  ;;  %v3924_v26 = vor.u32 %v4254_v9, %v3921_v12 }
 0x1a2   : > { %v2247_v43 = vmax.f32 %v2245_v29, %v2246_v13  ;;  %v2432_v28 = vmax.f32 %v2430_v23, %v2431_v11  ;;  %v3688_v29 = vor.u32 %v4198_v52, %v3687_v0  ;;  %v3692_v23 = vor.u32 %v4195_v21, %v3689_v6 }
 0x1a3   : > { %v2107_v1 = vadd.f32 %v2106_v58, %v1998_v46  ;;  %v3920_v46 = vor.u32 %v4257_v10, %v3919_v48 }
 0x1a4   : > { %v2248_v27 = vrot.slane %v2247_v43, 2  ;;  %v2433_v45 = vrot.slane %v2432_v28, 2 }
 0x1a5   : > { %v2205_v14 = vmax.f32 %v2107_v1, 0.0 }
 0x1a6   : > { %v5004_v51 = vpop.f32.mrf.mxu3  ;;  %v2249_v34 = vmax.f32 %v2247_v43, %v2248_v27  ;;  %v2434_v4 = vmax.f32 %v2432_v28, %v2433_v45 }
 0x1a7   : > { %v2252_v49 = vsel %vm2244_vm0, %v2205_v14, -inf  ;;  %v2437_v7 = vsel %vm2429_vm1, %v2205_v14, -inf  ;;  %v5002_v59 = vpop.f32.mrf.mxu2  ;;  %5866 = vst [vmem:[#allocation29_spill] sm:$0xff] %v5004_v51 }
 0x1a8   : > { %5865 = vst [vmem:[#allocation28_spill] sm:$0xff] %v5002_v59  ;;  %v2253_v13 = vrot.slane %v2252_v49, 4  ;;  %v2438_v11 = vrot.slane %v2437_v7, 4  ;;  %v2000_v61 = vpop.f32.mrf.mxu0  ;;  %v2250_v0 = vrot.slane %v2249_v34, 1  ;;  %v2435_v52 = vrot.slane %v2434_v4, 1 }
 0x1a9   : > { %v2109_v58 = vpop.f32.mrf.mxu1  ;;  %v2001_v1 = vadd.f32 %v2000_v61, %v4805_v63 }
 0x1aa   : > { %v2254_v53 = vmax.f32 %v2252_v49, %v2253_v13  ;;  %v2439_v35 = vmax.f32 %v2437_v7, %v2438_v11  ;;  %v3711_v13 = vld [vmem:[%s4489_s23 + $0x1f0] sm:$0xf]  ;;  %v4204_v11 = vld [vmem:[%s4489_s23 + $0x204] sm:$0xf0] }
 0x1ab   : > { %v2110_v19 = vadd.f32 %v2109_v58, %v2001_v1  ;;  %2039 = vmatmul.bf16.gmra.mxu0 %v3688_v29  ;;  %1980 = vmatmul.bf16.gmra.mxu3 %v3924_v26 }
 0x1ac   : > { %2148 = vmatmul.bf16.gmra.mxu1 %v3692_v23  ;;  %v2255_v14 = vrot.slane %v2254_v53, 2  ;;  %v2440_v59 = vrot.slane %v2439_v35, 2  ;;  %1871 = vmatmul.bf16.gmra.mxu2 %v3920_v46 }
 0x1ad   : > { %v2206_v21 = vmax.f32 %v2110_v19, 0.0  ;;  %v2251_v19 = vmax.f32 %v2249_v34, %v2250_v0  ;;  %v3712_v0 = vor.u32 %v4204_v11, %v3711_v13 }
 0x1ae   : > { %v2256_v6 = vmax.f32 %v2254_v53, %v2255_v14  ;;  %v2441_v51 = vmax.f32 %v2439_v35, %v2440_v59  ;;  %v5011_v63 = vpop.f32.mrf.mxu3  ;;  %v2436_v35 = vmax.f32 %v2434_v4, %v2435_v52  ;;  %v4201_v14 = vld [vmem:[%s4489_s23 + $0x1f4] sm:$0xf] }
 0x1af   : > { %v2259_v12 = vsel %vm2244_vm0, %v2206_v21, -inf  ;;  %v2444_v45 = vsel %vm2429_vm1, %v2206_v21, -inf  ;;  %v5009_v27 = vpop.f32.mrf.mxu2  ;;  %5868 = vst [vmem:[#allocation31_spill] sm:$0xff] %v5011_v63  ;;  %v3713_v21 = vld [vmem:[%s4489_s23 + $0x208] sm:$0xf0] }
 0x1b0   : > { %5867 = vst [vmem:[#allocation30_spill] sm:$0xff] %v5009_v27  ;;  %v2257_v7 = vrot.slane %v2256_v6, 1  ;;  %v2442_v49 = vrot.slane %v2441_v51, 1  ;;  %v2260_v9 = vrot.slane %v2259_v12, 4  ;;  %v2445_v43 = vrot.slane %v2444_v45, 4  ;;  %v2002_v26 = vpop.f32.mrf.mxu0 }
 0x1b1   : > { %v2111_v28 = vpop.f32.mrf.mxu1  ;;  %v2003_v59 = vadd.f32 %v2002_v26, %v4819_v39  ;;  %v3716_v52 = vor.u32 %v4201_v14, %v3713_v21 }
 0x1b2   : > { %v2258_v53 = vmax.f32 %v2256_v6, %v2257_v7  ;;  %v2443_v48 = vmax.f32 %v2441_v51, %v2442_v49  ;;  %v2261_v10 = vmax.f32 %v2259_v12, %v2260_v9  ;;  %v2446_v29 = vmax.f32 %v2444_v45, %v2445_v43 }
 0x1b3   : > { %v2112_v23 = vadd.f32 %v2111_v28, %v2003_v59 }
 0x1b4   : > { %v2413_v61 = vmax.f32 %v2251_v19, %v2258_v53  ;;  %v2598_v58 = vmax.f32 %v2436_v35, %v2443_v48  ;;  %v2262_v46 = vrot.slane %v2261_v10, 2  ;;  %v2447_v1 = vrot.slane %v2446_v29, 2 }
 0x1b5   : > { %v2207_v63 = vmax.f32 %v2112_v23, 0.0 }
 0x1b6   : > { %v2263_v27 = vmax.f32 %v2261_v10, %v2262_v46  ;;  %v2448_v33 = vmax.f32 %v2446_v29, %v2447_v1  ;;  %v5022_v51 = vpop.f32.mrf.mxu3 }
 0x1b7   : > { %v2622_v34 = vsel %vm2244_vm0, %v2207_v63, -inf  ;;  %v2758_v39 = vsel %vm2429_vm1, %v2207_v63, -inf  ;;  %v5020_v4 = vpop.f32.mrf.mxu2 }
 0x1b8   : > { %v2264_v6 = vrot.slane %v2263_v27, 1  ;;  %v2449_v12 = vrot.slane %v2448_v33, 1  ;;  %v2623_v45 = vrot.slane %v2622_v34, 4  ;;  %v2759_v7 = vrot.slane %v2758_v39, 4  ;;  %v2005_v49 = vpop.f32.mrf.mxu0 }
 0x1b9   : > { %v2114_v9 = vpop.f32.mrf.mxu1  ;;  %v2006_v43 = vadd.f32 %v2005_v49, %v4825_v54  ;;  %v4210_v49 = vld [vmem:[%s4489_s23 + $0x234] sm:$0xf0] }
 0x1ba   : > { %v5025_v26 = vmax.f32 %v2263_v27, %v2264_v6  ;;  %v5027_v28 = vmax.f32 %v2448_v33, %v2449_v12  ;;  %v2624_v19 = vmax.f32 %v2622_v34, %v2623_v45  ;;  %v2760_v63 = vmax.f32 %v2758_v39, %v2759_v7  ;;  %v3735_v7 = vld [vmem:[%s4489_s23 + $0x220] sm:$0xf] }
 0x1bb   : > { %v2115_v35 = vadd.f32 %v2114_v9, %v2006_v43  ;;  %2044 = vmatmul.bf16.gmra.mxu0 %v3712_v0 }
 0x1bc   : > { %2153 = vmatmul.bf16.gmra.mxu1 %v3716_v52  ;;  %v2414_v59 = vmax.f32 %v2413_v61, %v5025_v26  ;;  %v2599_v53 = vmax.f32 %v2598_v58, %v5027_v28  ;;  %v2625_v48 = vrot.slane %v2624_v19, 2  ;;  %v2761_v10 = vrot.slane %v2760_v63, 2 }
 0x1bd   : > { %v2208_v29 = vmax.f32 %v2115_v35, 0.0  ;;  %v4207_v35 = vld [vmem:[%s4489_s23 + $0x224] sm:$0xf] }
 0x1be   : > { %v2614_v23 = vadd.f32 %v2599_v53, %v2414_v59  ;;  %v2626_v13 = vmax.f32 %v2624_v19, %v2625_v48  ;;  %v2762_v11 = vmax.f32 %v2760_v63, %v2761_v10  ;;  %v5035_v46 = vpop.f32.mrf.mxu3  ;;  %v3737_v59 = vld [vmem:[%s4489_s23 + $0x238] sm:$0xf0] }
 0x1bf   : > { %v2629_v54 = vsel %vm2244_vm0, %v2208_v29, -inf  ;;  %v2765_v33 = vsel %vm2429_vm1, %v2208_v29, -inf  ;;  %v5033_v27 = vpop.f32.mrf.mxu2 }
 0x1c0   : > { %v2627_v1 = vrot.slane %v2626_v13, 1  ;;  %v2763_v61 = vrot.slane %v2762_v11, 1  ;;  %v2630_v14 = vrot.slane %v2629_v54, 4  ;;  %v2766_v58 = vrot.slane %v2765_v33, 4  ;;  %v2007_v21 = vpop.f32.mrf.mxu0 }
 0x1c1   : > { %v2116_v34 = vpop.f32.mrf.mxu1  ;;  %v2008_v39 = vadd.f32 %v2007_v21, %v4839_v37 }
 0x1c2   : > { %v2628_v0 = vmax.f32 %v2626_v13, %v2627_v1  ;;  %v2764_v52 = vmax.f32 %v2762_v11, %v2763_v61  ;;  %v2631_v6 = vmax.f32 %v2629_v54, %v2630_v14  ;;  %v2767_v12 = vmax.f32 %v2765_v33, %v2766_v58 }
 0x1c3   : > { %v2117_v45 = vadd.f32 %v2116_v34, %v2008_v39  ;;  %v3736_v54 = vor.u32 %v4210_v49, %v3735_v7  ;;  %v3740_v33 = vor.u32 %v4207_v35, %v3737_v59 }
 0x1c4   : > { %v2734_v9 = vmax.f32 %v5025_v26, %v2628_v0  ;;  %v2870_v43 = vmax.f32 %v5027_v28, %v2764_v52  ;;  %v2632_v19 = vrot.slane %v2631_v6, 2  ;;  %v2768_v63 = vrot.slane %v2767_v12, 2 }
 0x1c5   : > { %v2209_v53 = vmax.f32 %v2117_v45, 0.0 }
 0x1c6   : > { %v2633_v48 = vmax.f32 %v2631_v6, %v2632_v19  ;;  %v2769_v10 = vmax.f32 %v2767_v12, %v2768_v63  ;;  %v1948_v11 = vpop.f32.mrf.mxu3 }
 0x1c7   : > { %v2266_v37 = vsel %vm2244_vm0, %v2209_v53, -inf  ;;  %v2451_v29 = vsel %vm2429_vm1, %v2209_v53, -inf  ;;  %v1839_v13 = vpop.f32.mrf.mxu2 }
 0x1c8   : > { %v2634_v1 = vrot.slane %v2633_v48, 1  ;;  %v2770_v61 = vrot.slane %v2769_v10, 1  ;;  %v2267_v26 = vrot.slane %v2266_v37, 4  ;;  %v2452_v14 = vrot.slane %v2451_v29, 4  ;;  %v2010_v28 = vpop.f32.mrf.mxu0 }
 0x1c9   : > { %v2119_v58 = vpop.f32.mrf.mxu1  ;;  %v1840_v21 = vadd.f32 %v1839_v13, %v4927_v30  ;;  %v2011_v34 = vadd.f32 %v2010_v28, %v4845_v22  ;;  %v4216_v28 = vld [vmem:[%s4489_s23 + $0x264] sm:$0xf0] }
 0x1ca   : > { %v2635_v39 = vmax.f32 %v2633_v48, %v2634_v1  ;;  %v2771_v0 = vmax.f32 %v2769_v10, %v2770_v61  ;;  %v2268_v52 = vmax.f32 %v2266_v37, %v2267_v26  ;;  %v2453_v6 = vmax.f32 %v2451_v29, %v2452_v14 }
 0x1cb   : > { %v5048_v12 = vadd.f32 %v1948_v11, %v1840_v21  ;;  %v2120_v45 = vadd.f32 %v2119_v58, %v2011_v34  ;;  %2049 = vmatmul.bf16.gmra.mxu0 %v3736_v54  ;;  %v4213_v58 = vld [vmem:[%s4489_s23 + $0x254] sm:$0xf]  ;;  %v3761_v21 = vld [vmem:[%s4489_s23 + $0x268] sm:$0xf0] }
 0x1cc   : > { %2158 = vmatmul.bf16.gmra.mxu1 %v3740_v33  ;;  %v2735_v7 = vmax.f32 %v2734_v9, %v2635_v39  ;;  %v2871_v49 = vmax.f32 %v2870_v43, %v2771_v0  ;;  %v2269_v19 = vrot.slane %v2268_v52, 2  ;;  %v2454_v59 = vrot.slane %v2453_v6, 2  ;;  %v3759_v33 = vld [vmem:[%s4489_s23 + $0x250] sm:$0xf] }
 0x1cd   : > { %v2210_v63 = vmax.f32 %v2120_v45, 0.0 }
 0x1ce   : > { %v2750_v35 = vadd.f32 %v2735_v7, %v2614_v23  ;;  %v1951_v48 = vpop.f32.mrf.mxu3  ;;  %v2270_v43 = vmax.f32 %v2268_v52, %v2269_v19  ;;  %v2455_v1 = vmax.f32 %v2453_v6, %v2454_v59  ;;  %v3760_v7 = vor.u32 %v4216_v28, %v3759_v33 }
 0x1cf   : > { %v2273_v30 = vsel %vm2244_vm0, %v2210_v63, -inf  ;;  %v2458_v22 = vsel %vm2429_vm1, %v2210_v63, -inf  ;;  %v1842_v53 = vpop.f32.mrf.mxu2 }
 0x1d0   : > { %v5052_v10 = vadd.f32 %v2871_v49, %v2750_v35  ;;  %v2274_v37 = vrot.slane %v2273_v30, 4  ;;  %v2012_v29 = vpop.f32.mrf.mxu0  ;;  %v2459_v13 = vrot.slane %v2458_v22, 4  ;;  %v1843_v11 = vadd.f32 %v1842_v53, %v4941_v47 }
 0x1d1   : > { %v2121_v9 = vpop.f32.mrf.mxu1  ;;  %v2013_v23 = vadd.f32 %v2012_v29, %v4859_v36  ;;  %v2271_v39 = vrot.slane %v2270_v43, 1  ;;  %v3764_v49 = vor.u32 %v4213_v58, %v3761_v21  ;;  %v2456_v47 = vrot.slane %v2455_v1, 1 }
 0x1d2   : > { %v2275_v54 = vmax.f32 %v2273_v30, %v2274_v37  ;;  %v2460_v61 = vmax.f32 %v2458_v22, %v2459_v13  ;;  %v5057_v26 = vadd.f32 %v1951_v48, %v1843_v11 }
 0x1d3   : > { %v2122_v14 = vadd.f32 %v2121_v9, %v2013_v23  ;;  %v2272_v29 = vmax.f32 %v2270_v43, %v2271_v39 }
 0x1d4   : > { %v2276_v34 = vrot.slane %v2275_v54, 2  ;;  %v2461_v0 = vrot.slane %v2460_v61, 2 }
 0x1d5   : > { %v2211_v45 = vmax.f32 %v2122_v14, 0.0 }
 0x1d6   : > { %v2277_v52 = vmax.f32 %v2275_v54, %v2276_v34  ;;  %v2462_v19 = vmax.f32 %v2460_v61, %v2461_v0  ;;  %v1953_v35 = vpop.f32.mrf.mxu3  ;;  %v2457_v61 = vmax.f32 %v2455_v1, %v2456_v47 }
 0x1d7   : > { %v2280_v36 = vsel %vm2244_vm0, %v2211_v45, -inf  ;;  %v2465_v6 = vsel %vm2429_vm1, %v2211_v45, -inf  ;;  %v1844_v63 = vpop.f32.mrf.mxu2 }
 0x1d8   : > { %v2278_v59 = vrot.slane %v2277_v52, 1  ;;  %v2281_v30 = vrot.slane %v2280_v36, 4  ;;  %v2466_v22 = vrot.slane %v2465_v6, 4  ;;  %v1845_v53 = vadd.f32 %v1844_v63, %v4948_v44  ;;  %v2015_v48 = vpop.f32.mrf.mxu0 }
 0x1d9   : > { %v2124_v37 = vpop.f32.mrf.mxu1  ;;  %v2463_v9 = vrot.slane %v2462_v19, 1  ;;  %v2016_v13 = vadd.f32 %v2015_v48, %v4865_v60 }
 0x1da   : > { %v2279_v11 = vmax.f32 %v2277_v52, %v2278_v59  ;;  %v2282_v23 = vmax.f32 %v2280_v36, %v2281_v30  ;;  %v2467_v54 = vmax.f32 %v2465_v6, %v2466_v22  ;;  %v5066_v33 = vadd.f32 %v1953_v35, %v1845_v53 }
 0x1db   : > { %v2464_v14 = vmax.f32 %v2462_v19, %v2463_v9  ;;  %v2125_v28 = vadd.f32 %v2124_v37, %v2016_v13  ;;  %2054 = vmatmul.bf16.gmra.mxu0 %v3760_v7  ;;  %v4222_v9 = vld [vmem:[%s4489_s23 + $0x294] sm:$0xf0] }
 0x1dc   : > { %2163 = vmatmul.bf16.gmra.mxu1 %v3764_v49  ;;  %v2415_v58 = vmax.f32 %v2272_v29, %v2279_v11  ;;  %v2283_v21 = vrot.slane %v2282_v23, 2  ;;  %v2468_v34 = vrot.slane %v2467_v54, 2  ;;  %v3783_v29 = vld [vmem:[%s4489_s23 + $0x280] sm:$0xf] }
 0x1dd   : > { %v2600_v44 = vmax.f32 %v2457_v61, %v2464_v14  ;;  %v2212_v0 = vmax.f32 %v2125_v28, 0.0  ;;  %v3785_v61 = vld [vmem:[%s4489_s23 + $0x298] sm:$0xf0] }
 0x1de   : > { %v2284_v45 = vmax.f32 %v2282_v23, %v2283_v21  ;;  %v2469_v43 = vmax.f32 %v2467_v54, %v2468_v34  ;;  %v1956_v36 = vpop.f32.mrf.mxu3 }
 0x1df   : > { %v2636_v39 = vsel %vm2244_vm0, %v2212_v0, -inf  ;;  %v2772_v60 = vsel %vm2429_vm1, %v2212_v0, -inf  ;;  %v1847_v52 = vpop.f32.mrf.mxu2 }
 0x1e0   : > { %v2285_v1 = vrot.slane %v2284_v45, 1  ;;  %v2470_v47 = vrot.slane %v2469_v43, 1  ;;  %v2637_v19 = vrot.slane %v2636_v39, 4  ;;  %v2773_v7 = vrot.slane %v2772_v60, 4  ;;  %v2017_v49 = vpop.f32.mrf.mxu0 }
 0x1e1   : > { %v2126_v6 = vpop.f32.mrf.mxu1  ;;  %v1848_v63 = vadd.f32 %v1847_v52, %v4963_v5  ;;  %v2018_v35 = vadd.f32 %v2017_v49, %v4879_v38  ;;  %v4219_v5 = vld [vmem:[%s4489_s23 + $0x284] sm:$0xf] }
 0x1e2   : > { %v5072_v59 = vmax.f32 %v2284_v45, %v2285_v1  ;;  %v5074_v30 = vmax.f32 %v2469_v43, %v2470_v47  ;;  %v2638_v22 = vmax.f32 %v2636_v39, %v2637_v19  ;;  %v2774_v53 = vmax.f32 %v2772_v60, %v2773_v7 }
 0x1e3   : > { %v5076_v48 = vadd.f32 %v1956_v36, %v1848_v63  ;;  %v2127_v37 = vadd.f32 %v2126_v6, %v2018_v35  ;;  %v3784_v39 = vor.u32 %v4222_v9, %v3783_v29  ;;  %v3788_v60 = vor.u32 %v4219_v5, %v3785_v61 }
 0x1e4   : > { %v2416_v13 = vmax.f32 %v2415_v58, %v5072_v59  ;;  %v2601_v11 = vmax.f32 %v2600_v44, %v5074_v30  ;;  %v2639_v23 = vrot.slane %v2638_v22, 2  ;;  %v2775_v54 = vrot.slane %v2774_v53, 2 }
 0x1e5   : > { %v2213_v38 = vmax.f32 %v2127_v37, 0.0 }
 0x1e6   : > { %v2615_v14 = vadd.f32 %v2601_v11, %v2416_v13  ;;  %v2640_v28 = vmax.f32 %v2638_v22, %v2639_v23  ;;  %v2776_v21 = vmax.f32 %v2774_v53, %v2775_v54  ;;  %v1958_v43 = vpop.f32.mrf.mxu3  ;;  %v5091_v22 = vld [vmem:[%s5830_s4] ss:$0 sm:$0xff] }
 0x1e7   : > { %v2643_v34 = vsel %vm2244_vm0, %v2213_v38, -inf  ;;  %v2779_v0 = vsel %vm2429_vm1, %v2213_v38, -inf  ;;  %v1849_v45 = vpop.f32.mrf.mxu2  ;;  %v1635_v53 = vadd.f32 %v5091_v22, %v4627_v18 }
 0x1e8   : > { %v2641_v52 = vrot.slane %v2640_v28, 1  ;;  %v2777_v58 = vrot.slane %v2776_v21, 1  ;;  %v2644_v36 = vrot.slane %v2643_v34, 4  ;;  %v2780_v44 = vrot.slane %v2779_v0, 4  ;;  %v2020_v1 = vpop.f32.mrf.mxu0 }
 0x1e9   : > { %v2129_v47 = vpop.f32.mrf.mxu1  ;;  %v1850_v19 = vadd.f32 %v1849_v45, %v4970_v15  ;;  %v2021_v7 = vadd.f32 %v2020_v1, %v4885_v8  ;;  %v1744_v18 = vadd.f32 %v4625_v17, %v1635_v53 }
 0x1ea   : > { %v2642_v49 = vmax.f32 %v2640_v28, %v2641_v52  ;;  %v2778_v6 = vmax.f32 %v2776_v21, %v2777_v58  ;;  %v2645_v63 = vmax.f32 %v2643_v34, %v2644_v36  ;;  %v2781_v35 = vmax.f32 %v2779_v0, %v2780_v44 }
 0x1eb   : > { %v5095_v37 = vadd.f32 %v1958_v43, %v1850_v19  ;;  %v2130_v29 = vadd.f32 %v2129_v47, %v2021_v7  ;;  %2059 = vmatmul.bf16.gmra.mxu0 %v3784_v39  ;;  %v3807_v47 = vld [vmem:[%s4489_s23 + $0x2b0] sm:$0xf]  ;;  %v4228_v19 = vld [vmem:[%s4489_s23 + $0x2c4] sm:$0xf0] }
 0x1ec   : > { %2168 = vmatmul.bf16.gmra.mxu1 %v3788_v60  ;;  %v2736_v15 = vmax.f32 %v5072_v59, %v2642_v49  ;;  %v2872_v8 = vmax.f32 %v5074_v30, %v2778_v6  ;;  %v2646_v9 = vrot.slane %v2645_v63, 2  ;;  %v2782_v13 = vrot.slane %v2781_v35, 2  ;;  %v4225_v6 = vld [vmem:[%s4489_s23 + $0x2b4] sm:$0xf] }
 0x1ed   : > { %v2214_v11 = vmax.f32 %v2130_v29, 0.0  ;;  %v1637_v60 = vadd.f32 %v5091_v22, %v4642_v32 }
 0x1ee   : > { %v2647_v23 = vmax.f32 %v2645_v63, %v2646_v9  ;;  %v2783_v54 = vmax.f32 %v2781_v35, %v2782_v13  ;;  %v1961_v28 = vpop.f32.mrf.mxu3  ;;  %v3809_v63 = vld [vmem:[%s4489_s23 + $0x2c8] sm:$0xf0]  ;;  %v3808_v9 = vor.u32 %v4228_v19, %v3807_v47 }
 0x1ef   : > { %v2287_v5 = vsel %vm2244_vm0, %v2214_v11, -inf  ;;  %v2472_v61 = vsel %vm2429_vm1, %v2214_v11, -inf  ;;  %v1852_v38 = vpop.f32.mrf.mxu2 }
 0x1f0   : > { %v2648_v21 = vrot.slane %v2647_v23, 1  ;;  %v2784_v34 = vrot.slane %v2783_v54, 1  ;;  %v2288_v59 = vrot.slane %v2287_v5, 4  ;;  %v2473_v0 = vrot.slane %v2472_v61, 4  ;;  %v2022_v30 = vpop.f32.mrf.mxu0 }
 0x1f1   : > { %v2131_v45 = vpop.f32.mrf.mxu1  ;;  %v1853_v43 = vadd.f32 %v1852_v38, %v1744_v18  ;;  %v2023_v39 = vadd.f32 %v2022_v30, %v4899_v50  ;;  %v1746_v50 = vadd.f32 %v4640_v31, %v1637_v60 }
 0x1f2   : > { %v2649_v52 = vmax.f32 %v2647_v23, %v2648_v21  ;;  %v2785_v17 = vmax.f32 %v2783_v54, %v2784_v34  ;;  %v2289_v58 = vmax.f32 %v2287_v5, %v2288_v59  ;;  %v2474_v36 = vmax.f32 %v2472_v61, %v2473_v0 }
 0x1f3   : > { %v5105_v44 = vadd.f32 %v1961_v28, %v1853_v43  ;;  %v2132_v1 = vadd.f32 %v2131_v45, %v2023_v39  ;;  %v3812_v54 = vor.u32 %v4225_v6, %v3809_v63  ;;  %v1640_v5 = vadd.f32 %v5091_v22, %v4649_v42 }
 0x1f4   : > { %v2737_v7 = vmax.f32 %v2736_v15, %v2649_v52  ;;  %v2873_v49 = vmax.f32 %v2872_v8, %v2785_v17  ;;  %v2290_v29 = vrot.slane %v2289_v58, 2  ;;  %v2475_v32 = vrot.slane %v2474_v36, 2 }
 0x1f5   : > { %v2215_v35 = vmax.f32 %v2132_v1, 0.0  ;;  %v2894_v28 = vmul.f32 0.25, %v5052_v10 }
 0x1f6   : > { %v2751_v53 = vadd.f32 %v2737_v7, %v2615_v14  ;;  %v2291_v34 = vmax.f32 %v2289_v58, %v2290_v29  ;;  %v2476_v0 = vmax.f32 %v2474_v36, %v2475_v32 }
 0x1f7   : > { %v2294_v13 = vsel %vm2244_vm0, %v2215_v35, -inf  ;;  %v2479_v11 = vsel %vm2429_vm1, %v2215_v35, -inf  ;;  %v1854_v23 = vpop.f32.mrf.mxu2 }
 0x1f8   : > { %v2887_v15 = vadd.f32 %v2873_v49, %v2751_v53  ;;  %v2295_v8 = vrot.slane %v2294_v13, 4  ;;  %v2025_v61 = vpop.f32.mrf.mxu0  ;;  %v2480_v38 = vrot.slane %v2479_v11, 4  ;;  %v5116_v14 = vadd.f32 %v1854_v23, %v1746_v50 }
 0x1f9   : > { %v2134_v18 = vpop.f32.mrf.mxu1  ;;  %v2026_v31 = vadd.f32 %v2025_v61, %v4905_v25  ;;  %v2292_v52 = vrot.slane %v2291_v34, 1  ;;  %v1749_v25 = vadd.f32 %v4647_v41, %v1640_v5  ;;  %v2477_v1 = vrot.slane %v2476_v0, 1  ;;  %v3831_v5 = vld [vmem:[%s4489_s23 + $0x2e0] sm:$0xf] }
 0x1fa   : > { %v2895_v21 = vmul.f32 0.25, %v2887_v15  ;;  %v2296_v59 = vmax.f32 %v2294_v13, %v2295_v8  ;;  %v2481_v30 = vmax.f32 %v2479_v11, %v2480_v38  ;;  %v1642_v41 = vadd.f32 %v5091_v22, %v4664_v56  ;;  %v4234_v15 = vld [vmem:[%s4489_s23 + $0x2f4] sm:$0xf0]  ;;  %v4231_v38 = vld [vmem:[%s4489_s23 + $0x2e4] sm:$0xf] }
 0x1fb   : > { %v2135_v45 = vadd.f32 %v2134_v18, %v2026_v31  ;;  %2064 = vmatmul.bf16.gmra.mxu0 %v3808_v9  ;;  %v2293_v50 = vmax.f32 %v2291_v34, %v2292_v52  ;;  %v2478_v11 = vmax.f32 %v2476_v0, %v2477_v1  ;;  %v3833_v31 = vld [vmem:[%s4489_s23 + $0x2f8] sm:$0xf0] }
 0x1fc   : > { %2173 = vmatmul.bf16.gmra.mxu1 %v3812_v54  ;;  %v2297_v42 = vrot.slane %v2296_v59, 2  ;;  %v5121_v43 = vsel %vm2928_vm2, %v2895_v21, %v2894_v28  ;;  %v2482_v39 = vrot.slane %v2481_v30, 2 }
 0x1fd   : > { %v2216_v60 = vmax.f32 %v2135_v45, 0.0  ;;  %v3832_v45 = vor.u32 %v4234_v15, %v3831_v5 }
 0x1fe   : > { %v2298_v17 = vmax.f32 %v2296_v59, %v2297_v42  ;;  %v2483_v10 = vmax.f32 %v2481_v30, %v2482_v39  ;;  %v3836_v42 = vor.u32 %v4231_v38, %v3833_v31  ;;  %v1647_v38 = vadd.f32 %v5091_v22, %v4686_v20  ;;  %v3855_v20 = vld [vmem:[%s4489_s23 + $0x310] sm:$0xf] }
 0x1ff   : > { %v2301_v58 = vsel %vm2244_vm0, %v2216_v60, -inf  ;;  %v2486_v36 = vsel %vm2429_vm1, %v2216_v60, -inf  ;;  %v1857_v47 = vpop.f32.mrf.mxu2 }
 0x200   : > { %v2299_v19 = vrot.slane %v2298_v17, 1  ;;  %v2302_v7 = vrot.slane %v2301_v58, 4  ;;  %v2487_v49 = vrot.slane %v2486_v36, 4  ;;  %v5126_v6 = vadd.f32 %v1857_v47, %v1749_v25  ;;  %v2027_v63 = vpop.f32.mrf.mxu0 }
 0x201   : > { %v2136_v35 = vpop.f32.mrf.mxu1  ;;  %v2484_v53 = vrot.slane %v2483_v10, 1  ;;  %v2028_v29 = vadd.f32 %v2027_v63, %v4919_v24  ;;  %v1751_v24 = vadd.f32 %v4662_v55, %v1642_v41 }
 0x202   : > { %v2300_v9 = vmax.f32 %v2298_v17, %v2299_v19  ;;  %v2303_v32 = vmax.f32 %v2301_v58, %v2302_v7  ;;  %v2488_v13 = vmax.f32 %v2486_v36, %v2487_v49  ;;  %v1645_v7 = vadd.f32 %v5091_v22, %v4671_v3 }
 0x203   : > { %v2485_v23 = vmax.f32 %v2483_v10, %v2484_v53  ;;  %v2137_v54 = vadd.f32 %v2136_v35, %v2028_v29 }
 0x204   : > { %v2417_v8 = vmax.f32 %v2293_v50, %v2300_v9  ;;  %v2304_v61 = vrot.slane %v2303_v32, 2  ;;  %v2489_v18 = vrot.slane %v2488_v13, 2  ;;  %v1754_v3 = vadd.f32 %v4669_v2, %v1645_v7 }
 0x205   : > { %v2602_v28 = vmax.f32 %v2478_v11, %v2485_v23  ;;  %v2217_v56 = vmax.f32 %v2137_v54, 0.0  ;;  %v2919_v23 = vld [vmem:[%s5831_s5 + $0x78] sm:$0xff]  ;;  %v1818_v2 = vadd.f32 %v4943_v57, %v4841_v16  ;;  %v2917_v16 = vld [vmem:[%s5831_s5 + $0x68] sm:$0xff] }
 0x206   : > { %v2305_v21 = vmax.f32 %v2303_v32, %v2304_v61  ;;  %v2490_v59 = vmax.f32 %v2488_v13, %v2489_v18  ;;  %2935 = vmatpush.msra.mxu2 %v2919_v23  ;;  %v2914_v23 = vld [vmem:[%s5831_s5 + $0x50] sm:$0xff] }
 0x207   : > { %v2650_v34 = vsel %vm2244_vm0, %v2217_v56, -inf  ;;  %v2786_v30 = vsel %vm2429_vm1, %v2217_v56, -inf  ;;  %v1859_v0 = vpop.f32.mrf.mxu2  ;;  %v2918_v56 = vld [vmem:[%s5831_s5 + $0x70] sm:$0xff] }
 0x208   : > { %v2306_v39 = vrot.slane %v2305_v21, 1  ;;  %v2491_v60 = vrot.slane %v2490_v59, 1  ;;  %v2651_v52 = vrot.slane %v2650_v34, 4  ;;  %v2787_v17 = vrot.slane %v2786_v30, 4  ;;  %v2030_v25 = vpop.f32.mrf.mxu0  ;;  %2936 = vmatpush.msra.mxu2 %v2918_v56 }
 0x209   : > { %v2139_v1 = vpop.f32.mrf.mxu1  ;;  %v5138_v10 = vadd.f32 %v1859_v0, %v1751_v24  ;;  %v2031_v58 = vadd.f32 %v2030_v25, %v4925_v62  ;;  %v4240_v0 = vld [vmem:[%s4489_s23 + $0x324] sm:$0xf0] }
 0x20a   : > { %v5141_v36 = vmax.f32 %v2305_v21, %v2306_v39  ;;  %v5143_v55 = vmax.f32 %v2490_v59, %v2491_v60  ;;  %v2652_v47 = vmax.f32 %v2650_v34, %v2651_v52  ;;  %v2788_v19 = vmax.f32 %v2786_v30, %v2787_v17  ;;  %v4237_v39 = vld [vmem:[%s4489_s23 + $0x314] sm:$0xf]  ;;  %v3857_v60 = vld [vmem:[%s4489_s23 + $0x328] sm:$0xf0]  ;;  %2937 = vmatpush.msra.mxu2 %v2917_v16  ;;  %v2916_v17 = vld [vmem:[%s5831_s5 + $0x60] sm:$0xff] }
 0x20b   : > { %v2140_v49 = vadd.f32 %v2139_v1, %v2031_v58  ;;  %2069 = vmatmul.bf16.gmra.mxu0 %v3832_v45  ;;  %v5869_v25 = vld [vmem:[#allocation19_spill] sm:$0xff] }
 0x20c   : > { %2178 = vmatmul.bf16.gmra.mxu1 %v3836_v42  ;;  %v2418_v63 = vmax.f32 %v2417_v8, %v5141_v36  ;;  %v2603_v35 = vmax.f32 %v2602_v28, %v5143_v55  ;;  %v2653_v41 = vrot.slane %v2652_v47, 2  ;;  %v2789_v53 = vrot.slane %v2788_v19, 2  ;;  %2938 = vmatpush.msra.mxu2 %v2916_v17  ;;  %v5874_v16 = vld [vmem:[#allocation3_spill] sm:$0xff]  ;;  %v2911_v17 = vld [vmem:[%s5831_s5 + $0x38] sm:$0xff] }
 0x20d   : > { %v2218_v29 = vmax.f32 %v2140_v49, 0.0  ;;  %v1927_v1 = vadd.f32 %v5869_v25, %v1818_v2  ;;  %v5876_v25 = vld [vmem:[#allocation6_spill] sm:$0xff] }
 0x20e   : > { %v5149_v62 = vadd.f32 %v2603_v35, %v2418_v63  ;;  %v2654_v50 = vmax.f32 %v2652_v47, %v2653_v41  ;;  %v2790_v9 = vmax.f32 %v2788_v19, %v2789_v53  ;;  %v5870_v19 = vld [vmem:[#allocation2_spill] sm:$0xff]  ;;  %v3856_v63 = vor.u32 %v4240_v0, %v3855_v20  ;;  %v2915_v41 = vld [vmem:[%s5831_s5 + $0x58] sm:$0xff] }
 0x20f   : > { %v2657_v32 = vsel %vm2244_vm0, %v2218_v29, -inf  ;;  %v2793_v13 = vsel %vm2429_vm1, %v2218_v29, -inf  ;;  %v1862_v11 = vpop.f32.mrf.mxu2  ;;  %v1756_v7 = vadd.f32 %v5870_v19, %v1647_v38  ;;  %v3860_v35 = vor.u32 %v4237_v39, %v3857_v60  ;;  %2939 = vmatpush.msra.mxu2 %v2915_v41  ;;  %v5873_v38 = vld [vmem:[#allocation20_spill] sm:$0xff] }
 0x210   : > { %v2655_v54 = vrot.slane %v2654_v50, 1  ;;  %v2791_v5 = vrot.slane %v2790_v9, 1  ;;  %v2658_v15 = vrot.slane %v2657_v32, 4  ;;  %v2794_v8 = vrot.slane %v2793_v13, 4  ;;  %v2032_v61 = vpop.f32.mrf.mxu0  ;;  %v2910_v41 = vld [vmem:[%s5831_s5 + $0x30] sm:$0xff] }
 0x211   : > { %v2141_v18 = vpop.f32.mrf.mxu1  ;;  %v5161_v31 = vadd.f32 %v1862_v11, %v1754_v3  ;;  %v2033_v28 = vadd.f32 %v2032_v61, %v4939_v40  ;;  %2940 = vmatpush.msra.mxu2 %v2914_v23 }
 0x212   : > { %v2656_v21 = vmax.f32 %v2654_v50, %v2655_v54  ;;  %v2792_v59 = vmax.f32 %v2790_v9, %v2791_v5  ;;  %v2659_v24 = vmax.f32 %v2657_v32, %v2658_v15  ;;  %v2795_v34 = vmax.f32 %v2793_v13, %v2794_v8  ;;  %v5871_v54 = vld [vmem:[#allocation4_spill] sm:$0xff] }
 0x213   : > { %v2142_v30 = vadd.f32 %v2141_v18, %v2033_v28  ;;  %v1650_v5 = vadd.f32 %v5091_v22, %v5871_v54  ;;  %v5872_v18 = vld [vmem:[#allocation11_spill] sm:$0xff]  ;;  %v4243_v54 = vld [vmem:[%s4489_s23 + $0x344] sm:$0xf] }
 0x214   : > { %v2738_v57 = vmax.f32 %v5141_v36, %v2656_v21  ;;  %v2874_v40 = vmax.f32 %v5143_v55, %v2792_v59  ;;  %v2660_v45 = vrot.slane %v2659_v24, 2  ;;  %v2796_v42 = vrot.slane %v2795_v34, 2  ;;  %v2913_v21 = vld [vmem:[%s5831_s5 + $0x48] sm:$0xff] }
 0x215   : > { %v2219_v52 = vmax.f32 %v2142_v30, 0.0  ;;  %v1820_v2 = vadd.f32 %v5873_v38, %v5872_v18  ;;  %2941 = vmatpush.msra.mxu2 %v2913_v21  ;;  %v2912_v30 = vld [vmem:[%s5831_s5 + $0x40] sm:$0xff]  ;;  %v5880_v21 = vld [vmem:[#allocation5_spill] sm:$0xff] }
 0x216   : > { %v2661_v58 = vmax.f32 %v2659_v24, %v2660_v45  ;;  %v2797_v47 = vmax.f32 %v2795_v34, %v2796_v42  ;;  %v1759_v45 = vadd.f32 %v5874_v16, %v1650_v5  ;;  %v5875_v42 = vld [vmem:[#allocation21_spill] sm:$0xff] }
 0x217   : > { %v2308_v36 = vsel %vm2244_vm0, %v2219_v52, -inf  ;;  %v2493_v55 = vsel %vm2429_vm1, %v2219_v52, -inf  ;;  %v1864_v49 = vpop.f32.mrf.mxu2  ;;  %2942 = vmatpush.msra.mxu2 %v2912_v30  ;;  %v1929_v39 = vadd.f32 %v5875_v42, %v1820_v2  ;;  %v3881_v5 = vld [vmem:[%s4489_s23 + $0x358] sm:$0xf0] }
 0x218   : > { %v2662_v53 = vrot.slane %v2661_v58, 1  ;;  %v2798_v29 = vrot.slane %v2797_v47, 1  ;;  %v2309_v50 = vrot.slane %v2308_v36, 4  ;;  %v2494_v9 = vrot.slane %v2493_v55, 4  ;;  %v2035_v32 = vpop.f32.mrf.mxu0 }
 0x219   : > { %v2144_v13 = vpop.f32.mrf.mxu1  ;;  %v5186_v3 = vadd.f32 %v1864_v49, %v1756_v7  ;;  %v2036_v11 = vadd.f32 %v2035_v32, %v1927_v1  ;;  %v5877_v1 = vld [vmem:[#allocation12_spill] sm:$0xff]  ;;  %2943 = vmatpush.msra.mxu2 %v2911_v17 }
 0x21a   : > { %v2663_v15 = vmax.f32 %v2661_v58, %v2662_v53  ;;  %v2799_v8 = vmax.f32 %v2797_v47, %v2798_v29  ;;  %v2310_v61 = vmax.f32 %v2308_v36, %v2309_v50  ;;  %v2495_v28 = vmax.f32 %v2493_v55, %v2494_v9  ;;  %v5878_v58 = vld [vmem:[#allocation22_spill] sm:$0xff]  ;;  %v4246_v9 = vld [vmem:[%s4489_s23 + $0x354] sm:$0xf0] }
 0x21b   : > { %v2145_v56 = vadd.f32 %v2144_v13, %v2036_v11  ;;  %2074 = vmatmul.bf16.gmra.mxu0 %v3856_v63  ;;  %v1823_v47 = vadd.f32 %v5878_v58, %v5877_v1  ;;  %v3879_v50 = vld [vmem:[%s4489_s23 + $0x340] sm:$0xf]  ;;  %2944 = vmatpush.msra.mxu2 %v2910_v41  ;;  %v5882_v58 = vld [vmem:[#allocation13_spill] sm:$0xff] }
 0x21c   : > { %2183 = vmatmul.bf16.gmra.mxu1 %v3860_v35  ;;  %v2739_v59 = vmax.f32 %v2738_v57, %v2663_v15  ;;  %v2875_v24 = vmax.f32 %v2874_v40, %v2799_v8  ;;  %v2311_v0 = vrot.slane %v2310_v61, 2  ;;  %v2496_v60 = vrot.slane %v2495_v28, 2  ;;  %v2909_v15 = vld [vmem:[%s5831_s5 + $0x28] sm:$0xff] }
 0x21d   : > { %v2220_v34 = vmax.f32 %v2145_v56, 0.0  ;;  %2945 = vmatpush.msra.mxu2 %v2909_v15  ;;  %v3880_v30 = vor.u32 %v4246_v9, %v3879_v50 }
 0x21e   : > { %v2752_v20 = vadd.f32 %v2739_v59, %v5149_v62  ;;  %v1652_v62 = vadd.f32 %v5091_v22, %v5876_v25  ;;  %v2312_v53 = vmax.f32 %v2310_v61, %v2311_v0  ;;  %v2497_v13 = vmax.f32 %v2495_v28, %v2496_v60  ;;  %v5879_v61 = vld [vmem:[#allocation23_spill] sm:$0xff]  ;;  %v2908_v59 = vld [vmem:[%s5831_s5 + $0x20] sm:$0xff] }
 0x21f   : > { %v2315_v52 = vsel %vm2244_vm0, %v2220_v34, -inf  ;;  %v2500_v57 = vsel %vm2429_vm1, %v2220_v34, -inf  ;;  %v1867_v40 = vpop.f32.mrf.mxu2  ;;  %v1932_v38 = vadd.f32 %v5879_v61, %v1823_v47  ;;  %2946 = vmatpush.msra.mxu2 %v2908_v59  ;;  %v5883_v47 = vld [vmem:[#allocation24_spill] sm:$0xff]  ;;  %v5884_v61 = vld [vmem:[#allocation25_spill] sm:$0xff] }
 0x220   : > { %v2888_v19 = vadd.f32 %v2875_v24, %v2752_v20  ;;  %v2316_v7 = vrot.slane %v2315_v52, 4  ;;  %v2037_v36 = vpop.f32.mrf.mxu0  ;;  %v2501_v49 = vrot.slane %v2500_v57, 4  ;;  %v5213_v63 = vadd.f32 %v1867_v40, %v1759_v45 }
 0x221   : > { %v2146_v55 = vpop.f32.mrf.mxu1  ;;  %v2038_v35 = vadd.f32 %v2037_v36, %v1929_v39  ;;  %v1761_v28 = vadd.f32 %v5880_v21, %v1652_v62  ;;  %v2313_v24 = vrot.slane %v2312_v53, 1  ;;  %v3884_v20 = vor.u32 %v4243_v54, %v3881_v5  ;;  %v2907_v39 = vld [vmem:[%s5831_s5 + $0x18] sm:$0xff]  ;;  %v5881_v62 = vld [vmem:[#allocation8_spill] sm:$0xff]  ;;  %v5885_v21 = vld [vmem:[#allocation7_spill] sm:$0xff] }
 0x222   : > { %v2317_v29 = vmax.f32 %v2315_v52, %v2316_v7  ;;  %v2896_v32 = vmul.f32 0.25, %v2888_v19  ;;  %v2502_v11 = vmax.f32 %v2500_v57, %v2501_v49  ;;  %v2498_v0 = vrot.slane %v2497_v13, 1  ;;  %2947 = vmatpush.msra.mxu2 %v2907_v39 }
 0x223   : > { %v2147_v23 = vadd.f32 %v2146_v55, %v2038_v35  ;;  %v1655_v1 = vadd.f32 %v5091_v22, %v5881_v62  ;;  %v1825_v19 = vadd.f32 %v5883_v47, %v5882_v58  ;;  %v2906_v55 = vld [vmem:[%s5831_s5 + $0x10] sm:$0xff]  ;;  %v2314_v49 = vmax.f32 %v2312_v53, %v2313_v24  ;;  %v2905_v22 = vld [vmem:[%s5831_s5 + $0x8] sm:$0xff]  ;;  %v2904_v53 = vld [vmem:[%s5831_s5] sm:$0xff] }
 0x224   : > { %v2318_v8 = vrot.slane %v2317_v29, 2  ;;  %v5227_v18 = vsel %vm2930_vm3, %v2896_v32, %v5121_v43  ;;  %v2503_v2 = vrot.slane %v2502_v11, 2  ;;  %2948 = vmatpush.msra.mxu2 %v2906_v55  ;;  %v2499_v50 = vmax.f32 %v2497_v13, %v2498_v0  ;;  %v4252_v58 = vld [vmem:[%s4489_s23 + $0x384] sm:$0xf0]  ;;  %v4249_v55 = vld [vmem:[%s4489_s23 + $0x374] sm:$0xf] }
 0x225   : > { %v2221_v56 = vmax.f32 %v2147_v23, 0.0 }
 0x226   : > { %v2319_v34 = vmax.f32 %v2317_v29, %v2318_v8  ;;  %v2504_v16 = vmax.f32 %v2502_v11, %v2503_v2  ;;  %2949 = vmatpush.msra.mxu2 %v2905_v22 }
 0x227   : > { %v2322_v43 = vsel %vm2244_vm0, %v2221_v56, -inf  ;;  %v2507_v45 = vsel %vm2429_vm1, %v2221_v56, -inf  ;;  %v1869_v42 = vpop.f32.mrf.mxu2 }
 0x228   : > { %v2320_v60 = vrot.slane %v2319_v34, 1  ;;  %v2323_v52 = vrot.slane %v2322_v43, 4  ;;  %v2508_v57 = vrot.slane %v2507_v45, 4  ;;  %v5239_v40 = vadd.f32 %v1869_v42, %v1761_v28  ;;  %v2040_v17 = vpop.f32.mrf.mxu0  ;;  %2950 = vmatpush.msra.mxu2 %v2904_v53 }
 0x229   : > { %v2149_v25 = vpop.f32.mrf.mxu1  ;;  %v2505_v7 = vrot.slane %v2504_v16, 1  ;;  %v2041_v36 = vadd.f32 %v2040_v17, %v1932_v38  ;;  %v1934_v38 = vadd.f32 %v5884_v61, %v1825_v19  ;;  %v1764_v28 = vadd.f32 %v5885_v21, %v1655_v1  ;;  %v3903_v1 = vld [vmem:[%s4489_s23 + $0x370] sm:$0xf] }
 0x22a   : > { %v2321_v35 = vmax.f32 %v2319_v34, %v2320_v60  ;;  %v2324_v41 = vmax.f32 %v2322_v43, %v2323_v52  ;;  %v2509_v29 = vmax.f32 %v2507_v45, %v2508_v57  ;;  %v5886_v43 = vld [vmem:[#allocation14_spill] sm:$0xff] }
 0x22b   : > { %v2506_v9 = vmax.f32 %v2504_v16, %v2505_v7  ;;  %v2150_v32 = vadd.f32 %v2149_v25, %v2041_v36  ;;  %2079 = vmatmul.bf16.gmra.mxu0 %v3880_v30  ;;  %v5887_v45 = vld [vmem:[#allocation26_spill] sm:$0xff] }
 0x22c   : > { %2188 = vmatmul.bf16.gmra.mxu1 %v3884_v20  ;;  %v2419_v11 = vmax.f32 %v2314_v49, %v2321_v35  ;;  %v2325_v23 = vrot.slane %v2324_v41, 2  ;;  %v2510_v54 = vrot.slane %v2509_v29, 2  ;;  %v1828_v42 = vadd.f32 %v5887_v45, %v5886_v43  ;;  %v3905_v49 = vld [vmem:[%s4489_s23 + $0x388] sm:$0xf0] }
 0x22d   : > { %v2604_v5 = vmax.f32 %v2499_v50, %v2506_v9  ;;  %v2222_v15 = vmax.f32 %v2150_v32, 0.0 }
 0x22e   : > { %v2326_v8 = vmax.f32 %v2324_v41, %v2325_v23  ;;  %v2511_v13 = vmax.f32 %v2509_v29, %v2510_v54  ;;  %v5888_v41 = vld [vmem:[#allocation27_spill] sm:$0xff]  ;;  %v3904_v54 = vor.u32 %v4252_v58, %v3903_v1 }
 0x22f   : > { %v2664_v2 = vsel %vm2244_vm0, %v2222_v15, -inf  ;;  %v2800_v56 = vsel %vm2429_vm1, %v2222_v15, -inf  ;;  %v1872_v59 = vpop.f32.mrf.mxu2  ;;  %v1937_v29 = vadd.f32 %v5888_v41, %v1828_v42  ;;  %v3908_v15 = vor.u32 %v4249_v55, %v3905_v49  ;;  %v5893_v55 = vld [vmem:[#allocation30_spill] sm:$0xff] }
 0x230   : > { %v2327_v24 = vrot.slane %v2326_v8, 1  ;;  %v2512_v34 = vrot.slane %v2511_v13, 1  ;;  %v2665_v30 = vrot.slane %v2664_v2, 4  ;;  %v2801_v20 = vrot.slane %v2800_v56, 4  ;;  %v2042_v0 = vpop.f32.mrf.mxu0 }
 0x231   : > { %v2151_v16 = vpop.f32.mrf.mxu1  ;;  %v5260_v39 = vadd.f32 %v1872_v59, %v1764_v28  ;;  %v2043_v60 = vadd.f32 %v2042_v0, %v1934_v38  ;;  %v5889_v59 = vld [vmem:[#allocation15_spill] sm:$0xff] }
 0x232   : > { %v2328_v52 = vmax.f32 %v2326_v8, %v2327_v24  ;;  %v2513_v57 = vmax.f32 %v2511_v13, %v2512_v34  ;;  %v2666_v17 = vmax.f32 %v2664_v2, %v2665_v30  ;;  %v2802_v25 = vmax.f32 %v2800_v56, %v2801_v20  ;;  %v5890_v24 = vld [vmem:[#allocation28_spill] sm:$0xff] }
 0x233   : > { %v2152_v62 = vadd.f32 %v2151_v16, %v2043_v60  ;;  %v1830_v34 = vadd.f32 %v5890_v24, %v5889_v59 }
 0x234   : > { %v2420_v47 = vmax.f32 %v2419_v11, %v2328_v52  ;;  %v2605_v19 = vmax.f32 %v2604_v5, %v2513_v57  ;;  %v2667_v7 = vrot.slane %v2666_v17, 2  ;;  %v2803_v36 = vrot.slane %v2802_v25, 2 }
 0x235   : > { %v2223_v35 = vmax.f32 %v2152_v62, 0.0 }
 0x236   : > { %v2617_v50 = vadd.f32 %v2605_v19, %v2420_v47  ;;  %v2668_v9 = vmax.f32 %v2666_v17, %v2667_v7  ;;  %v2804_v32 = vmax.f32 %v2802_v25, %v2803_v36  ;;  %v5891_v17 = vld [vmem:[#allocation29_spill] sm:$0xff]  ;;  %v5892_v36 = vld [vmem:[#allocation16_spill] sm:$0xff] }
 0x237   : > { %v2671_v22 = vsel %vm2244_vm0, %v2223_v35, -inf  ;;  %v2807_v23 = vsel %vm2429_vm1, %v2223_v35, -inf  ;;  %v1939_v25 = vadd.f32 %v5891_v17, %v1830_v34  ;;  %v1833_v49 = vadd.f32 %v5893_v55, %v5892_v36 }
 0x238   : > { %v2669_v53 = vrot.slane %v2668_v9, 1  ;;  %v2805_v8 = vrot.slane %v2804_v32, 1  ;;  %v2672_v11 = vrot.slane %v2671_v22, 4  ;;  %v2808_v5 = vrot.slane %v2807_v23, 4  ;;  %v2045_v13 = vpop.f32.mrf.mxu0 }
 0x239   : > { %v2154_v61 = vpop.f32.mrf.mxu1  ;;  %v2046_v38 = vadd.f32 %v2045_v13, %v1937_v29 }
 0x23a   : > { %v2670_v2 = vmax.f32 %v2668_v9, %v2669_v53  ;;  %v2806_v56 = vmax.f32 %v2804_v32, %v2805_v8  ;;  %v2673_v21 = vmax.f32 %v2671_v22, %v2672_v11  ;;  %v2809_v28 = vmax.f32 %v2807_v23, %v2808_v5  ;;  %v3927_v23 = vld [vmem:[%s4489_s23 + $0x3a0] sm:$0xf]  ;;  %v4258_v53 = vld [vmem:[%s4489_s23 + $0x3b4] sm:$0xf0]  ;;  %v4255_v8 = vld [vmem:[%s4489_s23 + $0x3a4] sm:$0xf] }
 0x23b   : > { %v2155_v30 = vadd.f32 %v2154_v61, %v2046_v38  ;;  %2084 = vmatmul.bf16.gmra.mxu0 %v3904_v54  ;;  %v3929_v11 = vld [vmem:[%s4489_s23 + $0x3b8] sm:$0xf0]  ;;  %v5894_v38 = vld [vmem:[#allocation31_spill] sm:$0xff]  ;;  %v3928_v59 = vor.u32 %v4258_v53, %v3927_v23  ;;  %s3447_s23 = sshll.u32 %s4438_s22, 1 }
 0x23c   : > { %2193 = vmatmul.bf16.gmra.mxu1 %v3908_v15  ;;  %v2740_v20 = vmax.f32 %v2328_v52, %v2670_v2  ;;  %v2876_v0 = vmax.f32 %v2513_v57, %v2806_v56  ;;  %v2674_v16 = vrot.slane %v2673_v21, 2  ;;  %v2810_v43 = vrot.slane %v2809_v28, 2  ;;  %p5385_p4 = scmp.lt.s32.totalorder %s3447_s23, 3 }
 0x23d   : > { %v2224_v45 = vmax.f32 %v2155_v30, 0.0  ;;  %v1942_v2 = vadd.f32 %v5894_v38, %v1833_v49  ;;  %v3932_v24 = vor.u32 %v4255_v8, %v3929_v11 }
 0x23e   : > { %v2675_v42 = vmax.f32 %v2673_v21, %v2674_v16  ;;  %v2811_v60 = vmax.f32 %v2809_v28, %v2810_v43  ;;  %s5901_s23 = smov (!%p5385_p4, %s3447_s23), 3 }
 0x23f   : > { %v2329_v62 = vsel %vm2244_vm0, %v2224_v45, -inf  ;;  %v2514_v1 = vsel %vm2429_vm1, %v2224_v45, -inf  ;;  %s4137_s15 = sshll.u32 %s5901_s23, 4 }
 0x240   : > { %v2676_v58 = vrot.slane %v2675_v42, 1  ;;  %v2812_v47 = vrot.slane %v2811_v60, 1  ;;  %v2330_v19 = vrot.slane %v2329_v62, 4  ;;  %v2515_v52 = vrot.slane %v2514_v1, 4  ;;  %v2047_v57 = vpop.f32.mrf.mxu0  ;;  %s5448_s25 = scalar_lea.vmem %s5827_s1, %s4137_s15  ;;  %s5812_s29 = scalar_lea.vmem %s5838_s12, %s4137_s15 }
 0x241   : > { %v2156_v7 = vpop.f32.mrf.mxu1  ;;  %v2048_v35 = vadd.f32 %v2047_v57, %v1939_v25  ;;  %v5895_v25 = vld [vmem:[#allocation17_spill] sm:$0xff] }
 0x242   : > { %v2677_v41 = vmax.f32 %v2675_v42, %v2676_v58  ;;  %v2813_v29 = vmax.f32 %v2811_v60, %v2812_v47  ;;  %v2331_v9 = vmax.f32 %v2329_v62, %v2330_v19  ;;  %v2516_v32 = vmax.f32 %v2514_v1, %v2515_v52 }
 0x243   : > { %v2157_v22 = vadd.f32 %v2156_v7, %v2048_v35 }
 0x244   : > { %v2741_v54 = vmax.f32 %v2740_v20, %v2677_v41  ;;  %v2877_v15 = vmax.f32 %v2876_v0, %v2813_v29  ;;  %v2332_v5 = vrot.slane %v2331_v9, 2  ;;  %v2517_v13 = vrot.slane %v2516_v32, 2 }
 0x245   : > { %v2225_v61 = vmax.f32 %v2157_v22, 0.0 }
 0x246   : > { %v2753_v56 = vadd.f32 %v2741_v54, %v2617_v50  ;;  %v2333_v0 = vmax.f32 %v2331_v9, %v2332_v5  ;;  %v2518_v43 = vmax.f32 %v2516_v32, %v2517_v13  ;;  %v1835_v50 = vadd.f32 %v5020_v4, %v5895_v25  ;;  %v5896_v13 = vld [vmem:[#allocation18_spill] sm:$0xff] }
 0x247   : > { %v2336_v21 = vsel %vm2244_vm0, %v2225_v61, -inf  ;;  %v2521_v28 = vsel %vm2429_vm1, %v2225_v61, -inf }
 0x248   : > { %v2337_v34 = vrot.slane %v2336_v21, 4  ;;  %v2522_v30 = vrot.slane %v2521_v28, 4  ;;  %v2050_v16 = vpop.f32.mrf.mxu0  ;;  %v2889_v42 = vadd.f32 %v2877_v15, %v2753_v56  ;;  %v2334_v19 = vrot.slane %v2333_v0, 1 }
 0x249   : > { %v2159_v20 = vpop.f32.mrf.mxu1  ;;  %v2051_v45 = vadd.f32 %v2050_v16, %v1942_v2  ;;  %v2519_v52 = vrot.slane %v2518_v43, 1  ;;  %v1944_v49 = vadd.f32 %v5022_v51, %v1835_v50  ;;  %v1838_v51 = vadd.f32 %v5033_v27, %v5896_v13 }
 0x24a   : > { %v2338_v60 = vmax.f32 %v2336_v21, %v2337_v34  ;;  %v2523_v17 = vmax.f32 %v2521_v28, %v2522_v30  ;;  %v2897_v1 = vmul.f32 0.25, %v2889_v42  ;;  %v2335_v54 = vmax.f32 %v2333_v0, %v2334_v19 }
 0x24b   : > { %v2160_v62 = vadd.f32 %v2159_v20, %v2051_v45  ;;  %2089 = vmatmul.bf16.gmra.mxu0 %v3928_v59  ;;  %v2520_v15 = vmax.f32 %v2518_v43, %v2519_v52  ;;  %v1947_v34 = vadd.f32 %v5035_v46, %v1838_v51 }
 0x24c   : > { %2198 = vmatmul.bf16.gmra.mxu1 %v3932_v24  ;;  %v2339_v58 = vrot.slane %v2338_v60, 2  ;;  %v2524_v47 = vrot.slane %v2523_v17, 2  ;;  %v2933_v7 = vsel %vm2932_vm4, %v2897_v1, %v5227_v18 }
 0x24d   : > { %v2226_v57 = vmax.f32 %v2160_v62, 0.0  ;;  %2951 = vmatmul.f32.vlgmr.msra.gmra.mxu2 %v2933_v7 }
 0x24e   : > { %v2340_v36 = vmax.f32 %v2338_v60, %v2339_v58  ;;  %v2525_v55 = vmax.f32 %v2523_v17, %v2524_v47 }
 0x24f   : > { %v2343_v35 = vsel %vm2244_vm0, %v2226_v57, -inf  ;;  %v2528_v4 = vsel %vm2429_vm1, %v2226_v57, -inf }
 0x250   : > { %v2341_v41 = vrot.slane %v2340_v36, 1  ;;  %v2526_v29 = vrot.slane %v2525_v55, 1  ;;  %v2344_v9 = vrot.slane %v2343_v35, 4  ;;  %v2529_v32 = vrot.slane %v2528_v4, 4  ;;  %v2052_v22 = vpop.f32.mrf.mxu0 }
 0x251   : > { %v2161_v23 = vpop.f32.mrf.mxu1  ;;  %v2053_v53 = vadd.f32 %v2052_v22, %v1944_v49 }
 0x252   : > { %v2342_v8 = vmax.f32 %v2340_v36, %v2341_v41  ;;  %v2527_v18 = vmax.f32 %v2525_v55, %v2526_v29  ;;  %v2345_v11 = vmax.f32 %v2343_v35, %v2344_v9  ;;  %v2530_v5 = vmax.f32 %v2528_v4, %v2529_v32 }
 0x253   : > { %v2162_v61 = vadd.f32 %v2161_v23, %v2053_v53 }
 0x254   : > { %v2421_v38 = vmax.f32 %v2335_v54, %v2342_v8  ;;  %v2606_v2 = vmax.f32 %v2520_v15, %v2527_v18  ;;  %v2346_v56 = vrot.slane %v2345_v11, 2  ;;  %v2531_v21 = vrot.slane %v2530_v5, 2 }
 0x255   : > { %v2227_v28 = vmax.f32 %v2162_v61, 0.0 }
 0x256   : > { %v2347_v59 = vmax.f32 %v2345_v11, %v2346_v56  ;;  %v2532_v24 = vmax.f32 %v2530_v5, %v2531_v21 }
 0x257   : > { %v2678_v30 = vsel %vm2244_vm0, %v2227_v28, -inf  ;;  %v2814_v16 = vsel %vm2429_vm1, %v2227_v28, -inf }
 0x258   : > { %v2348_v20 = vrot.slane %v2347_v59, 1  ;;  %v2533_v0 = vrot.slane %v2532_v24, 1  ;;  %v2679_v43 = vrot.slane %v2678_v30, 4  ;;  %v2815_v45 = vrot.slane %v2814_v16, 4  ;;  %v2055_v42 = vpop.f32.mrf.mxu0 }
 0x259   : > { %v2164_v27 = vpop.f32.mrf.mxu1  ;;  %v2056_v60 = vadd.f32 %v2055_v42, %v1947_v34 }
 0x25a   : > { %v2349_v17 = vmax.f32 %v2347_v59, %v2348_v20  ;;  %v2534_v25 = vmax.f32 %v2532_v24, %v2533_v0  ;;  %v2680_v50 = vmax.f32 %v2678_v30, %v2679_v43  ;;  %v2816_v62 = vmax.f32 %v2814_v16, %v2815_v45 }
 0x25b   : > { %v2165_v1 = vadd.f32 %v2164_v27, %v2056_v60 }
 0x25c   : > { %v2422_v58 = vmax.f32 %v2421_v38, %v2349_v17  ;;  %v2607_v47 = vmax.f32 %v2606_v2, %v2534_v25  ;;  %v2681_v19 = vrot.slane %v2680_v50, 2  ;;  %v2817_v46 = vrot.slane %v2816_v62, 2 }
 0x25d   : > { %v2228_v52 = vmax.f32 %v2165_v1, 0.0 }
 0x25e   : > { %v2618_v57 = vadd.f32 %v2607_v47, %v2422_v58  ;;  %v2682_v7 = vmax.f32 %v2680_v50, %v2681_v19  ;;  %v2818_v36 = vmax.f32 %v2816_v62, %v2817_v46 }
 0x25f   : > { %v2685_v55 = vsel %vm2244_vm0, %v2228_v52, -inf  ;;  %v2821_v49 = vsel %vm2429_vm1, %v2228_v52, -inf }
 0x260   : > { %v2683_v35 = vrot.slane %v2682_v7, 1  ;;  %v2819_v4 = vrot.slane %v2818_v36, 1  ;;  %v2686_v41 = vrot.slane %v2685_v55, 4  ;;  %v2822_v29 = vrot.slane %v2821_v49, 4  ;;  %v2057_v9 = vpop.f32.mrf.mxu0 }
 0x261   : > { %v2166_v32 = vpop.f32.mrf.mxu1  ;;  %v2058_v22 = vadd.f32 %v2057_v9, %v5048_v12 }
 0x262   : > { %v2684_v23 = vmax.f32 %v2682_v7, %v2683_v35  ;;  %v2820_v54 = vmax.f32 %v2818_v36, %v2819_v4  ;;  %v2687_v15 = vmax.f32 %v2685_v55, %v2686_v41  ;;  %v2823_v53 = vmax.f32 %v2821_v49, %v2822_v29 }
 0x263   : > { %v2167_v8 = vadd.f32 %v2166_v32, %v2058_v22 }
 0x264   : > { %v2742_v18 = vmax.f32 %v2349_v17, %v2684_v23  ;;  %v2878_v11 = vmax.f32 %v2534_v25, %v2820_v54  ;;  %v2688_v5 = vrot.slane %v2687_v15, 2  ;;  %v2824_v13 = vrot.slane %v2823_v53, 2 }
 0x265   : > { %v2229_v51 = vmax.f32 %v2167_v8, 0.0 }
 0x266   : > { %v2689_v61 = vmax.f32 %v2687_v15, %v2688_v5  ;;  %v2825_v38 = vmax.f32 %v2823_v53, %v2824_v13 }
 0x267   : > { %v2350_v2 = vsel %vm2244_vm0, %v2229_v51, -inf  ;;  %v2535_v56 = vsel %vm2429_vm1, %v2229_v51, -inf }
 0x268   : > { %v2690_v21 = vrot.slane %v2689_v61, 1  ;;  %v2826_v28 = vrot.slane %v2825_v38, 1  ;;  %v2351_v59 = vrot.slane %v2350_v2, 4  ;;  %v2536_v12 = vrot.slane %v2535_v56, 4  ;;  %v2060_v24 = vpop.f32.mrf.mxu0 }
 0x269   : > { %v2169_v34 = vpop.f32.mrf.mxu1  ;;  %v2061_v30 = vadd.f32 %v2060_v24, %v5057_v26 }
 0x26a   : > { %v2691_v16 = vmax.f32 %v2689_v61, %v2690_v21  ;;  %v2827_v20 = vmax.f32 %v2825_v38, %v2826_v28  ;;  %v2352_v0 = vmax.f32 %v2350_v2, %v2351_v59  ;;  %v2537_v43 = vmax.f32 %v2535_v56, %v2536_v12  ;;  %v1963_v2 = vpop.f32.mrf.mxu3 }
 0x26b   : > { %v2170_v45 = vadd.f32 %v2169_v34, %v2061_v30 }
 0x26c   : > { %v2743_v42 = vmax.f32 %v2742_v18, %v2691_v16  ;;  %v2879_v27 = vmax.f32 %v2878_v11, %v2827_v20  ;;  %v2353_v25 = vrot.slane %v2352_v0, 2  ;;  %v2538_v50 = vrot.slane %v2537_v43, 2 }
 0x26d   : > { %v2230_v60 = vmax.f32 %v2170_v45, 0.0 }
 0x26e   : > { %v2754_v17 = vadd.f32 %v2743_v42, %v2618_v57  ;;  %v2354_v7 = vmax.f32 %v2352_v0, %v2353_v25  ;;  %v2539_v55 = vmax.f32 %v2537_v43, %v2538_v50 }
 0x26f   : > { %v2357_v62 = vsel %vm2244_vm0, %v2230_v60, -inf  ;;  %v2542_v1 = vsel %vm2429_vm1, %v2230_v60, -inf }
 0x270   : > { %v5303_v58 = vadd.f32 %v2879_v27, %v2754_v17  ;;  %v2358_v47 = vrot.slane %v2357_v62, 4  ;;  %v2062_v19 = vpop.f32.mrf.mxu0  ;;  %v2543_v46 = vrot.slane %v2542_v1, 4  ;;  %v2355_v29 = vrot.slane %v2354_v7, 1 }
 0x271   : > { %v2171_v26 = vpop.f32.mrf.mxu1  ;;  %v2063_v52 = vadd.f32 %v2062_v19, %v5066_v33  ;;  %v2540_v32 = vrot.slane %v2539_v55, 1 }
 0x272   : > { %v2359_v36 = vmax.f32 %v2357_v62, %v2358_v47  ;;  %v2544_v49 = vmax.f32 %v2542_v1, %v2543_v46  ;;  %v2356_v13 = vmax.f32 %v2354_v7, %v2355_v29 }
 0x273   : > { %v2172_v35 = vadd.f32 %v2171_v26, %v2063_v52  ;;  %v2541_v56 = vmax.f32 %v2539_v55, %v2540_v32 }
 0x274   : > { %v2360_v57 = vrot.slane %v2359_v36, 2  ;;  %v2545_v4 = vrot.slane %v2544_v49, 2 }
 0x275   : > { %v2231_v41 = vmax.f32 %v2172_v35, 0.0 }
 0x276   : > { %v2361_v9 = vmax.f32 %v2359_v36, %v2360_v57  ;;  %v2546_v22 = vmax.f32 %v2544_v49, %v2545_v4  ;;  %v1966_v36 = vpop.f32.mrf.mxu3 }
 0x277   : > { %v2364_v23 = vsel %vm2244_vm0, %v2231_v41, -inf  ;;  %v2549_v54 = vsel %vm2429_vm1, %v2231_v41, -inf }
 0x278   : > { %v2362_v15 = vrot.slane %v2361_v9, 1  ;;  %v2365_v53 = vrot.slane %v2364_v23, 4  ;;  %v2550_v8 = vrot.slane %v2549_v54, 4  ;;  %v2065_v33 = vpop.f32.mrf.mxu0  ;;  %v2547_v11 = vrot.slane %v2546_v22, 1 }
 0x279   : > { %v2174_v18 = vpop.f32.mrf.mxu1  ;;  %v2066_v5 = vadd.f32 %v2065_v33, %v5076_v48 }
 0x27a   : > { %v2363_v51 = vmax.f32 %v2361_v9, %v2362_v15  ;;  %v2366_v61 = vmax.f32 %v2364_v23, %v2365_v53  ;;  %v2551_v38 = vmax.f32 %v2549_v54, %v2550_v8  ;;  %v2548_v21 = vmax.f32 %v2546_v22, %v2547_v11 }
 0x27b   : > { %v2175_v28 = vadd.f32 %v2174_v18, %v2066_v5 }
 0x27c   : > { %v2423_v59 = vmax.f32 %v2356_v13, %v2363_v51  ;;  %v2367_v12 = vrot.slane %v2366_v61, 2  ;;  %v2552_v24 = vrot.slane %v2551_v38, 2  ;;  %v2608_v34 = vmax.f32 %v2541_v56, %v2548_v21 }
 0x27d   : > { %v2232_v30 = vmax.f32 %v2175_v28, 0.0  ;;  %v1964_v21 = vadd.f32 %v1963_v2, %v5116_v14  ;;  %v5321_v14 = vld [vmem:[%s5833_s7 + $0x78] sm:$0xff] }
 0x27e   : > { %v2368_v16 = vmax.f32 %v2366_v61, %v2367_v12  ;;  %v2553_v20 = vmax.f32 %v2551_v38, %v2552_v24  ;;  %v1968_v28 = vpop.f32.mrf.mxu3  ;;  %3011 = vmatpush.msrb.mxu2 %v5321_v14 }
 0x27f   : > { %v2692_v0 = vsel %vm2244_vm0, %v2232_v30, -inf  ;;  %v2828_v43 = vsel %vm2429_vm1, %v2232_v30, -inf }
 0x280   : > { %v2369_v48 = vrot.slane %v2368_v16, 1  ;;  %v2554_v45 = vrot.slane %v2553_v20, 1  ;;  %v2693_v42 = vrot.slane %v2692_v0, 4  ;;  %v2829_v27 = vrot.slane %v2828_v43, 4  ;;  %v2067_v60 = vpop.f32.mrf.mxu0 }
 0x281   : > { %v2176_v17 = vpop.f32.mrf.mxu1  ;;  %v2068_v25 = vadd.f32 %v2067_v60, %v5095_v37 }
 0x282   : > { %v2370_v50 = vmax.f32 %v2368_v16, %v2369_v48  ;;  %v2555_v62 = vmax.f32 %v2553_v20, %v2554_v45  ;;  %v2694_v1 = vmax.f32 %v2692_v0, %v2693_v42  ;;  %v2830_v47 = vmax.f32 %v2828_v43, %v2829_v27 }
 0x283   : > { %v2177_v19 = vadd.f32 %v2176_v17, %v2068_v25 }
 0x284   : > { %v2424_v26 = vmax.f32 %v2423_v59, %v2370_v50  ;;  %v2609_v46 = vmax.f32 %v2608_v34, %v2555_v62  ;;  %v2695_v52 = vrot.slane %v2694_v1, 2  ;;  %v2831_v7 = vrot.slane %v2830_v47, 2 }
 0x285   : > { %v2233_v55 = vmax.f32 %v2177_v19, 0.0 }
 0x286   : > { %v2619_v49 = vadd.f32 %v2609_v46, %v2424_v26  ;;  %v2696_v35 = vmax.f32 %v2694_v1, %v2695_v52  ;;  %v2832_v57 = vmax.f32 %v2830_v47, %v2831_v7  ;;  %v1967_v1 = vadd.f32 %v1966_v36, %v5126_v6 }
 0x287   : > { %v2699_v4 = vsel %vm2244_vm0, %v2233_v55, -inf  ;;  %v2835_v41 = vsel %vm2429_vm1, %v2233_v55, -inf  ;;  %v2898_v6 = vmul.f32 0.25, %v5303_v58 }
 0x288   : > { %v2697_v29 = vrot.slane %v2696_v35, 1  ;;  %v2833_v37 = vrot.slane %v2832_v57, 1  ;;  %v2700_v9 = vrot.slane %v2699_v4, 4  ;;  %v2836_v32 = vrot.slane %v2835_v41, 4  ;;  %v2070_v22 = vpop.f32.mrf.mxu0 }
 0x289   : > { %v2179_v23 = vpop.f32.mrf.mxu1  ;;  %v2071_v54 = vadd.f32 %v2070_v22, %v5105_v44 }
 0x28a   : > { %v2698_v15 = vmax.f32 %v2696_v35, %v2697_v29  ;;  %v2834_v53 = vmax.f32 %v2832_v57, %v2833_v37  ;;  %v2701_v8 = vmax.f32 %v2699_v4, %v2700_v9  ;;  %v2837_v33 = vmax.f32 %v2835_v41, %v2836_v32  ;;  %v1971_v35 = vpop.f32.mrf.mxu3  ;;  %v5343_v37 = vld [vmem:[%s5833_s7 + $0x60] sm:$0xff] }
 0x28b   : > { %v2180_v18 = vadd.f32 %v2179_v23, %v2071_v54  ;;  %v5349_v54 = vld [vmem:[%s5833_s7 + $0x58] sm:$0xff] }
 0x28c   : > { %v2744_v11 = vmax.f32 %v2370_v50, %v2698_v15  ;;  %v2880_v5 = vmax.f32 %v2555_v62, %v2834_v53  ;;  %v2702_v13 = vrot.slane %v2701_v8, 2  ;;  %v2838_v51 = vrot.slane %v2837_v33, 2  ;;  %v5327_v62 = vld [vmem:[%s5833_s7 + $0x70] sm:$0xff] }
 0x28d   : > { %v2234_v61 = vmax.f32 %v2180_v18, 0.0  ;;  %3012 = vmatpush.msrb.mxu2 %v5327_v62 }
 0x28e   : > { %v2703_v38 = vmax.f32 %v2701_v8, %v2702_v13  ;;  %v2839_v56 = vmax.f32 %v2837_v33, %v2838_v51  ;;  %v1969_v8 = vadd.f32 %v1968_v28, %v5138_v10 }
 0x28f   : > { %v2371_v59 = vsel %vm2244_vm0, %v2234_v61, -inf  ;;  %v2556_v12 = vsel %vm2429_vm1, %v2234_v61, -inf }
 0x290   : > { %v2704_v44 = vrot.slane %v2703_v38, 1  ;;  %v2840_v24 = vrot.slane %v2839_v56, 1  ;;  %v2372_v34 = vrot.slane %v2371_v59, 4  ;;  %v2557_v30 = vrot.slane %v2556_v12, 4  ;;  %v2072_v16 = vpop.f32.mrf.mxu0 }
 0x291   : > { %v2181_v20 = vpop.f32.mrf.mxu1  ;;  %v2073_v0 = vadd.f32 %v2072_v16, %v1964_v21 }
 0x292   : > { %v2705_v43 = vmax.f32 %v2703_v38, %v2704_v44  ;;  %v2841_v48 = vmax.f32 %v2839_v56, %v2840_v24  ;;  %v2373_v45 = vmax.f32 %v2371_v59, %v2372_v34  ;;  %v2558_v42 = vmax.f32 %v2556_v12, %v2557_v30  ;;  %v5367_v59 = vld [vmem:[%s5833_s7 + $0x48] sm:$0xff] }
 0x293   : > { %v2182_v27 = vadd.f32 %v2181_v20, %v2073_v0  ;;  %v5373_v20 = vld [vmem:[%s5833_s7 + $0x40] sm:$0xff]  ;;  %v1973_v0 = vpop.f32.mrf.mxu3 }
 0x294   : > { %v2745_v60 = vmax.f32 %v2744_v11, %v2705_v43  ;;  %v2881_v17 = vmax.f32 %v2880_v5, %v2841_v48  ;;  %v2374_v50 = vrot.slane %v2373_v45, 2  ;;  %v2559_v47 = vrot.slane %v2558_v42, 2  ;;  %v5359_v11 = vld [vmem:[%s5833_s7 + $0x50] sm:$0xff] }
 0x295   : > { %v2235_v2 = vmax.f32 %v2182_v27, 0.0 }
 0x296   : > { %v2755_v25 = vadd.f32 %v2745_v60, %v2619_v49  ;;  %v5336_v49 = vld [vmem:[%s5833_s7 + $0x68] sm:$0xff]  ;;  %v2375_v41 = vmax.f32 %v2373_v45, %v2374_v50  ;;  %v2560_v9 = vmax.f32 %v2558_v42, %v2559_v47  ;;  %v5392_v47 = vld [vmem:[%s5833_s7 + $0x30] sm:$0xff] }
 0x297   : > { %v2378_v19 = vsel %vm2244_vm0, %v2235_v2, -inf  ;;  %v2563_v26 = vsel %vm2429_vm1, %v2235_v2, -inf  ;;  %3013 = vmatpush.msrb.mxu2 %v5336_v49 }
 0x298   : > { %v2891_v46 = vadd.f32 %v2881_v17, %v2755_v25  ;;  %v2379_v52 = vrot.slane %v2378_v19, 4  ;;  %v2075_v7 = vpop.f32.mrf.mxu0  ;;  %v2564_v57 = vrot.slane %v2563_v26, 4  ;;  %v2376_v33 = vrot.slane %v2375_v41, 1  ;;  %v5380_v17 = vld [vmem:[%s5833_s7 + $0x38] sm:$0xff] }
 0x299   : > { %v2184_v55 = vpop.f32.mrf.mxu1  ;;  %v2076_v4 = vadd.f32 %v2075_v7, %v1967_v1  ;;  %3014 = vmatpush.msrb.mxu2 %v5343_v37  ;;  %v2561_v5 = vrot.slane %v2560_v9, 1 }
 0x29a   : > { %v2899_v36 = vmul.f32 0.25, %v2891_v46  ;;  %v2380_v29 = vmax.f32 %v2378_v19, %v2379_v52  ;;  %v2565_v32 = vmax.f32 %v2563_v26, %v2564_v57  ;;  %v2377_v24 = vmax.f32 %v2375_v41, %v2376_v33  ;;  %v5425_v33 = vld [vmem:[%s5833_s7 + $0x18] sm:$0xff] }
 0x29b   : > { %v2185_v22 = vadd.f32 %v2184_v55, %v2076_v4  ;;  %3015 = vmatpush.msrb.mxu2 %v5349_v54  ;;  %v2562_v43 = vmax.f32 %v2560_v9, %v2561_v5  ;;  %v1972_v19 = vadd.f32 %v1971_v35, %v5161_v31 }
 0x29c   : > { %v2381_v23 = vrot.slane %v2380_v29, 2  ;;  %v5352_v58 = vsel %vm2928_vm2, %v2899_v36, %v2898_v6  ;;  %v2566_v15 = vrot.slane %v2565_v32, 2  ;;  %v5401_v36 = vld [vmem:[%s5833_s7 + $0x28] sm:$0xff] }
 0x29d   : > { %v2236_v53 = vmax.f32 %v2185_v22, 0.0  ;;  %3016 = vmatpush.msrb.mxu2 %v5359_v11 }
 0x29e   : > { %v2382_v18 = vmax.f32 %v2380_v29, %v2381_v23  ;;  %v2567_v13 = vmax.f32 %v2565_v32, %v2566_v15  ;;  %v5417_v32 = vld [vmem:[%s5833_s7 + $0x20] sm:$0xff] }
 0x29f   : > { %v2385_v51 = vsel %vm2244_vm0, %v2236_v53, -inf  ;;  %v2570_v61 = vsel %vm2429_vm1, %v2236_v53, -inf  ;;  %3017 = vmatpush.msrb.mxu2 %v5367_v59 }
 0x2a0   : > { %v2383_v38 = vrot.slane %v2382_v18, 1  ;;  %v2386_v56 = vrot.slane %v2385_v51, 4  ;;  %v2571_v21 = vrot.slane %v2570_v61, 4  ;;  %v2077_v10 = vpop.f32.mrf.mxu0  ;;  %v2568_v12 = vrot.slane %v2567_v13, 1 }
 0x2a1   : > { %v2186_v28 = vpop.f32.mrf.mxu1  ;;  %v2078_v44 = vadd.f32 %v2077_v10, %v1969_v8  ;;  %3018 = vmatpush.msrb.mxu2 %v5373_v20 }
 0x2a2   : > { %v2384_v34 = vmax.f32 %v2382_v18, %v2383_v38  ;;  %v2387_v30 = vmax.f32 %v2385_v51, %v2386_v56  ;;  %v2572_v16 = vmax.f32 %v2570_v61, %v2571_v21  ;;  %v2569_v48 = vmax.f32 %v2567_v13, %v2568_v12  ;;  %v1976_v18 = vpop.f32.mrf.mxu3  ;;  %v5432_v38 = vld [vmem:[%s5833_s7 + $0x10] sm:$0xff] }
 0x2a3   : > { %v2187_v45 = vadd.f32 %v2186_v28, %v2078_v44  ;;  %3019 = vmatpush.msrb.mxu2 %v5380_v17  ;;  %v1974_v56 = vadd.f32 %v1973_v0, %v5186_v3 }
 0x2a4   : > { %v2425_v42 = vmax.f32 %v2377_v24, %v2384_v34  ;;  %v2388_v27 = vrot.slane %v2387_v30, 2  ;;  %v2573_v60 = vrot.slane %v2572_v16, 2  ;;  %v2610_v2 = vmax.f32 %v2562_v43, %v2569_v48 }
 0x2a5   : > { %v2237_v25 = vmax.f32 %v2187_v45, 0.0  ;;  %3020 = vmatpush.msrb.mxu2 %v5392_v47 }
 0x2a6   : > { %v2389_v50 = vmax.f32 %v2387_v30, %v2388_v27  ;;  %v2574_v1 = vmax.f32 %v2572_v16, %v2573_v60  ;;  %v5441_v16 = vld [vmem:[%s5833_s7 + $0x8] sm:$0xff]  ;;  %v2989_v60 = vld [vmem:[%s5448_s25] sm:$0xff] }
 0x2a7   : > { %v2706_v26 = vsel %vm2244_vm0, %v2237_v25, -inf  ;;  %v2842_v46 = vsel %vm2429_vm1, %v2237_v25, -inf  ;;  %3021 = vmatpush.msrb.mxu2 %v5401_v36 }
 0x2a8   : > { %v2390_v52 = vrot.slane %v2389_v50, 1  ;;  %v2575_v7 = vrot.slane %v2574_v1, 1  ;;  %v2707_v55 = vrot.slane %v2706_v26, 4  ;;  %v2843_v57 = vrot.slane %v2842_v46, 4  ;;  %v2080_v4 = vpop.f32.mrf.mxu0 }
 0x2a9   : > { %v2189_v6 = vpop.f32.mrf.mxu1  ;;  %v2081_v41 = vadd.f32 %v2080_v4, %v1972_v19  ;;  %3022 = vmatpush.msrb.mxu2 %v5417_v32 }
 0x2aa   : > { %v5410_v31 = vmax.f32 %v2389_v50, %v2390_v52  ;;  %v5412_v35 = vmax.f32 %v2574_v1, %v2575_v7  ;;  %v2708_v29 = vmax.f32 %v2706_v26, %v2707_v55  ;;  %v2844_v9 = vmax.f32 %v2842_v46, %v2843_v57  ;;  %v1978_v7 = vpop.f32.mrf.mxu3 }
 0x2ab   : > { %v2190_v22 = vadd.f32 %v2189_v6, %v2081_v41  ;;  %3023 = vmatpush.msrb.mxu2 %v5425_v33  ;;  %v1977_v52 = vadd.f32 %v1976_v18, %v5213_v63 }
 0x2ac   : > { %v2426_v23 = vmax.f32 %v2425_v42, %v5410_v31  ;;  %v2611_v15 = vmax.f32 %v2610_v2, %v5412_v35  ;;  %v2709_v53 = vrot.slane %v2708_v29, 2  ;;  %v2845_v8 = vrot.slane %v2844_v9, 2  ;;  %v5454_v42 = vld [vmem:[%s5833_s7] sm:$0xff] }
 0x2ad   : > { %v2238_v5 = vmax.f32 %v2190_v22, 0.0  ;;  %3024 = vmatpush.msrb.mxu2 %v5432_v38 }
 0x2ae   : > { %v2620_v13 = vadd.f32 %v2611_v15, %v2426_v23  ;;  %v2710_v51 = vmax.f32 %v2708_v29, %v2709_v53  ;;  %v2846_v61 = vmax.f32 %v2844_v9, %v2845_v8 }
 0x2af   : > { %v2713_v21 = vsel %vm2244_vm0, %v2238_v5, -inf  ;;  %v2849_v10 = vsel %vm2429_vm1, %v2238_v5, -inf  ;;  %3025 = vmatpush.msrb.mxu2 %v5441_v16  ;;  %v2990_v5 = vld [vmem:[%s5448_s25 + $0x8] sm:$0xf] }
 0x2b0   : > { %v2711_v28 = vrot.slane %v2710_v51, 1  ;;  %v2847_v12 = vrot.slane %v2846_v61, 1  ;;  %v2714_v44 = vrot.slane %v2713_v21, 4  ;;  %v2850_v24 = vrot.slane %v2849_v10, 4  ;;  %v2082_v34 = vpop.f32.mrf.mxu0 }
 0x2b1   : > { %v2191_v30 = vpop.f32.mrf.mxu1  ;;  %v2083_v3 = vadd.f32 %v2082_v34, %v1974_v56  ;;  %3026 = vmatpush.msrb.mxu2 %v5454_v42 }
 0x2b2   : > { %v2712_v0 = vmax.f32 %v2710_v51, %v2711_v28  ;;  %v2848_v43 = vmax.f32 %v2846_v61, %v2847_v12  ;;  %v2715_v48 = vmax.f32 %v2713_v21, %v2714_v44  ;;  %v2851_v45 = vmax.f32 %v2849_v10, %v2850_v24  ;;  %3027 = vmatmul.f32.vlgmr.msrb.gmra.mxu2 %v2989_v60 }
 0x2b3   : > { %v2192_v27 = vadd.f32 %v2191_v30, %v2083_v3  ;;  %v1979_v21 = vadd.f32 %v1978_v7, %v5239_v40 }
 0x2b4   : > { %v2746_v2 = vmax.f32 %v5410_v31, %v2712_v0  ;;  %v2882_v25 = vmax.f32 %v5412_v35, %v2848_v43  ;;  %v2716_v50 = vrot.slane %v2715_v48, 2  ;;  %v2852_v1 = vrot.slane %v2851_v45, 2  ;;  %v1981_v43 = vpop.f32.mrf.mxu3 }
 0x2b5   : > { %v2239_v19 = vmax.f32 %v2192_v27, 0.0 }
 0x2b6   : > { %v2717_v26 = vmax.f32 %v2715_v48, %v2716_v50  ;;  %v2853_v46 = vmax.f32 %v2851_v45, %v2852_v1  ;;  %v4356_v50 = vld [vmem:[%s5830_s4] ss:$0 sm:$0xff] }
 0x2b7   : > { %v2392_v55 = vsel %vm2244_vm0, %v2239_v19, -inf  ;;  %v2577_v57 = vsel %vm2429_vm1, %v2239_v19, -inf  ;;  %v5898_v1 = vld [vmem:[#allocation10_spill] sm:$0xff] }
 0x2b8   : > { %v2718_v4 = vrot.slane %v2717_v26, 1  ;;  %v2854_v6 = vrot.slane %v2853_v46, 1  ;;  %v2393_v41 = vrot.slane %v2392_v55, 4  ;;  %v2578_v31 = vrot.slane %v2577_v57, 4  ;;  %v2085_v29 = vpop.f32.mrf.mxu0 }
 0x2b9   : > { %v2194_v35 = vpop.f32.mrf.mxu1  ;;  %v2086_v9 = vadd.f32 %v2085_v29, %v1977_v52  ;;  %v1657_v19 = vadd.f32 %v4356_v50, %v5898_v1  ;;  %v1982_v52 = vadd.f32 %v1981_v43, %v5260_v39 }
 0x2ba   : > { %v2719_v22 = vmax.f32 %v2717_v26, %v2718_v4  ;;  %v2855_v23 = vmax.f32 %v2853_v46, %v2854_v6  ;;  %v2394_v15 = vmax.f32 %v2392_v55, %v2393_v41  ;;  %v2579_v53 = vmax.f32 %v2577_v57, %v2578_v31  ;;  %3030 = vmatmul.f32.gmra.mxu2 %v2990_v5  ;;  %v1874_v57 = vpop.f32.mrf.mxu2 }
 0x2bb   : > { %v2195_v8 = vadd.f32 %v2194_v35, %v2086_v9 }
 0x2bc   : > { %v2747_v63 = vmax.f32 %v2746_v2, %v2719_v22  ;;  %v2883_v18 = vmax.f32 %v2882_v25, %v2855_v23  ;;  %v2395_v56 = vrot.slane %v2394_v15, 2  ;;  %v2580_v10 = vrot.slane %v2579_v53, 2  ;;  %v5899_v23 = vld [vmem:[#allocation9_spill] sm:$0xff] }
 0x2bd   : > { %v2240_v51 = vmax.f32 %v2195_v8, 0.0 }
 0x2be   : > { %v2756_v61 = vadd.f32 %v2747_v63, %v2620_v13  ;;  %v2396_v48 = vmax.f32 %v2394_v15, %v2395_v56  ;;  %v2581_v60 = vmax.f32 %v2579_v53, %v2580_v10  ;;  %v1766_v15 = vadd.f32 %v5899_v23, %v1657_v19  ;;  %v1983_v10 = vpop.f32.mrf.mxu3 }
 0x2bf   : > { %v2399_v28 = vsel %vm2244_vm0, %v2240_v51, -inf  ;;  %v2584_v12 = vsel %vm2429_vm1, %v2240_v51, -inf }
 0x2c0   : > { %v2892_v44 = vadd.f32 %v2883_v18, %v2756_v61  ;;  %v2400_v24 = vrot.slane %v2399_v28, 4  ;;  %v2087_v34 = vpop.f32.mrf.mxu0  ;;  %v2585_v3 = vrot.slane %v2584_v12, 4  ;;  %v2397_v7 = vrot.slane %v2396_v48, 1 }
 0x2c1   : > { %v2196_v30 = vpop.f32.mrf.mxu1  ;;  %v2088_v0 = vadd.f32 %v2087_v34, %v1979_v21  ;;  %v2582_v4 = vrot.slane %v2581_v60, 1  ;;  %v1875_v51 = vadd.f32 %v1874_v57, %v1766_v15  ;;  %v5500_v15 = vld [vmem:[%s5836_s10 + $0x70] sm:$0xff] }
 0x2c2   : > { %v2401_v45 = vmax.f32 %v2399_v28, %v2400_v24  ;;  %v2900_v27 = vmul.f32 0.25, %v2892_v44  ;;  %v2586_v13 = vmax.f32 %v2584_v12, %v2585_v3  ;;  %v2398_v5 = vmax.f32 %v2396_v48, %v2397_v7 }
 0x2c3   : > { %v2197_v2 = vadd.f32 %v2196_v30, %v2088_v0  ;;  %v2583_v61 = vmax.f32 %v2581_v60, %v2582_v4  ;;  %v1984_v0 = vadd.f32 %v1983_v10, %v1875_v51  ;;  %v5487_v4 = vld [vmem:[%s5828_s2] sm:$0xff]  ;;  %v5508_v51 = vld [vmem:[%s5836_s10 + $0x68] sm:$0xff] }
 0x2c4   : > { %v2402_v25 = vrot.slane %v2401_v45, 2  ;;  %v5469_v40 = vsel %vm2930_vm3, %v2900_v27, %v5352_v58  ;;  %v2587_v26 = vrot.slane %v2586_v13, 2 }
 0x2c5   : > { %v2241_v46 = vmax.f32 %v2197_v2, 0.0 }
 0x2c6   : > { %v2403_v55 = vmax.f32 %v2401_v45, %v2402_v25  ;;  %v2588_v6 = vmax.f32 %v2586_v13, %v2587_v26  ;;  %v4333_v45 = vld [vmem:[%s5832_s6] ss:$0 sm:$0xff] }
 0x2c7   : > { %v2406_v41 = vsel %vm2244_vm0, %v2241_v46, -inf  ;;  %v2591_v58 = vsel %vm2429_vm1, %v2241_v46, -inf }
 0x2c8   : > { %v2404_v31 = vrot.slane %v2403_v55, 1  ;;  %v2407_v29 = vrot.slane %v2406_v41, 4  ;;  %v2592_v35 = vrot.slane %v2591_v58, 4  ;;  %v2090_v9 = vpop.f32.mrf.mxu0  ;;  %v2589_v53 = vrot.slane %v2588_v6, 1 }
 0x2c9   : > { %v2199_v22 = vpop.f32.mrf.mxu1  ;;  %v2091_v8 = vadd.f32 %v2090_v9, %v1982_v52 }
 0x2ca   : > { %v2405_v39 = vmax.f32 %v2403_v55, %v2404_v31  ;;  %v2408_v63 = vmax.f32 %v2406_v41, %v2407_v29  ;;  %v2593_v18 = vmax.f32 %v2591_v58, %v2592_v35  ;;  %v2590_v56 = vmax.f32 %v2588_v6, %v2589_v53  ;;  %v5492_v29 = vld [vmem:[%s5836_s10 + $0x78] sm:$0xff] }
 0x2cb   : > { %v2200_v21 = vadd.f32 %v2199_v22, %v2091_v8 }
 0x2cc   : > { %v2427_v28 = vmax.f32 %v2398_v5, %v2405_v39  ;;  %v2409_v12 = vrot.slane %v2408_v63, 2  ;;  %v2594_v44 = vrot.slane %v2593_v18, 2  ;;  %v2612_v24 = vmax.f32 %v2583_v61, %v2590_v56 }
 0x2cd   : > { %v2242_v34 = vmax.f32 %v2200_v21, 0.0 }
 0x2ce   : > { %v2410_v30 = vmax.f32 %v2408_v63, %v2409_v12  ;;  %v2595_v3 = vmax.f32 %v2593_v18, %v2594_v44  ;;  %v5519_v12 = vld [vmem:[%s5828_s2 + $0x8] sm:$0xf] }
 0x2cf   : > { %v2720_v43 = vsel %vm2244_vm0, %v2242_v34, -inf  ;;  %v2856_v48 = vsel %vm2429_vm1, %v2242_v34, -inf }
 0x2d0   : > { %v2411_v27 = vrot.slane %v2410_v30, 1  ;;  %v2596_v60 = vrot.slane %v2595_v3, 1  ;;  %v2721_v13 = vrot.slane %v2720_v43, 4  ;;  %v2857_v2 = vrot.slane %v2856_v48, 4  ;;  %v2092_v25 = vpop.f32.mrf.mxu0  ;;  %v2952_v19 = vpop.f32.mrf.mxu2 }
 0x2d1   : > { %v2201_v50 = vpop.f32.mrf.mxu1  ;;  %v2093_v1 = vadd.f32 %v2092_v25, %v1984_v0  ;;  %v2953_v55 = vadd.f32 %v4333_v45, %v2952_v19  ;;  %v5545_v25 = vld [vmem:[%s5836_s10 + $0x40] sm:$0xff]  ;;  %v5551_v19 = vld [vmem:[%s5836_s10 + $0x38] sm:$0xff] }
 0x2d2   : > { %v2412_v26 = vmax.f32 %v2410_v30, %v2411_v27  ;;  %v2597_v46 = vmax.f32 %v2595_v3, %v2596_v60  ;;  %v2722_v52 = vmax.f32 %v2720_v43, %v2721_v13  ;;  %v2858_v7 = vmax.f32 %v2856_v48, %v2857_v2  ;;  %v5525_v3 = vld [vmem:[%s5836_s10 + $0x58] sm:$0xff]  ;;  %v5533_v48 = vld [vmem:[%s5836_s10 + $0x50] sm:$0xff]  ;;  %v5539_v60 = vld [vmem:[%s5836_s10 + $0x48] sm:$0xff] }
 0x2d3   : > { %v2202_v57 = vadd.f32 %v2201_v50, %v2093_v1  ;;  %4125 = vmatpush.msk.msra.mxu3 %vm2962_vm5, %v2953_v55  ;;  %v5569_v55 = vld [vmem:[%s5836_s10 + $0x20] sm:$0xff] }
 0x2d4   : > { %v2428_v6 = vmax.f32 %v2427_v28, %v2412_v26  ;;  %v2613_v41 = vmax.f32 %v2612_v24, %v2597_v46  ;;  %v2723_v58 = vrot.slane %v2722_v52, 2  ;;  %v2859_v31 = vrot.slane %v2858_v7, 2  ;;  %4126 = vmatmul.msk.f32.vlgmr.msra.gmra.mxu3 %vm2955_vm6, %v5487_v4  ;;  %v5514_v28 = vld [vmem:[%s5836_s10 + $0x60] sm:$0xff] }
 0x2d5   : > { %v2243_v35 = vmax.f32 %v2202_v57, 0.0  ;;  %3066 = vmatpush.msrb.mxu3 %v5492_v29 }
 0x2d6   : > { %v2621_v9 = vadd.f32 %v2613_v41, %v2428_v6  ;;  %v2724_v22 = vmax.f32 %v2722_v52, %v2723_v58  ;;  %v2860_v23 = vmax.f32 %v2858_v7, %v2859_v31  ;;  %v5563_v52 = vld [vmem:[%s5836_s10 + $0x28] sm:$0xff]  ;;  %v5575_v6 = vld [vmem:[%s5836_s10 + $0x18] sm:$0xff]  ;;  %v5585_v58 = vld [vmem:[%s5836_s10 + $0x10] sm:$0xff] }
 0x2d7   : > { %v2727_v53 = vsel %vm2244_vm0, %v2243_v35, -inf  ;;  %v2863_v8 = vsel %vm2429_vm1, %v2243_v35, -inf  ;;  %3067 = vmatpush.msrb.mxu3 %v5500_v15  ;;  %v5591_v31 = vld [vmem:[%s5836_s10 + $0x8] sm:$0xff]  ;;  %v3157_v35 = vld [vmem:[%s5831_s5 + $0x78] sm:$0xff] }
 0x2d8   : > { %v2725_v5 = vrot.slane %v2724_v22, 1  ;;  %v2861_v39 = vrot.slane %v2860_v23, 1  ;;  %v2728_v63 = vrot.slane %v2727_v53, 4  ;;  %v2864_v18 = vrot.slane %v2863_v8, 4 }
 0x2d9   : > { %3068 = vmatpush.msrb.mxu3 %v5508_v51 }
 0x2da   : > { %v2726_v61 = vmax.f32 %v2724_v22, %v2725_v5  ;;  %v2862_v56 = vmax.f32 %v2860_v23, %v2861_v39  ;;  %v2729_v21 = vmax.f32 %v2727_v53, %v2728_v63  ;;  %v2865_v10 = vmax.f32 %v2863_v8, %v2864_v18  ;;  %v3155_v22 = vld [vmem:[%s5831_s5 + $0x68] sm:$0xff]  ;;  %v3154_v23 = vld [vmem:[%s5831_s5 + $0x60] sm:$0xff]  ;;  %v3153_v53 = vld [vmem:[%s5831_s5 + $0x58] sm:$0xff] }
 0x2db   : > { %3069 = vmatpush.msrb.mxu3 %v5514_v28  ;;  %v3152_v8 = vld [vmem:[%s5831_s5 + $0x50] sm:$0xff]  ;;  %v3151_v5 = vld [vmem:[%s5831_s5 + $0x48] sm:$0xff]  ;;  %v5625_v39 = vld [vmem:[%s5835_s9 + $0x78] sm:$0xff] }
 0x2dc   : > { %v2748_v44 = vmax.f32 %v2412_v26, %v2726_v61  ;;  %v2884_v24 = vmax.f32 %v2597_v46, %v2862_v56  ;;  %v2730_v34 = vrot.slane %v2729_v21, 2  ;;  %v2866_v30 = vrot.slane %v2865_v10, 2  ;;  %4127 = vmatmul.msk.f32.gmra.mxu3 %vm2955_vm6, %v5519_v12  ;;  %v5557_v46 = vld [vmem:[%s5836_s10 + $0x30] sm:$0xff]  ;;  %3089 = vmatpush.msra.mxu2 %v5625_v39  ;;  %v5637_v18 = vld [vmem:[%s5835_s9 + $0x68] sm:$0xff]  ;;  %v5643_v61 = vld [vmem:[%s5835_s9 + $0x60] sm:$0xff] }
 0x2dd   : > { %3070 = vmatpush.msrb.mxu3 %v5525_v3  ;;  %v5631_v63 = vld [vmem:[%s5835_s9 + $0x70] sm:$0xff]  ;;  %v5649_v56 = vld [vmem:[%s5835_s9 + $0x58] sm:$0xff] }
 0x2de   : > { %v2731_v0 = vmax.f32 %v2729_v21, %v2730_v34  ;;  %v2867_v43 = vmax.f32 %v2865_v10, %v2866_v30  ;;  %3090 = vmatpush.msra.mxu2 %v5631_v63  ;;  %v5655_v21 = vld [vmem:[%s5835_s9 + $0x50] sm:$0xff]  ;;  %v5661_v10 = vld [vmem:[%s5835_s9 + $0x48] sm:$0xff] }
 0x2df   : > { %3071 = vmatpush.msrb.mxu3 %v5533_v48  ;;  %v5679_v34 = vld [vmem:[%s5835_s9 + $0x30] sm:$0xff]  ;;  %v5685_v30 = vld [vmem:[%s5835_s9 + $0x28] sm:$0xff] }
 0x2e0   : > { %v2732_v45 = vrot.slane %v2731_v0, 1  ;;  %v2868_v27 = vrot.slane %v2867_v43, 1  ;;  %3091 = vmatpush.msra.mxu2 %v5637_v18 }
 0x2e1   : > { %3072 = vmatpush.msrb.mxu3 %v5539_v60 }
 0x2e2   : > { %v2733_v13 = vmax.f32 %v2731_v0, %v2732_v45  ;;  %v2869_v2 = vmax.f32 %v2867_v43, %v2868_v27  ;;  %3092 = vmatpush.msra.mxu2 %v5643_v61  ;;  %v5691_v0 = vld [vmem:[%s5835_s9 + $0x20] sm:$0xff]  ;;  %v5697_v43 = vld [vmem:[%s5835_s9 + $0x18] sm:$0xff]  ;;  %v5703_v45 = vld [vmem:[%s5835_s9 + $0x10] sm:$0xff] }
 0x2e3   : > { %3073 = vmatpush.msrb.mxu3 %v5545_v25  ;;  %v4334_v27 = vld [vmem:[%s5834_s8] ss:$0 sm:$0xff] }
 0x2e4   : > { %v2749_v50 = vmax.f32 %v2748_v44, %v2733_v13  ;;  %v2885_v1 = vmax.f32 %v2884_v24, %v2869_v2  ;;  %3093 = vmatpush.msra.mxu2 %v5649_v56  ;;  %v5667_v44 = vld [vmem:[%s5835_s9 + $0x40] sm:$0xff]  ;;  %v5673_v24 = vld [vmem:[%s5835_s9 + $0x38] sm:$0xff]  ;;  %v3035_v13 = vld [vmem:[%s5835_s9 + $0x8] sm:$0xff] }
 0x2e5   : > { %3074 = vmatpush.msrb.mxu3 %v5551_v19 }
 0x2e6   : > { %v2757_v26 = vadd.f32 %v2749_v50, %v2621_v9  ;;  %v3156_v9 = vld [vmem:[%s5831_s5 + $0x70] sm:$0xff]  ;;  %3094 = vmatpush.msra.mxu2 %v5655_v21  ;;  %v3150_v50 = vld [vmem:[%s5831_s5 + $0x40] sm:$0xff] }
 0x2e7   : > { %3075 = vmatpush.msrb.mxu3 %v5557_v46 }
 0x2e8   : > { %v2893_v7 = vadd.f32 %v2885_v1, %v2757_v26  ;;  %3095 = vmatpush.msra.mxu2 %v5661_v10  ;;  %v3034_v26 = vld [vmem:[%s5835_s9] sm:$0xff] }
 0x2e9   : > { %3076 = vmatpush.msrb.mxu3 %v5563_v52 }
 0x2ea   : > { %v2901_v57 = vmul.f32 0.25, %v2893_v7  ;;  %3096 = vmatpush.msra.mxu2 %v5667_v44  ;;  %v3149_v7 = vld [vmem:[%s5831_s5 + $0x38] sm:$0xff] }
 0x2eb   : > { %3077 = vmatpush.msrb.mxu3 %v5569_v55 }
 0x2ec   : > { %v5579_v41 = vsel %vm2932_vm4, %v2901_v57, %v5469_v40  ;;  %v5597_v40 = vld [vmem:[%s5836_s10] sm:$0xff]  ;;  %3097 = vmatpush.msra.mxu2 %v5673_v24  ;;  %v3148_v57 = vld [vmem:[%s5831_s5 + $0x30] sm:$0xff] }
 0x2ed   : > { %3078 = vmatpush.msrb.mxu3 %v5575_v6 }
 0x2ee   : > { %3098 = vmatpush.msra.mxu2 %v5679_v34 }
 0x2ef   : > { %3079 = vmatpush.msrb.mxu3 %v5585_v58 }
 0x2f0   : > { %3099 = vmatpush.msra.mxu2 %v5685_v30 }
 0x2f1   : > { %3080 = vmatpush.msrb.mxu3 %v5591_v31 }
 0x2f2   : > { %3100 = vmatpush.msra.mxu2 %v5691_v0 }
 0x2f3   : > { %3081 = vmatpush.msrb.mxu3 %v5597_v40 }
 0x2f4   : > { %3101 = vmatpush.msra.mxu2 %v5697_v43 }
 0x2f5   : > { %3170 = vmatpush.msra.mxu3 %v3157_v35  ;;  %v3147_v35 = vld [vmem:[%s5831_s5 + $0x28] sm:$0xff] }
 0x2f6   : > { %3102 = vmatpush.msra.mxu2 %v5703_v45 }
 0x2f7   : > { %3171 = vmatpush.msra.mxu3 %v3156_v9 }
 0x2f8   : > { %3103 = vmatpush.msra.mxu2 %v3035_v13 }
 0x2f9   : > { %3172 = vmatpush.msra.mxu3 %v3155_v22  ;;  %v3146_v22 = vld [vmem:[%s5831_s5 + $0x20] sm:$0xff] }
 0x2fa   : > { %3104 = vmatpush.msra.mxu2 %v3034_v26 }
 0x2fb   : > { %3173 = vmatpush.msra.mxu3 %v3154_v23 }
 0x2fc   : > { %3239 = vmatpush.msrb.mxu2 %v5321_v14  ;;  %v3145_v14 = vld [vmem:[%s5831_s5 + $0x18] sm:$0xff] }
 0x2fd   : > { %3174 = vmatpush.msra.mxu3 %v3153_v53 }
 0x2fe   : > { %3240 = vmatpush.msrb.mxu2 %v5327_v62  ;;  %v3144_v62 = vld [vmem:[%s5831_s5 + $0x10] sm:$0xff] }
 0x2ff   : > { %3175 = vmatpush.msra.mxu3 %v3152_v8 }
 0x300   : > { %3241 = vmatpush.msrb.mxu2 %v5336_v49  ;;  %v4357_v49 = vld [vmem:[%s5831_s5 + $0x8] sm:$0xff] }
 0x301   : > { %3176 = vmatpush.msra.mxu3 %v3151_v5 }
 0x302   : > { %3242 = vmatpush.msrb.mxu2 %v5343_v37  ;;  %v4358_v37 = vld [vmem:[%s5831_s5] sm:$0xff] }
 0x303   : > { %3177 = vmatpush.msra.mxu3 %v3150_v50 }
 0x304   : > { %3243 = vmatpush.msrb.mxu2 %v5349_v54 }
 0x305   : > { %3178 = vmatpush.msra.mxu3 %v3149_v7 }
 0x306   : > { %3244 = vmatpush.msrb.mxu2 %v5359_v11 }
 0x307   : > { %3179 = vmatpush.msra.mxu3 %v3148_v57 }
 0x308   : > { %3245 = vmatpush.msrb.mxu2 %v5367_v59  ;;  %v4131_v59 = vld [vmem:[%s5448_s25 + $0x10] sm:$0xff] }
 0x309   : > { %3180 = vmatpush.msra.mxu3 %v3147_v35 }
 0x30a   : > { %3246 = vmatpush.msrb.mxu2 %v5373_v20  ;;  %v4132_v20 = vld [vmem:[%s5448_s25 + $0x18] sm:$0xf] }
 0x30b   : > { %3181 = vmatpush.msra.mxu3 %v3146_v22 }
 0x30c   : > { %3247 = vmatpush.msrb.mxu2 %v5380_v17 }
 0x30d   : > { %3182 = vmatpush.msra.mxu3 %v3145_v14 }
 0x30e   : > { %3248 = vmatpush.msrb.mxu2 %v5392_v47 }
 0x30f   : > { %3183 = vmatpush.msra.mxu3 %v3144_v62 }
 0x310   : > { %3249 = vmatpush.msrb.mxu2 %v5401_v36 }
 0x311   : > { %3184 = vmatpush.msra.mxu3 %v4357_v49 }
 0x312   : > { %3250 = vmatpush.msrb.mxu2 %v5417_v32 }
 0x313   : > { %3185 = vmatpush.msra.mxu3 %v4358_v37 }
 0x314   : > { %3251 = vmatpush.msrb.mxu2 %v5425_v33 }
 0x316   : > { %3252 = vmatpush.msrb.mxu2 %v5432_v38  ;;  %v4336_v38 = vld [vmem:[%s5837_s11] ss:$0 sm:$0xff] }
 0x318   : > { %3253 = vmatpush.msrb.mxu2 %v5441_v16 }
 0x31a   : > { %3254 = vmatpush.msrb.mxu2 %v5454_v42  ;;  %v4335_v42 = vld [vmem:[%s5832_s6] ss:$0 sm:$0xff] }
 0x335   : > { %v3028_v2 = vpop.f32.mrf.mxu2 }
 0x336   : > { %v3029_v1 = vadd.f32 %v4334_v27, %v3028_v2 }
 0x338   : > { %3105 = vmatmul.f32.vlgmr.msra.gmra.mxu2 %v3029_v1 }
 0x339   : > { %3317 = vmatpush.msra.mxu2 %v5625_v39 }
 0x33b   : > { %3318 = vmatpush.msra.mxu2 %v5631_v63 }
 0x33d   : > { %v3031_v9 = vpop.f32.mrf.mxu2  ;;  %3319 = vmatpush.msra.mxu2 %v5637_v18 }
 0x33e   : > { %v3032_v23 = vadd.f32 %v4334_v27, %v3031_v9 }
 0x33f   : > { %3320 = vmatpush.msra.mxu2 %v5643_v61 }
 0x340   : > { %3108 = vmatmul.f32.gmra.mxu2 %v3032_v23 }
 0x341   : > { %3321 = vmatpush.msra.mxu2 %v5649_v56 }
 0x343   : > { %3322 = vmatpush.msra.mxu2 %v5655_v21 }
 0x345   : > { %3323 = vmatpush.msra.mxu2 %v5661_v10 }
 0x347   : > { %3324 = vmatpush.msra.mxu2 %v5667_v44 }
 0x348   : > { %3255 = vmatmul.f32.vlgmr.msrb.gmra.mxu2 %v4131_v59 }
 0x349   : > { %3325 = vmatpush.msra.mxu2 %v5673_v24 }
 0x34b   : > { %3326 = vmatpush.msra.mxu2 %v5679_v34 }
 0x34d   : > { %3327 = vmatpush.msra.mxu2 %v5685_v30 }
 0x34f   : > { %3328 = vmatpush.msra.mxu2 %v5691_v0 }
 0x350   : > { %3258 = vmatmul.f32.gmra.mxu2 %v4132_v20 }
 0x351   : > { %3329 = vmatpush.msra.mxu2 %v5697_v43  ;;  %v4338_v43 = vld [vmem:[%s5837_s11] ss:$0 sm:$0xff] }
 0x353   : > { %3330 = vmatpush.msra.mxu2 %v5703_v45 }
 0x355   : > { %3331 = vmatpush.msra.mxu2 %v3035_v13 }
 0x357   : > { %v2983_v54 = vpop.f32.mrf.mxu3  ;;  %3332 = vmatpush.msra.mxu2 %v3034_v26 }
 0x358   : > { %3082 = vmatmul.f32.vlgmr.msrb.gmra.mxu3 %v2983_v54 }
 0x35f   : > { %v2986_v11 = vpop.f32.mrf.mxu3 }
 0x360   : > { %3085 = vmatmul.f32.gmra.mxu3 %v2986_v11 }
 0x368   : > { %3186 = vmatmul.f32.vlgmr.msra.gmra.mxu3 %v5579_v41 }
 0x3bb   : > { %v3106_v17 = vpop.f32.mrf.mxu2 }
 0x3c3   : > { %v3109_v36 = vpop.f32.mrf.mxu2 }
 0x3db   : > { %v3083_v47 = vpop.f32.mrf.mxu3 }
 0x3dc   : > { %v3107_v8 = vadd.f32 %v3106_v17, %v3083_v47 }
 0x3de   : > { %v3116_v39 = vadd.f32 %v4336_v38, %v3107_v8 }
 0x3e3   : > { %v3086_v32 = vpop.f32.mrf.mxu3 }
 0x3e4   : > { %v3110_v33 = vadd.f32 %v3109_v36, %v3086_v32 }
 0x3e6   : > { %v3117_v16 = vadd.f32 %v4336_v38, %v3110_v33 }
 0x3e8   : > { %v3120_v41 = vsel %vm2962_vm5, %v3117_v16, -inf }
 0x3e9   : > { %3121 = vmax.xlane.f32.xlu0 %v3120_v41 }
 0x3eb   : > { %v3187_v53 = vpop.f32.mrf.mxu3 }
 0x3ec   : > { %v3188_v5 = vadd.f32 %v4335_v42, %v3187_v53 }
 0x3ee   : > { %4128 = vmatpush.msk.msrb.mxu3 %vm2962_vm5, %v3188_v5 }
 0x3ef   : > { %4129 = vmatmul.msk.f32.vlgmr.msrb.gmra.mxu3 %vm2955_vm6, %v5487_v4  ;;  %v4337_v4 = vld [vmem:[%s5834_s8] ss:$0 sm:$0xff] }
 0x3f0   : > { %3294 = vmatpush.msra.mxu3 %v5492_v29  ;;  %v3256_v29 = vpop.f32.mrf.mxu2 }
 0x3f1   : > { %3118 = vmax.xlane.f32.xlu0 %v3116_v39 }
 0x3f2   : > { %3295 = vmatpush.msra.mxu3 %v5500_v15  ;;  %v3257_v15 = vadd.f32 %v4337_v4, %v3256_v29 }
 0x3f4   : > { %3296 = vmatpush.msra.mxu3 %v5508_v51  ;;  %3333 = vmatmul.f32.vlgmr.msra.gmra.mxu2 %v3257_v15 }
 0x3f6   : > { %3297 = vmatpush.msra.mxu3 %v5514_v28 }
 0x3f7   : > { %4130 = vmatmul.msk.f32.gmra.mxu3 %vm2955_vm6, %v5519_v12 }
 0x3f8   : > { %3298 = vmatpush.msra.mxu3 %v5525_v3  ;;  %v3259_v51 = vpop.f32.mrf.mxu2 }
 0x3f9   : > { %v3260_v28 = vadd.f32 %v4337_v4, %v3259_v51 }
 0x3fa   : > { %3299 = vmatpush.msra.mxu3 %v5533_v48 }
 0x3fc   : > { %3300 = vmatpush.msra.mxu3 %v5539_v60  ;;  %3336 = vmatmul.f32.gmra.mxu2 %v3260_v28 }
 0x3fe   : > { %3301 = vmatpush.msra.mxu3 %v5545_v25 }
 0x400   : > { %3302 = vmatpush.msra.mxu3 %v5551_v19 }
 0x402   : > { %3303 = vmatpush.msra.mxu3 %v5557_v46 }
 0x404   : > { %3304 = vmatpush.msra.mxu3 %v5563_v52 }
 0x406   : > { %3305 = vmatpush.msra.mxu3 %v5569_v55 }
 0x408   : > { %3306 = vmatpush.msra.mxu3 %v5575_v6 }
 0x40a   : > { %3307 = vmatpush.msra.mxu3 %v5585_v58 }
 0x40c   : > { %3308 = vmatpush.msra.mxu3 %v5591_v31 }
 0x40e   : > { %3309 = vmatpush.msra.mxu3 %v5597_v40 }
 0x45c   : > { %v3122_v12 = vpop.xlane.xlu0 %3121 }
 0x45d   : > { %v3124_v60 = vsub.f32 %v3117_v16, %v3122_v12 }
 0x45f   : > { %v3127_v19 = vmul.f32 1.442695, %v3124_v60 }
 0x464   : > { %v3119_v3 = vpop.xlane.xlu0 %3118 }
 0x465   : > { %v3123_v48 = vsub.f32 %v3116_v39, %v3119_v3 }
 0x467   : > { %v3125_v25 = vmul.f32 1.442695, %v3123_v48 }
 0x469   : > { %4339 = vpow2.f32 %v3125_v25 }
 0x46a   : > { %4341 = vpow2.f32 %v3127_v19 }
 0x46f   : > { %v4340_v46 = vpop.eup %4339 }
 0x470   : > { %3129 = vadd.xlane.f32.xlu2 %v4340_v46  ;;  %v4342_v55 = vpop.eup %4341 }
 0x471   : > { %v3131_v6 = vsel %vm2962_vm5, %v4342_v55, 0.0 }
 0x472   : > { %v3210_v52 = vpop.f32.mrf.mxu3 }
 0x473   : > { %3310 = vmatmul.f32.vlgmr.msra.gmra.mxu3 %v3210_v52 }
 0x477   : > { %v3334_v21 = vpop.f32.mrf.mxu2 }
 0x478   : > { %3132 = vadd.xlane.f32.xlu2 %v3131_v6 }
 0x47a   : > { %v3213_v58 = vpop.f32.mrf.mxu3 }
 0x47b   : > { %3313 = vmatmul.f32.gmra.mxu3 %v3213_v58 }
 0x47f   : > { %v3337_v34 = vpop.f32.mrf.mxu2 }
 0x4e3   : > { %v3130_v31 = vpop.xlane.xlu2 %3129 }
 0x4e4   : > { %4343 = vlog2.f32 %v3130_v31 }
 0x4ea   : > { %v4344_v40 = vpop.eup %4343 }
 0x4eb   : > { %v3135_v63 = vmul.f32 0.6931472, %v4344_v40  ;;  %v3133_v18 = vpop.xlane.xlu2 %3132 }
 0x4ec   : > { %4345 = vlog2.f32 %v3133_v18 }
 0x4ed   : > { %v3138_v61 = vsub.f32 %v3123_v48, %v3135_v63 }
 0x4ef   : > { %3140 = vst [vmem:[%s5812_s29] sm:$0xff] %v3138_v61 }
 0x4f2   : > { %v4346_v56 = vpop.eup %4345 }
 0x4f3   : > { %v3137_v10 = vmul.f32 0.6931472, %v4346_v56 }
 0x4f5   : > { %v3139_v44 = vsub.f32 %v3124_v60, %v3137_v10 }
 0x4f6   : > { %v3311_v24 = vpop.f32.mrf.mxu3 }
 0x4f7   : > { %3141 = vst [vmem:[%s5812_s29 + $0x8] sm:$0xf] %v3139_v44  ;;  %v3335_v13 = vadd.f32 %v3334_v21, %v3311_v24 }
 0x4f9   : > { %v3344_v2 = vadd.f32 %v4338_v43, %v3335_v13 }
 0x4fe   : > { %v3314_v30 = vpop.f32.mrf.mxu3 }
 0x4ff   : > { %v3338_v0 = vadd.f32 %v3337_v34, %v3314_v30 }
 0x501   : > { %v3345_v45 = vadd.f32 %v4338_v43, %v3338_v0 }
 0x503   : > { %v3348_v27 = vsel %vm2962_vm5, %v3345_v45, -inf }
 0x504   : > { %3349 = vmax.xlane.f32.xlu1 %v3348_v27 }
 0x50c   : > { %3346 = vmax.xlane.f32.xlu1 %v3344_v2 }
 0x577   : > { %v3350_v50 = vpop.xlane.xlu1 %3349 }
 0x578   : > { %v3352_v1 = vsub.f32 %v3345_v45, %v3350_v50 }
 0x57a   : > { %v3355_v26 = vmul.f32 1.442695, %v3352_v1 }
 0x57c   : > { %4347 = vpow2.f32 %v3355_v26 }
 0x57f   : > { %v3347_v7 = vpop.xlane.xlu1 %3346 }
 0x580   : > { %v3351_v57 = vsub.f32 %v3344_v2, %v3347_v7 }
 0x582   : > { %v4348_v35 = vpop.eup %4347  ;;  %v3353_v9 = vmul.f32 1.442695, %v3351_v57 }
 0x583   : > { %v3359_v22 = vsel %vm2962_vm5, %v4348_v35, 0.0 }
 0x584   : > { %4349 = vpow2.f32 %v3353_v9  ;;  %3360 = vadd.xlane.f32.xlu1 %v3359_v22 }
 0x58a   : > { %v4350_v23 = vpop.eup %4349 }
 0x58b   : > { %3357 = vadd.xlane.f32.xlu0 %v4350_v23 }
 0x5f7   : > { %v3361_v14 = vpop.xlane.xlu1 %3360 }
 0x5f8   : > { %4351 = vlog2.f32 %v3361_v14 }
 0x5fe   : > { %v4352_v62 = vpop.eup %4351  ;;  %v3358_v49 = vpop.xlane.xlu0 %3357 }
 0x5ff   : > { %4353 = vlog2.f32 %v3358_v49  ;;  %v3365_v37 = vmul.f32 0.6931472, %v4352_v62 }
 0x601   : > { %v3367_v54 = vsub.f32 %v3352_v1, %v3365_v37 }
 0x603   : > { %4134 = vst [vmem:[%s5812_s29 + $0x18] sm:$0xf] %v3367_v54 }
 0x605   : > { %v4354_v11 = vpop.eup %4353 }
 0x606   : > { %v3363_v59 = vmul.f32 0.6931472, %v4354_v11 }
 0x608   : > { %v3366_v20 = vsub.f32 %v3351_v57, %v3363_v59 }
 0x60a   : > { %4133 = vst [vmem:[%s5812_s29 + $0x10] sm:$0xff] %v3366_v20 }
 0x60b PF: > { %s22_s21 = sadd.s32 1, %s4365_s21  }
 0x60c   : > { %p19_p5 = scmp.ge.s32.totalorder %s22_s21, 4  }
 0x60e   :  { %21 = sbr.rel (!%p19_p5) target bundleno = 1 (0x1), region = 103 }

</bundles_post_ra>
